<compile_context>
chip_gen: v5e
topology: v5e:2x2
jax: 0.10.0
libtpu: 0.0.40
codegen_flags: <defaults>
</compile_context>

<pallas_src>
import functools
import math

import jax
import jax.numpy as jnp
from jax.experimental import pallas as pl
from jax.experimental.pallas import tpu as pltpu


CFG = dict(
    in_channel=4, out_channel=4, image_size=16, patch_size=4,
    inner_channel=32, noise_level_channel=32, lms_channel=4, pan_channel=1,
    time_hidden_ratio=4, num_dit_layers=2, num_heads=4, mlp_ratio=4,
)

_LN_EPS = 1e-6
_BF16 = jnp.bfloat16


# -----------------------------------------------------------------------------
# In-kernel helpers (traced inside the Pallas kernel)
# -----------------------------------------------------------------------------
def _ln(x):
    """LayerNorm without affine params, f32 math."""
    mu = jnp.mean(x, axis=-1, keepdims=True)
    xc = x - mu
    var = jnp.mean(xc * xc, axis=-1, keepdims=True)
    return xc * jax.lax.rsqrt(var + _LN_EPS)


def _mm(a, b):
    """Matmul with f32 accumulation; operands follow the weight dtype (bf16)."""
    return jnp.dot(a.astype(b.dtype), b, preferred_element_type=jnp.float32)


def _mha(q, k, v, wo, num_heads, scale):
    """Multi-head attention + output projection (no bias inside).

    q: (Nq, D), k/v: (Nk, D), wo: (D, D) bf16.  Heads are static lane slices of
    the feature axis; the concat + out-projection is folded into a per-head
    accumulation:  attn @ Wo == sum_h attn_h @ Wo[h*dh:(h+1)*dh, :].
    Row slices of wo land at multiples of dh=8 (bf16 pack-aligned sublanes).
    """
    N, D = q.shape
    dh = D // num_heads
    acc = jnp.zeros((N, D), jnp.float32)
    for h in range(num_heads):
        sl = slice(h * dh, (h + 1) * dh)
        qh = q[:, sl] * scale
        kh = k[:, sl]
        vh = v[:, sl]
        s = jax.lax.dot_general(qh, kh, (((1,), (1,)), ((), ())),
                                preferred_element_type=jnp.float32)   # (Nq, Nk)
        s = s - jnp.max(s, axis=-1, keepdims=True)
        p = jnp.exp(s)
        o = jnp.dot(p, vh, preferred_element_type=jnp.float32)        # (Nq, dh)
        # deferred softmax normalization on the small PV result (EUP reciprocal)
        o = o * pl.reciprocal(jnp.sum(p, axis=-1, keepdims=True), approx=True)
        acc = acc + _mm(o, wo[sl, :])
    return acc


# -----------------------------------------------------------------------------
# The fused kernel: embed + DiT stack + final layer, one grid point per batch
# -----------------------------------------------------------------------------
def _pan_dit_kernel(
        xp_ref, cp_ref, te_ref,
        fold_w_ref, fold_b_ref, pos_ref,
        cpe_w_ref, cpe_b_ref, fcpe_w_ref, fcpe_b_ref,
        tw1_ref, tb1_ref, tw2_ref, tb2_ref,
        ada_w_ref, ada_b_ref, qkv_w_ref, qkv_b_ref,
        ao_w_ref, ao_b_ref, m1_w_ref, m1_b_ref, m2_w_ref, m2_b_ref,
        fwq_ref, fbq_ref, fwk_ref, fbk_ref, fwv_ref, fbv_ref,
        fwo_ref, fbo_ref, fow_ref, fob_ref,
        o_ref, *, num_heads, num_layers):
    # ---- embedding: (prev_conv ∘ patch-embed) + pos + additive cond embed ----
    xp = xp_ref[...]                                   # (N, Cin*p*p)
    cp = cp_ref[...]                                   # (N, Cc*p*p)
    x = _mm(xp, fold_w_ref[...]) + fold_b_ref[...] + pos_ref[...]
    x = x + _mm(cp, cpe_w_ref[...]) + cpe_b_ref[...]           # DiT input tokens
    f_cond = _mm(cp, fcpe_w_ref[...]) + fcpe_b_ref[...]        # final-layer cond

    # ---- time MLP (single row) ----
    th = jax.nn.silu(_mm(te_ref[...], tw1_ref[...]) + tb1_ref[...])
    t = _mm(th, tw2_ref[...]) + tb2_ref[...]                   # (1, D)
    u = jax.nn.silu(t)                                         # hoisted (adaLN input)

    N, D = x.shape
    dh = D // num_heads
    scale = 1.0 / math.sqrt(dh)

    # ---- DiT stack: Python-unrolled in-kernel loop, weights indexed on a
    #      leading axis (no lane-unaligned slicing of qkv / modulation) ----
    for l in range(num_layers):
        mod = [_mm(u, ada_w_ref[6 * l + i]) + ada_b_ref[6 * l + i]
               for i in range(6)]                               # six (1, D) rows
        shift1, scale1, gate1, shift2, scale2, gate2 = mod

        # --- self-attention branch ---
        h = _ln(x) * (1.0 + scale1) + shift1
        q = _mm(h, qkv_w_ref[3 * l + 0]) + qkv_b_ref[3 * l + 0]
        k = _mm(h, qkv_w_ref[3 * l + 1]) + qkv_b_ref[3 * l + 1]
        v = _mm(h, qkv_w_ref[3 * l + 2]) + qkv_b_ref[3 * l + 2]
        attn = _mha(q, k, v, ao_w_ref[l], num_heads, scale) + ao_b_ref[l]
        x = x + gate1 * attn

        # --- MLP branch ---
        h = _ln(x) * (1.0 + scale2) + shift2
        h = jax.nn.gelu(_mm(h, m1_w_ref[l]) + m1_b_ref[l])
        h = _mm(h, m2_w_ref[l]) + m2_b_ref[l]
        x = x + gate2 * h

    # ---- final layer: LN -> cross-attn on cond tokens -> residual -> LN -> proj ----
    xn = _ln(x)
    q = _mm(xn, fwq_ref[...]) + fbq_ref[...]
    k = _mm(f_cond, fwk_ref[...]) + fbk_ref[...]
    v = _mm(f_cond, fwv_ref[...]) + fbv_ref[...]
    attn = _mha(q, k, v, fwo_ref[...], num_heads, scale) + fbo_ref[...]
    x = x + attn
    o_ref[...] = _mm(_ln(x), fow_ref[...]) + fob_ref[...]       # (N, out_c*p*p)


# -----------------------------------------------------------------------------
# BlockSpec helpers
# -----------------------------------------------------------------------------
def _fspec(shape):
    """Full-array block (constant block index -> fetched once, VMEM resident)."""
    nd = len(shape)
    return pl.BlockSpec(tuple(shape), lambda b: (0,) * nd)


def _bspec(tail):
    """Per-batch block: array (B, *tail), kernel sees tail (batch dim squeezed)."""
    nt = len(tail)
    return pl.BlockSpec((None,) + tuple(tail), lambda b: (b,) + (0,) * nt)


# -----------------------------------------------------------------------------
# JAX glue (pure layout transforms + tiny sinusoidal embedding)
# -----------------------------------------------------------------------------
def patchify_nchw(x, p):
    """(B, C, H, W) -> (B, N, C*p*p) with per-patch feature order (C, p, p)."""
    B, C, H, W = x.shape
    gh, gw = H // p, W // p
    x = x.reshape(B, C, gh, p, gw, p)
    x = x.transpose(0, 2, 4, 1, 3, 5)
    return x.reshape(B, gh * gw, C * p * p)


def unpatchify(tok, p, c_out, H, W):
    """(B, N, c_out*p*p) -> (B, c_out, H, W)."""
    B = tok.shape[0]
    gh, gw = H // p, W // p
    x = tok.reshape(B, gh, gw, c_out, p, p)
    x = x.transpose(0, 3, 1, 4, 2, 5)
    return x.reshape(B, c_out, H, W)


def time_encoding(t, dim):
    """Sinusoidal noise-level / timestep embedding -> (B, dim)."""
    half = dim // 2
    freqs = jnp.exp(-math.log(10000.0) *
                    jnp.arange(half, dtype=jnp.float32) / half)
    args = t.astype(jnp.float32)[:, None] * freqs[None, :]
    return jnp.concatenate([jnp.sin(args), jnp.cos(args)], axis=-1)


# -----------------------------------------------------------------------------
# Parameters (natural module layout) + one-time kernel-ready preparation
# -----------------------------------------------------------------------------
def init_params(key, cfg):
    keys = iter(jax.random.split(key, 64))

    def w(shape, std=0.02):
        return jax.random.normal(next(keys), shape, jnp.float32) * std

    def z(shape):
        return jnp.zeros(shape, jnp.float32)

    D = cfg["inner_channel"]
    p = cfg["patch_size"]
    N = (cfg["image_size"] // p) ** 2
    c_cond = cfg["lms_channel"] + cfg["pan_channel"]
    t_dim = cfg["noise_level_channel"]
    t_hid = t_dim * cfg["time_hidden_ratio"]
    mlp_hid = D * cfg["mlp_ratio"]
    L = cfg["num_dit_layers"]

    return {
        # prev_conv: Conv2d(in_channel, inner_channel, 1, 1) == per-pixel linear
        "prev_w": w((cfg["in_channel"], D)), "prev_b": z((D,)),
        # PatchEmbedding: Conv2d(D, D, p, p) + learned positional embedding
        "pe_w": w((D * p * p, D)), "pe_b": z((D,)), "pos": w((N, D)),
        # time MLP inside DiT
        "t_w1": w((t_dim, t_hid)), "t_b1": z((t_hid,)),
        "t_w2": w((t_hid, D)), "t_b2": z((D,)),
        # cond patch-embed used by DiT (additive condition injection)
        "cpe_w": w((c_cond * p * p, D)), "cpe_b": z((D,)),
        # stacked per-layer DiT block weights (layer axis first)
        "ada_w": w((L, D, 6 * D)), "ada_b": z((L, 6 * D)),
        "qkv_w": w((L, D, 3 * D)), "qkv_b": z((L, 3 * D)),
        "ao_w": w((L, D, D)), "ao_b": z((L, D)),
        "m1_w": w((L, D, mlp_hid)), "m1_b": z((L, mlp_hid)),
        "m2_w": w((L, mlp_hid, D)), "m2_b": z((L, D)),
        # FinalLayer: its own cond patch-embed + cross-attn + output linear
        "f_cpe_w": w((c_cond * p * p, D)), "f_cpe_b": z((D,)),
        "f_wq": w((D, D)), "f_bq": z((D,)),
        "f_wk": w((D, D)), "f_bk": z((D,)),
        "f_wv": w((D, D)), "f_bv": z((D,)),
        "f_wo": w((D, D)), "f_bo": z((D,)),
        "f_out_w": w((D, cfg["out_channel"] * p * p)),
        "f_out_b": z((cfg["out_channel"] * p * p,)),
    }


def prepare_params(params, cfg):
    """One-time prep: fold prev_conv into the patch-embed linear (exact), split
    qkv / adaLN weights onto a leading axis (so the kernel never lane-slices),
    and pre-cast all matmul weights to bf16."""
    D = cfg["inner_channel"]
    p = cfg["patch_size"]
    c_in = cfg["in_channel"]
    bf = _BF16

    # prev_conv (1x1 conv == per-pixel linear) composed with patch-embed linear
    pe_w_r = params["pe_w"].reshape(D, p, p, D)                  # (c, i, j, d)
    fold_w = jnp.einsum("ac,cijd->aijd", params["prev_w"], pe_w_r)
    fold_w = fold_w.reshape(c_in * p * p, D)
    fold_b = params["pe_b"] + jnp.einsum("cijd,c->d", pe_w_r, params["prev_b"])

    def split_last(wmat, bvec, n):
        # (L, Din, n*Dout) -> (L*n, Din, Dout);  (L, n*Dout) -> (L*n, 1, Dout)
        Lw, Din, nd = wmat.shape
        dout = nd // n
        ws = wmat.reshape(Lw, Din, n, dout).transpose(0, 2, 1, 3)
        ws = ws.reshape(Lw * n, Din, dout)
        bs = bvec.reshape(Lw * n, 1, dout)
        return ws, bs

    ada_w, ada_b = split_last(params["ada_w"], params["ada_b"], 6)
    qkv_w, qkv_b = split_last(params["qkv_w"], params["qkv_b"], 3)

    row = lambda v: v.reshape(1, -1)
    lrow = lambda v: v.reshape(v.shape[0], 1, -1)

    return dict(
        fold_w=fold_w.astype(bf), fold_b=row(fold_b), pos=params["pos"],
        cpe_w=params["cpe_w"].astype(bf), cpe_b=row(params["cpe_b"]),
        fcpe_w=params["f_cpe_w"].astype(bf), fcpe_b=row(params["f_cpe_b"]),
        t_w1=params["t_w1"].astype(bf), t_b1=row(params["t_b1"]),
        t_w2=params["t_w2"].astype(bf), t_b2=row(params["t_b2"]),
        ada_w=ada_w.astype(bf), ada_b=ada_b,
        qkv_w=qkv_w.astype(bf), qkv_b=qkv_b,
        ao_w=params["ao_w"].astype(bf), ao_b=lrow(params["ao_b"]),
        m1_w=params["m1_w"].astype(bf), m1_b=lrow(params["m1_b"]),
        m2_w=params["m2_w"].astype(bf), m2_b=lrow(params["m2_b"]),
        f_wq=params["f_wq"].astype(bf), f_bq=row(params["f_bq"]),
        f_wk=params["f_wk"].astype(bf), f_bk=row(params["f_bk"]),
        f_wv=params["f_wv"].astype(bf), f_bv=row(params["f_bv"]),
        f_wo=params["f_wo"].astype(bf), f_bo=row(params["f_bo"]),
        f_out_w=params["f_out_w"].astype(bf), f_out_b=row(params["f_out_b"]),
    )


# -----------------------------------------------------------------------------
# Forward pass
# -----------------------------------------------------------------------------
def pan_dit_forward(kp, x, time, cond, cfg):
    B = x.shape[0]
    H = W = cfg["image_size"]
    p = cfg["patch_size"]
    D = cfg["inner_channel"]
    L = cfg["num_dit_layers"]
    nh = cfg["num_heads"]
    N = (H // p) * (W // p)
    c_in = cfg["in_channel"]
    c_cond = cfg["lms_channel"] + cfg["pan_channel"]
    out_pp = cfg["out_channel"] * p * p
    t_dim = cfg["noise_level_channel"]
    t_hid = t_dim * cfg["time_hidden_ratio"]
    mlp_hid = D * cfg["mlp_ratio"]

    # ----- pure layout (XLA): patchify inputs + tiny sinusoidal embedding -----
    x_patch = patchify_nchw(x, p)                      # (B, N, c_in*p*p)
    c_patch = patchify_nchw(cond, p)                   # (B, N, c_cond*p*p)
    t_emb = time_encoding(time, t_dim).reshape(B, 1, t_dim)

    # ----- single fused pallas_call -----
    out_tok = pl.pallas_call(
        functools.partial(_pan_dit_kernel, num_heads=nh, num_layers=L),
        out_shape=jax.ShapeDtypeStruct((B, N, out_pp), jnp.float32),
        grid=(B,),
        in_specs=[
            _bspec((N, c_in * p * p)),                 # x_patch
            _bspec((N, c_cond * p * p)),               # c_patch
            _bspec((1, t_dim)),                        # t_emb
            _fspec((c_in * p * p, D)), _fspec((1, D)), _fspec((N, D)),
            _fspec((c_cond * p * p, D)), _fspec((1, D)),
            _fspec((c_cond * p * p, D)), _fspec((1, D)),
            _fspec((t_dim, t_hid)), _fspec((1, t_hid)),
            _fspec((t_hid, D)), _fspec((1, D)),
            _fspec((6 * L, D, D)), _fspec((6 * L, 1, D)),          # adaLN
            _fspec((3 * L, D, D)), _fspec((3 * L, 1, D)),          # q/k/v
            _fspec((L, D, D)), _fspec((L, 1, D)),                  # attn out-proj
            _fspec((L, D, mlp_hid)), _fspec((L, 1, mlp_hid)),      # MLP fc1
            _fspec((L, mlp_hid, D)), _fspec((L, 1, D)),            # MLP fc2
            _fspec((D, D)), _fspec((1, D)),                        # final q
            _fspec((D, D)), _fspec((1, D)),                        # final k
            _fspec((D, D)), _fspec((1, D)),                        # final v
            _fspec((D, D)), _fspec((1, D)),                        # final out-proj
            _fspec((D, out_pp)), _fspec((1, out_pp)),              # final linear
        ],
        out_specs=_bspec((N, out_pp)),
        compiler_params=pltpu.CompilerParams(dimension_semantics=("parallel",)),
    )(x_patch, c_patch, t_emb,
      kp["fold_w"], kp["fold_b"], kp["pos"],
      kp["cpe_w"], kp["cpe_b"], kp["fcpe_w"], kp["fcpe_b"],
      kp["t_w1"], kp["t_b1"], kp["t_w2"], kp["t_b2"],
      kp["ada_w"], kp["ada_b"], kp["qkv_w"], kp["qkv_b"],
      kp["ao_w"], kp["ao_b"], kp["m1_w"], kp["m1_b"], kp["m2_w"], kp["m2_b"],
      kp["f_wq"], kp["f_bq"], kp["f_wk"], kp["f_bk"], kp["f_wv"], kp["f_bv"],
      kp["f_wo"], kp["f_bo"], kp["f_out_w"], kp["f_out_b"])

    # ----- pure layout (XLA): unpatchify back to NCHW -----
    return unpatchify(out_tok, p, cfg["out_channel"], H, W)   # (B, C_out, H, W)


# -----------------------------------------------------------------------------
if __name__ == "__main__":
    cfg = CFG
    key = jax.random.PRNGKey(0)
    k_params, k_x, k_cond, k_t = jax.random.split(key, 4)

    B = 2
    H = W = cfg["image_size"]
    x = jax.random.normal(k_x, (B, cfg["in_channel"], H, W), jnp.float32)
    cond = jax.random.normal(
        k_cond, (B, cfg["lms_channel"] + cfg["pan_channel"], H, W), jnp.float32)
    time = jax.random.uniform(k_t, (B,), jnp.float32) * 1000.0

    params = init_params(k_params, cfg)
    kparams = prepare_params(params, cfg)   # fold + restructure + bf16 cast, once

    fwd = jax.jit(functools.partial(pan_dit_forward, cfg=cfg))
    out = jax.block_until_ready(fwd(kparams, x, time, cond))

    assert out.shape == (B, cfg["out_channel"], H, W), out.shape
    assert bool(jnp.all(jnp.isfinite(out)))
    print("KERNEL_OK")
</pallas_src>

<mosaic_0001>
module attributes {stable_mosaic.version = 11 : i64} {
  func.func @_pan_dit_kernel(%arg0: i32, %arg1: memref<1x16x64xf32, #tpu.memory_space<vmem>>, %arg2: memref<1x16x80xf32, #tpu.memory_space<vmem>>, %arg3: memref<1x1x32xf32, #tpu.memory_space<vmem>>, %arg4: memref<64x32xbf16, #tpu.memory_space<vmem>>, %arg5: memref<1x32xf32, #tpu.memory_space<vmem>>, %arg6: memref<16x32xf32, #tpu.memory_space<vmem>>, %arg7: memref<80x32xbf16, #tpu.memory_space<vmem>>, %arg8: memref<1x32xf32, #tpu.memory_space<vmem>>, %arg9: memref<80x32xbf16, #tpu.memory_space<vmem>>, %arg10: memref<1x32xf32, #tpu.memory_space<vmem>>, %arg11: memref<32x128xbf16, #tpu.memory_space<vmem>>, %arg12: memref<1x128xf32, #tpu.memory_space<vmem>>, %arg13: memref<128x32xbf16, #tpu.memory_space<vmem>>, %arg14: memref<1x32xf32, #tpu.memory_space<vmem>>, %arg15: memref<12x32x32xbf16, #tpu.memory_space<vmem>>, %arg16: memref<12x1x32xf32, #tpu.memory_space<vmem>>, %arg17: memref<6x32x32xbf16, #tpu.memory_space<vmem>>, %arg18: memref<6x1x32xf32, #tpu.memory_space<vmem>>, %arg19: memref<2x32x32xbf16, #tpu.memory_space<vmem>>, %arg20: memref<2x1x32xf32, #tpu.memory_space<vmem>>, %arg21: memref<2x32x128xbf16, #tpu.memory_space<vmem>>, %arg22: memref<2x1x128xf32, #tpu.memory_space<vmem>>, %arg23: memref<2x128x32xbf16, #tpu.memory_space<vmem>>, %arg24: memref<2x1x32xf32, #tpu.memory_space<vmem>>, %arg25: memref<32x32xbf16, #tpu.memory_space<vmem>>, %arg26: memref<1x32xf32, #tpu.memory_space<vmem>>, %arg27: memref<32x32xbf16, #tpu.memory_space<vmem>>, %arg28: memref<1x32xf32, #tpu.memory_space<vmem>>, %arg29: memref<32x32xbf16, #tpu.memory_space<vmem>>, %arg30: memref<1x32xf32, #tpu.memory_space<vmem>>, %arg31: memref<32x32xbf16, #tpu.memory_space<vmem>>, %arg32: memref<1x32xf32, #tpu.memory_space<vmem>>, %arg33: memref<32x64xbf16, #tpu.memory_space<vmem>>, %arg34: memref<1x64xf32, #tpu.memory_space<vmem>>, %arg35: memref<1x16x64xf32, #tpu.memory_space<vmem>>) attributes {dimension_semantics = [#tpu.dimension_semantics<parallel>], iteration_bounds = array<i64: 2>, scalar_prefetch = 0 : i64, scratch_operands = 0 : i64, tpu.core_type = #tpu.core_type<tc>, window_params = [{transform_indices = @transform_0, window_bounds = array<i64: 1, 16, 64>}, {transform_indices = @transform_1, window_bounds = array<i64: 1, 16, 80>}, {transform_indices = @transform_2, window_bounds = array<i64: 1, 1, 32>}, {pipeline_mode = #tpu.pipeline_mode<synchronous>, transform_indices = @transform_3, window_bounds = array<i64: 64, 32>}, {pipeline_mode = #tpu.pipeline_mode<synchronous>, transform_indices = @transform_4, window_bounds = array<i64: 1, 32>}, {pipeline_mode = #tpu.pipeline_mode<synchronous>, transform_indices = @transform_5, window_bounds = array<i64: 16, 32>}, {pipeline_mode = #tpu.pipeline_mode<synchronous>, transform_indices = @transform_6, window_bounds = array<i64: 80, 32>}, {pipeline_mode = #tpu.pipeline_mode<synchronous>, transform_indices = @transform_7, window_bounds = array<i64: 1, 32>}, {pipeline_mode = #tpu.pipeline_mode<synchronous>, transform_indices = @transform_8, window_bounds = array<i64: 80, 32>}, {pipeline_mode = #tpu.pipeline_mode<synchronous>, transform_indices = @transform_9, window_bounds = array<i64: 1, 32>}, {pipeline_mode = #tpu.pipeline_mode<synchronous>, transform_indices = @transform_10, window_bounds = array<i64: 32, 128>}, {pipeline_mode = #tpu.pipeline_mode<synchronous>, transform_indices = @transform_11, window_bounds = array<i64: 1, 128>}, {pipeline_mode = #tpu.pipeline_mode<synchronous>, transform_indices = @transform_12, window_bounds = array<i64: 128, 32>}, {pipeline_mode = #tpu.pipeline_mode<synchronous>, transform_indices = @transform_13, window_bounds = array<i64: 1, 32>}, {pipeline_mode = #tpu.pipeline_mode<synchronous>, transform_indices = @transform_14, window_bounds = array<i64: 12, 32, 32>}, {pipeline_mode = #tpu.pipeline_mode<synchronous>, transform_indices = @transform_15, window_bounds = array<i64: 12, 1, 32>}, {pipeline_mode = #tpu.pipeline_mode<synchronous>, transform_indices = @transform_16, window_bounds = array<i64: 6, 32, 32>}, {pipeline_mode = #tpu.pipeline_mode<synchronous>, transform_indices = @transform_17, window_bounds = array<i64: 6, 1, 32>}, {pipeline_mode = #tpu.pipeline_mode<synchronous>, transform_indices = @transform_18, window_bounds = array<i64: 2, 32, 32>}, {pipeline_mode = #tpu.pipeline_mode<synchronous>, transform_indices = @transform_19, window_bounds = array<i64: 2, 1, 32>}, {pipeline_mode = #tpu.pipeline_mode<synchronous>, transform_indices = @transform_20, window_bounds = array<i64: 2, 32, 128>}, {pipeline_mode = #tpu.pipeline_mode<synchronous>, transform_indices = @transform_21, window_bounds = array<i64: 2, 1, 128>}, {pipeline_mode = #tpu.pipeline_mode<synchronous>, transform_indices = @transform_22, window_bounds = array<i64: 2, 128, 32>}, {pipeline_mode = #tpu.pipeline_mode<synchronous>, transform_indices = @transform_23, window_bounds = array<i64: 2, 1, 32>}, {pipeline_mode = #tpu.pipeline_mode<synchronous>, transform_indices = @transform_24, window_bounds = array<i64: 32, 32>}, {pipeline_mode = #tpu.pipeline_mode<synchronous>, transform_indices = @transform_25, window_bounds = array<i64: 1, 32>}, {pipeline_mode = #tpu.pipeline_mode<synchronous>, transform_indices = @transform_26, window_bounds = array<i64: 32, 32>}, {pipeline_mode = #tpu.pipeline_mode<synchronous>, transform_indices = @transform_27, window_bounds = array<i64: 1, 32>}, {pipeline_mode = #tpu.pipeline_mode<synchronous>, transform_indices = @transform_28, window_bounds = array<i64: 32, 32>}, {pipeline_mode = #tpu.pipeline_mode<synchronous>, transform_indices = @transform_29, window_bounds = array<i64: 1, 32>}, {pipeline_mode = #tpu.pipeline_mode<synchronous>, transform_indices = @transform_30, window_bounds = array<i64: 32, 32>}, {pipeline_mode = #tpu.pipeline_mode<synchronous>, transform_indices = @transform_31, window_bounds = array<i64: 1, 32>}, {pipeline_mode = #tpu.pipeline_mode<synchronous>, transform_indices = @transform_32, window_bounds = array<i64: 32, 64>}, {pipeline_mode = #tpu.pipeline_mode<synchronous>, transform_indices = @transform_33, window_bounds = array<i64: 1, 64>}, {transform_indices = @transform_34, window_bounds = array<i64: 1, 16, 64>}]} {
    %c0 = arith.constant 0 : index
    %c0_0 = arith.constant 0 : index
    %c0_1 = arith.constant 0 : index
    %0 = vector.load %arg1[%c0, %c0_0, %c0_1] : memref<1x16x64xf32, #tpu.memory_space<vmem>>, vector<1x16x64xf32>
    %1 = vector.shape_cast %0 : vector<1x16x64xf32> to vector<16x64xf32>
    %c0_2 = arith.constant 0 : index
    %c0_3 = arith.constant 0 : index
    %c0_4 = arith.constant 0 : index
    %2 = vector.load %arg2[%c0_2, %c0_3, %c0_4] : memref<1x16x80xf32, #tpu.memory_space<vmem>>, vector<1x16x80xf32>
    %3 = vector.shape_cast %2 : vector<1x16x80xf32> to vector<16x80xf32>
    %c0_5 = arith.constant 0 : index
    %c0_6 = arith.constant 0 : index
    %4 = vector.load %arg4[%c0_5, %c0_6] : memref<64x32xbf16, #tpu.memory_space<vmem>>, vector<64x32xbf16>
    %5 = arith.truncf %1 : vector<16x64xf32> to vector<16x64xbf16>
    %cst = arith.constant dense<0.000000e+00> : vector<16x32xf32>
    %6 = tpu.matmul %5, %4, %cst {dimension_numbers = #tpu.dot_dimension_numbers<[1], [0], [0], [1], [0, 0, 1, 1], [], []>} : vector<16x64xbf16>, vector<64x32xbf16>, vector<16x32xf32> -> vector<16x32xf32>
    %c0_7 = arith.constant 0 : index
    %c0_8 = arith.constant 0 : index
    %7 = vector.load %arg5[%c0_7, %c0_8] : memref<1x32xf32, #tpu.memory_space<vmem>>, vector<1x32xf32>
    %8 = vector.broadcast %7 : vector<1x32xf32> to vector<16x32xf32>
    %9 = arith.addf %6, %8 : vector<16x32xf32>
    %c0_9 = arith.constant 0 : index
    %c0_10 = arith.constant 0 : index
    %10 = vector.load %arg6[%c0_9, %c0_10] : memref<16x32xf32, #tpu.memory_space<vmem>>, vector<16x32xf32>
    %11 = arith.addf %9, %10 : vector<16x32xf32>
    %c0_11 = arith.constant 0 : index
    %c0_12 = arith.constant 0 : index
    %12 = vector.load %arg7[%c0_11, %c0_12] : memref<80x32xbf16, #tpu.memory_space<vmem>>, vector<80x32xbf16>
    %13 = arith.truncf %3 : vector<16x80xf32> to vector<16x80xbf16>
    %cst_13 = arith.constant dense<0.000000e+00> : vector<16x32xf32>
    %14 = tpu.matmul %13, %12, %cst_13 {dimension_numbers = #tpu.dot_dimension_numbers<[1], [0], [0], [1], [0, 0, 1, 1], [], []>} : vector<16x80xbf16>, vector<80x32xbf16>, vector<16x32xf32> -> vector<16x32xf32>
    %15 = arith.addf %11, %14 : vector<16x32xf32>
    %c0_14 = arith.constant 0 : index
    %c0_15 = arith.constant 0 : index
    %16 = vector.load %arg8[%c0_14, %c0_15] : memref<1x32xf32, #tpu.memory_space<vmem>>, vector<1x32xf32>
    %17 = vector.broadcast %16 : vector<1x32xf32> to vector<16x32xf32>
    %18 = arith.addf %15, %17 : vector<16x32xf32>
    %c0_16 = arith.constant 0 : index
    %c0_17 = arith.constant 0 : index
    %19 = vector.load %arg9[%c0_16, %c0_17] : memref<80x32xbf16, #tpu.memory_space<vmem>>, vector<80x32xbf16>
    %20 = arith.truncf %3 : vector<16x80xf32> to vector<16x80xbf16>
    %cst_18 = arith.constant dense<0.000000e+00> : vector<16x32xf32>
    %21 = tpu.matmul %20, %19, %cst_18 {dimension_numbers = #tpu.dot_dimension_numbers<[1], [0], [0], [1], [0, 0, 1, 1], [], []>} : vector<16x80xbf16>, vector<80x32xbf16>, vector<16x32xf32> -> vector<16x32xf32>
    %c0_19 = arith.constant 0 : index
    %c0_20 = arith.constant 0 : index
    %22 = vector.load %arg10[%c0_19, %c0_20] : memref<1x32xf32, #tpu.memory_space<vmem>>, vector<1x32xf32>
    %23 = vector.broadcast %22 : vector<1x32xf32> to vector<16x32xf32>
    %24 = arith.addf %21, %23 : vector<16x32xf32>
    %c0_21 = arith.constant 0 : index
    %c0_22 = arith.constant 0 : index
    %c0_23 = arith.constant 0 : index
    %25 = vector.load %arg3[%c0_21, %c0_22, %c0_23] : memref<1x1x32xf32, #tpu.memory_space<vmem>>, vector<1x1x32xf32>
    %26 = vector.shape_cast %25 : vector<1x1x32xf32> to vector<1x32xf32>
    %c0_24 = arith.constant 0 : index
    %c0_25 = arith.constant 0 : index
    %27 = vector.load %arg11[%c0_24, %c0_25] : memref<32x128xbf16, #tpu.memory_space<vmem>>, vector<32x128xbf16>
    %28 = arith.truncf %26 : vector<1x32xf32> to vector<1x32xbf16>
    %cst_26 = arith.constant dense<0.000000e+00> : vector<1x128xf32>
    %29 = tpu.matmul %28, %27, %cst_26 {dimension_numbers = #tpu.dot_dimension_numbers<[1], [0], [0], [1], [0, 0, 1, 1], [], []>} : vector<1x32xbf16>, vector<32x128xbf16>, vector<1x128xf32> -> vector<1x128xf32>
    %c0_27 = arith.constant 0 : index
    %c0_28 = arith.constant 0 : index
    %30 = vector.load %arg12[%c0_27, %c0_28] : memref<1x128xf32, #tpu.memory_space<vmem>>, vector<1x128xf32>
    %31 = arith.addf %29, %30 : vector<1x128xf32>
    %32 = arith.negf %31 : vector<1x128xf32>
    %33 = math.exp %32 : vector<1x128xf32>
    %cst_29 = arith.constant 1.000000e+00 : f32
    %34 = vector.broadcast %cst_29 : f32 to vector<1x128xf32>
    %35 = arith.addf %34, %33 : vector<1x128xf32>
    %36 = arith.divf %34, %35 : vector<1x128xf32>
    %37 = arith.mulf %31, %36 : vector<1x128xf32>
    %c0_30 = arith.constant 0 : index
    %c0_31 = arith.constant 0 : index
    %38 = vector.load %arg13[%c0_30, %c0_31] : memref<128x32xbf16, #tpu.memory_space<vmem>>, vector<128x32xbf16>
    %39 = arith.truncf %37 : vector<1x128xf32> to vector<1x128xbf16>
    %cst_32 = arith.constant dense<0.000000e+00> : vector<1x32xf32>
    %40 = tpu.matmul %39, %38, %cst_32 {dimension_numbers = #tpu.dot_dimension_numbers<[1], [0], [0], [1], [0, 0, 1, 1], [], []>} : vector<1x128xbf16>, vector<128x32xbf16>, vector<1x32xf32> -> vector<1x32xf32>
    %c0_33 = arith.constant 0 : index
    %c0_34 = arith.constant 0 : index
    %41 = vector.load %arg14[%c0_33, %c0_34] : memref<1x32xf32, #tpu.memory_space<vmem>>, vector<1x32xf32>
    %42 = arith.addf %40, %41 : vector<1x32xf32>
    %43 = arith.negf %42 : vector<1x32xf32>
    %44 = math.exp %43 : vector<1x32xf32>
    %cst_35 = arith.constant 1.000000e+00 : f32
    %45 = vector.broadcast %cst_35 : f32 to vector<1x32xf32>
    %46 = arith.addf %45, %44 : vector<1x32xf32>
    %47 = arith.divf %45, %46 : vector<1x32xf32>
    %48 = arith.mulf %42, %47 : vector<1x32xf32>
    %c0_36 = arith.constant 0 : index
    %c0_37 = arith.constant 0 : index
    %c0_38 = arith.constant 0 : index
    %49 = vector.load %arg15[%c0_36, %c0_37, %c0_38] : memref<12x32x32xbf16, #tpu.memory_space<vmem>>, vector<1x32x32xbf16>
    %50 = vector.shape_cast %49 : vector<1x32x32xbf16> to vector<32x32xbf16>
    %51 = arith.truncf %48 : vector<1x32xf32> to vector<1x32xbf16>
    %cst_39 = arith.constant dense<0.000000e+00> : vector<1x32xf32>
    %52 = tpu.matmul %51, %50, %cst_39 {dimension_numbers = #tpu.dot_dimension_numbers<[1], [0], [0], [1], [0, 0, 1, 1], [], []>} : vector<1x32xbf16>, vector<32x32xbf16>, vector<1x32xf32> -> vector<1x32xf32>
    %c0_40 = arith.constant 0 : index
    %c0_41 = arith.constant 0 : index
    %c0_42 = arith.constant 0 : index
    %53 = vector.load %arg16[%c0_40, %c0_41, %c0_42] : memref<12x1x32xf32, #tpu.memory_space<vmem>>, vector<1x1x32xf32>
    %54 = vector.shape_cast %53 : vector<1x1x32xf32> to vector<1x32xf32>
    %55 = arith.addf %52, %54 : vector<1x32xf32>
    %c1 = arith.constant 1 : index
    %c0_43 = arith.constant 0 : index
    %c0_44 = arith.constant 0 : index
    %56 = vector.load %arg15[%c1, %c0_43, %c0_44] : memref<12x32x32xbf16, #tpu.memory_space<vmem>>, vector<1x32x32xbf16>
    %57 = vector.shape_cast %56 : vector<1x32x32xbf16> to vector<32x32xbf16>
    %58 = arith.truncf %48 : vector<1x32xf32> to vector<1x32xbf16>
    %cst_45 = arith.constant dense<0.000000e+00> : vector<1x32xf32>
    %59 = tpu.matmul %58, %57, %cst_45 {dimension_numbers = #tpu.dot_dimension_numbers<[1], [0], [0], [1], [0, 0, 1, 1], [], []>} : vector<1x32xbf16>, vector<32x32xbf16>, vector<1x32xf32> -> vector<1x32xf32>
    %c1_46 = arith.constant 1 : index
    %c0_47 = arith.constant 0 : index
    %c0_48 = arith.constant 0 : index
    %60 = vector.load %arg16[%c1_46, %c0_47, %c0_48] : memref<12x1x32xf32, #tpu.memory_space<vmem>>, vector<1x1x32xf32>
    %61 = vector.shape_cast %60 : vector<1x1x32xf32> to vector<1x32xf32>
    %62 = arith.addf %59, %61 : vector<1x32xf32>
    %c2 = arith.constant 2 : index
    %c0_49 = arith.constant 0 : index
    %c0_50 = arith.constant 0 : index
    %63 = vector.load %arg15[%c2, %c0_49, %c0_50] : memref<12x32x32xbf16, #tpu.memory_space<vmem>>, vector<1x32x32xbf16>
    %64 = vector.shape_cast %63 : vector<1x32x32xbf16> to vector<32x32xbf16>
    %65 = arith.truncf %48 : vector<1x32xf32> to vector<1x32xbf16>
    %cst_51 = arith.constant dense<0.000000e+00> : vector<1x32xf32>
    %66 = tpu.matmul %65, %64, %cst_51 {dimension_numbers = #tpu.dot_dimension_numbers<[1], [0], [0], [1], [0, 0, 1, 1], [], []>} : vector<1x32xbf16>, vector<32x32xbf16>, vector<1x32xf32> -> vector<1x32xf32>
    %c2_52 = arith.constant 2 : index
    %c0_53 = arith.constant 0 : index
    %c0_54 = arith.constant 0 : index
    %67 = vector.load %arg16[%c2_52, %c0_53, %c0_54] : memref<12x1x32xf32, #tpu.memory_space<vmem>>, vector<1x1x32xf32>
    %68 = vector.shape_cast %67 : vector<1x1x32xf32> to vector<1x32xf32>
    %69 = arith.addf %66, %68 : vector<1x32xf32>
    %c3 = arith.constant 3 : index
    %c0_55 = arith.constant 0 : index
    %c0_56 = arith.constant 0 : index
    %70 = vector.load %arg15[%c3, %c0_55, %c0_56] : memref<12x32x32xbf16, #tpu.memory_space<vmem>>, vector<1x32x32xbf16>
    %71 = vector.shape_cast %70 : vector<1x32x32xbf16> to vector<32x32xbf16>
    %72 = arith.truncf %48 : vector<1x32xf32> to vector<1x32xbf16>
    %cst_57 = arith.constant dense<0.000000e+00> : vector<1x32xf32>
    %73 = tpu.matmul %72, %71, %cst_57 {dimension_numbers = #tpu.dot_dimension_numbers<[1], [0], [0], [1], [0, 0, 1, 1], [], []>} : vector<1x32xbf16>, vector<32x32xbf16>, vector<1x32xf32> -> vector<1x32xf32>
    %c3_58 = arith.constant 3 : index
    %c0_59 = arith.constant 0 : index
    %c0_60 = arith.constant 0 : index
    %74 = vector.load %arg16[%c3_58, %c0_59, %c0_60] : memref<12x1x32xf32, #tpu.memory_space<vmem>>, vector<1x1x32xf32>
    %75 = vector.shape_cast %74 : vector<1x1x32xf32> to vector<1x32xf32>
    %76 = arith.addf %73, %75 : vector<1x32xf32>
    %c4 = arith.constant 4 : index
    %c0_61 = arith.constant 0 : index
    %c0_62 = arith.constant 0 : index
    %77 = vector.load %arg15[%c4, %c0_61, %c0_62] : memref<12x32x32xbf16, #tpu.memory_space<vmem>>, vector<1x32x32xbf16>
    %78 = vector.shape_cast %77 : vector<1x32x32xbf16> to vector<32x32xbf16>
    %79 = arith.truncf %48 : vector<1x32xf32> to vector<1x32xbf16>
    %cst_63 = arith.constant dense<0.000000e+00> : vector<1x32xf32>
    %80 = tpu.matmul %79, %78, %cst_63 {dimension_numbers = #tpu.dot_dimension_numbers<[1], [0], [0], [1], [0, 0, 1, 1], [], []>} : vector<1x32xbf16>, vector<32x32xbf16>, vector<1x32xf32> -> vector<1x32xf32>
    %c4_64 = arith.constant 4 : index
    %c0_65 = arith.constant 0 : index
    %c0_66 = arith.constant 0 : index
    %81 = vector.load %arg16[%c4_64, %c0_65, %c0_66] : memref<12x1x32xf32, #tpu.memory_space<vmem>>, vector<1x1x32xf32>
    %82 = vector.shape_cast %81 : vector<1x1x32xf32> to vector<1x32xf32>
    %83 = arith.addf %80, %82 : vector<1x32xf32>
    %c5 = arith.constant 5 : index
    %c0_67 = arith.constant 0 : index
    %c0_68 = arith.constant 0 : index
    %84 = vector.load %arg15[%c5, %c0_67, %c0_68] : memref<12x32x32xbf16, #tpu.memory_space<vmem>>, vector<1x32x32xbf16>
    %85 = vector.shape_cast %84 : vector<1x32x32xbf16> to vector<32x32xbf16>
    %86 = arith.truncf %48 : vector<1x32xf32> to vector<1x32xbf16>
    %cst_69 = arith.constant dense<0.000000e+00> : vector<1x32xf32>
    %87 = tpu.matmul %86, %85, %cst_69 {dimension_numbers = #tpu.dot_dimension_numbers<[1], [0], [0], [1], [0, 0, 1, 1], [], []>} : vector<1x32xbf16>, vector<32x32xbf16>, vector<1x32xf32> -> vector<1x32xf32>
    %c5_70 = arith.constant 5 : index
    %c0_71 = arith.constant 0 : index
    %c0_72 = arith.constant 0 : index
    %88 = vector.load %arg16[%c5_70, %c0_71, %c0_72] : memref<12x1x32xf32, #tpu.memory_space<vmem>>, vector<1x1x32xf32>
    %89 = vector.shape_cast %88 : vector<1x1x32xf32> to vector<1x32xf32>
    %90 = arith.addf %87, %89 : vector<1x32xf32>
    %cst_73 = arith.constant dense<0.000000e+00> : vector<16xf32>
    %91 = vector.multi_reduction <add>, %18, %cst_73 [1] : vector<16x32xf32> to vector<16xf32>
    %92 = vector.shape_cast %91 : vector<16xf32> to vector<16x1xf32>
    %cst_74 = arith.constant 3.200000e+01 : f32
    %93 = vector.broadcast %cst_74 : f32 to vector<16x1xf32>
    %94 = arith.divf %92, %93 : vector<16x1xf32>
    %95 = vector.broadcast %94 : vector<16x1xf32> to vector<16x32xf32>
    %96 = arith.subf %18, %95 : vector<16x32xf32>
    %97 = arith.mulf %96, %96 : vector<16x32xf32>
    %cst_75 = arith.constant dense<0.000000e+00> : vector<16xf32>
    %98 = vector.multi_reduction <add>, %97, %cst_75 [1] : vector<16x32xf32> to vector<16xf32>
    %99 = vector.shape_cast %98 : vector<16xf32> to vector<16x1xf32>
    %cst_76 = arith.constant 3.200000e+01 : f32
    %100 = vector.broadcast %cst_76 : f32 to vector<16x1xf32>
    %101 = arith.divf %99, %100 : vector<16x1xf32>
    %cst_77 = arith.constant 9.99999997E-7 : f32
    %102 = vector.broadcast %cst_77 : f32 to vector<16x1xf32>
    %103 = arith.addf %101, %102 : vector<16x1xf32>
    %104 = math.rsqrt %103 : vector<16x1xf32>
    %105 = vector.broadcast %104 : vector<16x1xf32> to vector<16x32xf32>
    %106 = arith.mulf %96, %105 : vector<16x32xf32>
    %cst_78 = arith.constant 1.000000e+00 : f32
    %107 = vector.broadcast %cst_78 : f32 to vector<1x32xf32>
    %108 = arith.addf %107, %62 : vector<1x32xf32>
    %109 = vector.broadcast %108 : vector<1x32xf32> to vector<16x32xf32>
    %110 = arith.mulf %106, %109 : vector<16x32xf32>
    %111 = vector.broadcast %55 : vector<1x32xf32> to vector<16x32xf32>
    %112 = arith.addf %110, %111 : vector<16x32xf32>
    %c0_79 = arith.constant 0 : index
    %c0_80 = arith.constant 0 : index
    %c0_81 = arith.constant 0 : index
    %113 = vector.load %arg17[%c0_79, %c0_80, %c0_81] : memref<6x32x32xbf16, #tpu.memory_space<vmem>>, vector<1x32x32xbf16>
    %114 = vector.shape_cast %113 : vector<1x32x32xbf16> to vector<32x32xbf16>
    %115 = arith.truncf %112 : vector<16x32xf32> to vector<16x32xbf16>
    %cst_82 = arith.constant dense<0.000000e+00> : vector<16x32xf32>
    %116 = tpu.matmul %115, %114, %cst_82 {dimension_numbers = #tpu.dot_dimension_numbers<[1], [0], [0], [1], [0, 0, 1, 1], [], []>} : vector<16x32xbf16>, vector<32x32xbf16>, vector<16x32xf32> -> vector<16x32xf32>
    %c0_83 = arith.constant 0 : index
    %c0_84 = arith.constant 0 : index
    %c0_85 = arith.constant 0 : index
    %117 = vector.load %arg18[%c0_83, %c0_84, %c0_85] : memref<6x1x32xf32, #tpu.memory_space<vmem>>, vector<1x1x32xf32>
    %118 = vector.shape_cast %117 : vector<1x1x32xf32> to vector<1x32xf32>
    %119 = vector.broadcast %118 : vector<1x32xf32> to vector<16x32xf32>
    %120 = arith.addf %116, %119 : vector<16x32xf32>
    %c1_86 = arith.constant 1 : index
    %c0_87 = arith.constant 0 : index
    %c0_88 = arith.constant 0 : index
    %121 = vector.load %arg17[%c1_86, %c0_87, %c0_88] : memref<6x32x32xbf16, #tpu.memory_space<vmem>>, vector<1x32x32xbf16>
    %122 = vector.shape_cast %121 : vector<1x32x32xbf16> to vector<32x32xbf16>
    %123 = arith.truncf %112 : vector<16x32xf32> to vector<16x32xbf16>
    %cst_89 = arith.constant dense<0.000000e+00> : vector<16x32xf32>
    %124 = tpu.matmul %123, %122, %cst_89 {dimension_numbers = #tpu.dot_dimension_numbers<[1], [0], [0], [1], [0, 0, 1, 1], [], []>} : vector<16x32xbf16>, vector<32x32xbf16>, vector<16x32xf32> -> vector<16x32xf32>
    %c1_90 = arith.constant 1 : index
    %c0_91 = arith.constant 0 : index
    %c0_92 = arith.constant 0 : index
    %125 = vector.load %arg18[%c1_90, %c0_91, %c0_92] : memref<6x1x32xf32, #tpu.memory_space<vmem>>, vector<1x1x32xf32>
    %126 = vector.shape_cast %125 : vector<1x1x32xf32> to vector<1x32xf32>
    %127 = vector.broadcast %126 : vector<1x32xf32> to vector<16x32xf32>
    %128 = arith.addf %124, %127 : vector<16x32xf32>
    %c2_93 = arith.constant 2 : index
    %c0_94 = arith.constant 0 : index
    %c0_95 = arith.constant 0 : index
    %129 = vector.load %arg17[%c2_93, %c0_94, %c0_95] : memref<6x32x32xbf16, #tpu.memory_space<vmem>>, vector<1x32x32xbf16>
    %130 = vector.shape_cast %129 : vector<1x32x32xbf16> to vector<32x32xbf16>
    %131 = arith.truncf %112 : vector<16x32xf32> to vector<16x32xbf16>
    %cst_96 = arith.constant dense<0.000000e+00> : vector<16x32xf32>
    %132 = tpu.matmul %131, %130, %cst_96 {dimension_numbers = #tpu.dot_dimension_numbers<[1], [0], [0], [1], [0, 0, 1, 1], [], []>} : vector<16x32xbf16>, vector<32x32xbf16>, vector<16x32xf32> -> vector<16x32xf32>
    %c2_97 = arith.constant 2 : index
    %c0_98 = arith.constant 0 : index
    %c0_99 = arith.constant 0 : index
    %133 = vector.load %arg18[%c2_97, %c0_98, %c0_99] : memref<6x1x32xf32, #tpu.memory_space<vmem>>, vector<1x1x32xf32>
    %134 = vector.shape_cast %133 : vector<1x1x32xf32> to vector<1x32xf32>
    %135 = vector.broadcast %134 : vector<1x32xf32> to vector<16x32xf32>
    %136 = arith.addf %132, %135 : vector<16x32xf32>
    %c0_100 = arith.constant 0 : index
    %c0_101 = arith.constant 0 : index
    %c0_102 = arith.constant 0 : index
    %137 = vector.load %arg19[%c0_100, %c0_101, %c0_102] : memref<2x32x32xbf16, #tpu.memory_space<vmem>>, vector<1x32x32xbf16>
    %138 = vector.shape_cast %137 : vector<1x32x32xbf16> to vector<32x32xbf16>
    %cst_103 = arith.constant 0.000000e+00 : f32
    %139 = vector.broadcast %cst_103 : f32 to vector<16x32xf32>
    %140 = vector.extract_strided_slice %120 {offsets = [0, 0], sizes = [16, 8], strides = [1, 1]} : vector<16x32xf32> to vector<16x8xf32>
    %cst_104 = arith.constant 0.353553385 : f32
    %141 = vector.broadcast %cst_104 : f32 to vector<16x8xf32>
    %142 = arith.mulf %140, %141 : vector<16x8xf32>
    %143 = vector.extract_strided_slice %128 {offsets = [0, 0], sizes = [16, 8], strides = [1, 1]} : vector<16x32xf32> to vector<16x8xf32>
    %144 = vector.extract_strided_slice %136 {offsets = [0, 0], sizes = [16, 8], strides = [1, 1]} : vector<16x32xf32> to vector<16x8xf32>
    %cst_105 = arith.constant dense<0.000000e+00> : vector<16x16xf32>
    %145 = tpu.matmul %142, %143, %cst_105 {dimension_numbers = #tpu.dot_dimension_numbers<[1], [1], [0], [0], [0, 0, 1, 0], [], []>} : vector<16x8xf32>, vector<16x8xf32>, vector<16x16xf32> -> vector<16x16xf32>
    %cst_106 = arith.constant dense<0xFF800000> : vector<16xf32>
    %146 = vector.multi_reduction <maximumf>, %145, %cst_106 [1] : vector<16x16xf32> to vector<16xf32>
    %147 = vector.shape_cast %146 : vector<16xf32> to vector<16x1xf32>
    %148 = vector.broadcast %147 : vector<16x1xf32> to vector<16x16xf32>
    %149 = arith.subf %145, %148 : vector<16x16xf32>
    %150 = math.exp %149 : vector<16x16xf32>
    %cst_107 = arith.constant dense<0.000000e+00> : vector<16x8xf32>
    %151 = tpu.matmul %150, %144, %cst_107 {dimension_numbers = #tpu.dot_dimension_numbers<[1], [0], [0], [1], [0, 0, 1, 1], [], []>} : vector<16x16xf32>, vector<16x8xf32>, vector<16x8xf32> -> vector<16x8xf32>
    %cst_108 = arith.constant dense<0.000000e+00> : vector<16xf32>
    %152 = vector.multi_reduction <add>, %150, %cst_108 [1] : vector<16x16xf32> to vector<16xf32>
    %153 = vector.shape_cast %152 : vector<16xf32> to vector<16x1xf32>
    %154 = tpu.reciprocal %153 {approx = true} : vector<16x1xf32> -> vector<16x1xf32>
    %155 = vector.broadcast %154 : vector<16x1xf32> to vector<16x8xf32>
    %156 = arith.mulf %151, %155 : vector<16x8xf32>
    %157 = vector.extract_strided_slice %138 {offsets = [0, 0], sizes = [8, 32], strides = [1, 1]} : vector<32x32xbf16> to vector<8x32xbf16>
    %158 = arith.truncf %156 : vector<16x8xf32> to vector<16x8xbf16>
    %cst_109 = arith.constant dense<0.000000e+00> : vector<16x32xf32>
    %159 = tpu.matmul %158, %157, %cst_109 {dimension_numbers = #tpu.dot_dimension_numbers<[1], [0], [0], [1], [0, 0, 1, 1], [], []>} : vector<16x8xbf16>, vector<8x32xbf16>, vector<16x32xf32> -> vector<16x32xf32>
    %160 = arith.addf %139, %159 : vector<16x32xf32>
    %161 = vector.extract_strided_slice %120 {offsets = [0, 8], sizes = [16, 8], strides = [1, 1]} : vector<16x32xf32> to vector<16x8xf32>
    %cst_110 = arith.constant 0.353553385 : f32
    %162 = vector.broadcast %cst_110 : f32 to vector<16x8xf32>
    %163 = arith.mulf %161, %162 : vector<16x8xf32>
    %164 = vector.extract_strided_slice %128 {offsets = [0, 8], sizes = [16, 8], strides = [1, 1]} : vector<16x32xf32> to vector<16x8xf32>
    %165 = vector.extract_strided_slice %136 {offsets = [0, 8], sizes = [16, 8], strides = [1, 1]} : vector<16x32xf32> to vector<16x8xf32>
    %cst_111 = arith.constant dense<0.000000e+00> : vector<16x16xf32>
    %166 = tpu.matmul %163, %164, %cst_111 {dimension_numbers = #tpu.dot_dimension_numbers<[1], [1], [0], [0], [0, 0, 1, 0], [], []>} : vector<16x8xf32>, vector<16x8xf32>, vector<16x16xf32> -> vector<16x16xf32>
    %cst_112 = arith.constant dense<0xFF800000> : vector<16xf32>
    %167 = vector.multi_reduction <maximumf>, %166, %cst_112 [1] : vector<16x16xf32> to vector<16xf32>
    %168 = vector.shape_cast %167 : vector<16xf32> to vector<16x1xf32>
    %169 = vector.broadcast %168 : vector<16x1xf32> to vector<16x16xf32>
    %170 = arith.subf %166, %169 : vector<16x16xf32>
    %171 = math.exp %170 : vector<16x16xf32>
    %cst_113 = arith.constant dense<0.000000e+00> : vector<16x8xf32>
    %172 = tpu.matmul %171, %165, %cst_113 {dimension_numbers = #tpu.dot_dimension_numbers<[1], [0], [0], [1], [0, 0, 1, 1], [], []>} : vector<16x16xf32>, vector<16x8xf32>, vector<16x8xf32> -> vector<16x8xf32>
    %cst_114 = arith.constant dense<0.000000e+00> : vector<16xf32>
    %173 = vector.multi_reduction <add>, %171, %cst_114 [1] : vector<16x16xf32> to vector<16xf32>
    %174 = vector.shape_cast %173 : vector<16xf32> to vector<16x1xf32>
    %175 = tpu.reciprocal %174 {approx = true} : vector<16x1xf32> -> vector<16x1xf32>
    %176 = vector.broadcast %175 : vector<16x1xf32> to vector<16x8xf32>
    %177 = arith.mulf %172, %176 : vector<16x8xf32>
    %178 = vector.extract_strided_slice %138 {offsets = [8, 0], sizes = [8, 32], strides = [1, 1]} : vector<32x32xbf16> to vector<8x32xbf16>
    %179 = arith.truncf %177 : vector<16x8xf32> to vector<16x8xbf16>
    %cst_115 = arith.constant dense<0.000000e+00> : vector<16x32xf32>
    %180 = tpu.matmul %179, %178, %cst_115 {dimension_numbers = #tpu.dot_dimension_numbers<[1], [0], [0], [1], [0, 0, 1, 1], [], []>} : vector<16x8xbf16>, vector<8x32xbf16>, vector<16x32xf32> -> vector<16x32xf32>
    %181 = arith.addf %160, %180 : vector<16x32xf32>
    %182 = vector.extract_strided_slice %120 {offsets = [0, 16], sizes = [16, 8], strides = [1, 1]} : vector<16x32xf32> to vector<16x8xf32>
    %cst_116 = arith.constant 0.353553385 : f32
    %183 = vector.broadcast %cst_116 : f32 to vector<16x8xf32>
    %184 = arith.mulf %182, %183 : vector<16x8xf32>
    %185 = vector.extract_strided_slice %128 {offsets = [0, 16], sizes = [16, 8], strides = [1, 1]} : vector<16x32xf32> to vector<16x8xf32>
    %186 = vector.extract_strided_slice %136 {offsets = [0, 16], sizes = [16, 8], strides = [1, 1]} : vector<16x32xf32> to vector<16x8xf32>
    %cst_117 = arith.constant dense<0.000000e+00> : vector<16x16xf32>
    %187 = tpu.matmul %184, %185, %cst_117 {dimension_numbers = #tpu.dot_dimension_numbers<[1], [1], [0], [0], [0, 0, 1, 0], [], []>} : vector<16x8xf32>, vector<16x8xf32>, vector<16x16xf32> -> vector<16x16xf32>
    %cst_118 = arith.constant dense<0xFF800000> : vector<16xf32>
    %188 = vector.multi_reduction <maximumf>, %187, %cst_118 [1] : vector<16x16xf32> to vector<16xf32>
    %189 = vector.shape_cast %188 : vector<16xf32> to vector<16x1xf32>
    %190 = vector.broadcast %189 : vector<16x1xf32> to vector<16x16xf32>
    %191 = arith.subf %187, %190 : vector<16x16xf32>
    %192 = math.exp %191 : vector<16x16xf32>
    %cst_119 = arith.constant dense<0.000000e+00> : vector<16x8xf32>
    %193 = tpu.matmul %192, %186, %cst_119 {dimension_numbers = #tpu.dot_dimension_numbers<[1], [0], [0], [1], [0, 0, 1, 1], [], []>} : vector<16x16xf32>, vector<16x8xf32>, vector<16x8xf32> -> vector<16x8xf32>
    %cst_120 = arith.constant dense<0.000000e+00> : vector<16xf32>
    %194 = vector.multi_reduction <add>, %192, %cst_120 [1] : vector<16x16xf32> to vector<16xf32>
    %195 = vector.shape_cast %194 : vector<16xf32> to vector<16x1xf32>
    %196 = tpu.reciprocal %195 {approx = true} : vector<16x1xf32> -> vector<16x1xf32>
    %197 = vector.broadcast %196 : vector<16x1xf32> to vector<16x8xf32>
    %198 = arith.mulf %193, %197 : vector<16x8xf32>
    %199 = vector.extract_strided_slice %138 {offsets = [16, 0], sizes = [8, 32], strides = [1, 1]} : vector<32x32xbf16> to vector<8x32xbf16>
    %200 = arith.truncf %198 : vector<16x8xf32> to vector<16x8xbf16>
    %cst_121 = arith.constant dense<0.000000e+00> : vector<16x32xf32>
    %201 = tpu.matmul %200, %199, %cst_121 {dimension_numbers = #tpu.dot_dimension_numbers<[1], [0], [0], [1], [0, 0, 1, 1], [], []>} : vector<16x8xbf16>, vector<8x32xbf16>, vector<16x32xf32> -> vector<16x32xf32>
    %202 = arith.addf %181, %201 : vector<16x32xf32>
    %203 = vector.extract_strided_slice %120 {offsets = [0, 24], sizes = [16, 8], strides = [1, 1]} : vector<16x32xf32> to vector<16x8xf32>
    %cst_122 = arith.constant 0.353553385 : f32
    %204 = vector.broadcast %cst_122 : f32 to vector<16x8xf32>
    %205 = arith.mulf %203, %204 : vector<16x8xf32>
    %206 = vector.extract_strided_slice %128 {offsets = [0, 24], sizes = [16, 8], strides = [1, 1]} : vector<16x32xf32> to vector<16x8xf32>
    %207 = vector.extract_strided_slice %136 {offsets = [0, 24], sizes = [16, 8], strides = [1, 1]} : vector<16x32xf32> to vector<16x8xf32>
    %cst_123 = arith.constant dense<0.000000e+00> : vector<16x16xf32>
    %208 = tpu.matmul %205, %206, %cst_123 {dimension_numbers = #tpu.dot_dimension_numbers<[1], [1], [0], [0], [0, 0, 1, 0], [], []>} : vector<16x8xf32>, vector<16x8xf32>, vector<16x16xf32> -> vector<16x16xf32>
    %cst_124 = arith.constant dense<0xFF800000> : vector<16xf32>
    %209 = vector.multi_reduction <maximumf>, %208, %cst_124 [1] : vector<16x16xf32> to vector<16xf32>
    %210 = vector.shape_cast %209 : vector<16xf32> to vector<16x1xf32>
    %211 = vector.broadcast %210 : vector<16x1xf32> to vector<16x16xf32>
    %212 = arith.subf %208, %211 : vector<16x16xf32>
    %213 = math.exp %212 : vector<16x16xf32>
    %cst_125 = arith.constant dense<0.000000e+00> : vector<16x8xf32>
    %214 = tpu.matmul %213, %207, %cst_125 {dimension_numbers = #tpu.dot_dimension_numbers<[1], [0], [0], [1], [0, 0, 1, 1], [], []>} : vector<16x16xf32>, vector<16x8xf32>, vector<16x8xf32> -> vector<16x8xf32>
    %cst_126 = arith.constant dense<0.000000e+00> : vector<16xf32>
    %215 = vector.multi_reduction <add>, %213, %cst_126 [1] : vector<16x16xf32> to vector<16xf32>
    %216 = vector.shape_cast %215 : vector<16xf32> to vector<16x1xf32>
    %217 = tpu.reciprocal %216 {approx = true} : vector<16x1xf32> -> vector<16x1xf32>
    %218 = vector.broadcast %217 : vector<16x1xf32> to vector<16x8xf32>
    %219 = arith.mulf %214, %218 : vector<16x8xf32>
    %220 = vector.extract_strided_slice %138 {offsets = [24, 0], sizes = [8, 32], strides = [1, 1]} : vector<32x32xbf16> to vector<8x32xbf16>
    %221 = arith.truncf %219 : vector<16x8xf32> to vector<16x8xbf16>
    %cst_127 = arith.constant dense<0.000000e+00> : vector<16x32xf32>
    %222 = tpu.matmul %221, %220, %cst_127 {dimension_numbers = #tpu.dot_dimension_numbers<[1], [0], [0], [1], [0, 0, 1, 1], [], []>} : vector<16x8xbf16>, vector<8x32xbf16>, vector<16x32xf32> -> vector<16x32xf32>
    %223 = arith.addf %202, %222 : vector<16x32xf32>
    %c0_128 = arith.constant 0 : index
    %c0_129 = arith.constant 0 : index
    %c0_130 = arith.constant 0 : index
    %224 = vector.load %arg20[%c0_128, %c0_129, %c0_130] : memref<2x1x32xf32, #tpu.memory_space<vmem>>, vector<1x1x32xf32>
    %225 = vector.shape_cast %224 : vector<1x1x32xf32> to vector<1x32xf32>
    %226 = vector.broadcast %225 : vector<1x32xf32> to vector<16x32xf32>
    %227 = arith.addf %223, %226 : vector<16x32xf32>
    %228 = vector.broadcast %69 : vector<1x32xf32> to vector<16x32xf32>
    %229 = arith.mulf %228, %227 : vector<16x32xf32>
    %230 = arith.addf %18, %229 : vector<16x32xf32>
    %cst_131 = arith.constant dense<0.000000e+00> : vector<16xf32>
    %231 = vector.multi_reduction <add>, %230, %cst_131 [1] : vector<16x32xf32> to vector<16xf32>
    %232 = vector.shape_cast %231 : vector<16xf32> to vector<16x1xf32>
    %cst_132 = arith.constant 3.200000e+01 : f32
    %233 = vector.broadcast %cst_132 : f32 to vector<16x1xf32>
    %234 = arith.divf %232, %233 : vector<16x1xf32>
    %235 = vector.broadcast %234 : vector<16x1xf32> to vector<16x32xf32>
    %236 = arith.subf %230, %235 : vector<16x32xf32>
    %237 = arith.mulf %236, %236 : vector<16x32xf32>
    %cst_133 = arith.constant dense<0.000000e+00> : vector<16xf32>
    %238 = vector.multi_reduction <add>, %237, %cst_133 [1] : vector<16x32xf32> to vector<16xf32>
    %239 = vector.shape_cast %238 : vector<16xf32> to vector<16x1xf32>
    %cst_134 = arith.constant 3.200000e+01 : f32
    %240 = vector.broadcast %cst_134 : f32 to vector<16x1xf32>
    %241 = arith.divf %239, %240 : vector<16x1xf32>
    %cst_135 = arith.constant 9.99999997E-7 : f32
    %242 = vector.broadcast %cst_135 : f32 to vector<16x1xf32>
    %243 = arith.addf %241, %242 : vector<16x1xf32>
    %244 = math.rsqrt %243 : vector<16x1xf32>
    %245 = vector.broadcast %244 : vector<16x1xf32> to vector<16x32xf32>
    %246 = arith.mulf %236, %245 : vector<16x32xf32>
    %cst_136 = arith.constant 1.000000e+00 : f32
    %247 = vector.broadcast %cst_136 : f32 to vector<1x32xf32>
    %248 = arith.addf %247, %83 : vector<1x32xf32>
    %249 = vector.broadcast %248 : vector<1x32xf32> to vector<16x32xf32>
    %250 = arith.mulf %246, %249 : vector<16x32xf32>
    %251 = vector.broadcast %76 : vector<1x32xf32> to vector<16x32xf32>
    %252 = arith.addf %250, %251 : vector<16x32xf32>
    %c0_137 = arith.constant 0 : index
    %c0_138 = arith.constant 0 : index
    %c0_139 = arith.constant 0 : index
    %253 = vector.load %arg21[%c0_137, %c0_138, %c0_139] : memref<2x32x128xbf16, #tpu.memory_space<vmem>>, vector<1x32x128xbf16>
    %254 = vector.shape_cast %253 : vector<1x32x128xbf16> to vector<32x128xbf16>
    %255 = arith.truncf %252 : vector<16x32xf32> to vector<16x32xbf16>
    %cst_140 = arith.constant dense<0.000000e+00> : vector<16x128xf32>
    %256 = tpu.matmul %255, %254, %cst_140 {dimension_numbers = #tpu.dot_dimension_numbers<[1], [0], [0], [1], [0, 0, 1, 1], [], []>} : vector<16x32xbf16>, vector<32x128xbf16>, vector<16x128xf32> -> vector<16x128xf32>
    %c0_141 = arith.constant 0 : index
    %c0_142 = arith.constant 0 : index
    %c0_143 = arith.constant 0 : index
    %257 = vector.load %arg22[%c0_141, %c0_142, %c0_143] : memref<2x1x128xf32, #tpu.memory_space<vmem>>, vector<1x1x128xf32>
    %258 = vector.shape_cast %257 : vector<1x1x128xf32> to vector<1x128xf32>
    %259 = vector.broadcast %258 : vector<1x128xf32> to vector<16x128xf32>
    %260 = arith.addf %256, %259 : vector<16x128xf32>
    %261 = arith.mulf %260, %260 : vector<16x128xf32>
    %262 = arith.mulf %260, %261 : vector<16x128xf32>
    %cst_144 = arith.constant 4.471500e-02 : f32
    %263 = vector.broadcast %cst_144 : f32 to vector<16x128xf32>
    %264 = arith.mulf %263, %262 : vector<16x128xf32>
    %265 = arith.addf %260, %264 : vector<16x128xf32>
    %cst_145 = arith.constant 0.797884583 : f32
    %266 = vector.broadcast %cst_145 : f32 to vector<16x128xf32>
    %267 = arith.mulf %266, %265 : vector<16x128xf32>
    %268 = math.tanh %267 : vector<16x128xf32>
    %cst_146 = arith.constant 1.000000e+00 : f32
    %269 = vector.broadcast %cst_146 : f32 to vector<16x128xf32>
    %270 = arith.addf %269, %268 : vector<16x128xf32>
    %cst_147 = arith.constant 5.000000e-01 : f32
    %271 = vector.broadcast %cst_147 : f32 to vector<16x128xf32>
    %272 = arith.mulf %271, %270 : vector<16x128xf32>
    %273 = arith.mulf %260, %272 : vector<16x128xf32>
    %c0_148 = arith.constant 0 : index
    %c0_149 = arith.constant 0 : index
    %c0_150 = arith.constant 0 : index
    %274 = vector.load %arg23[%c0_148, %c0_149, %c0_150] : memref<2x128x32xbf16, #tpu.memory_space<vmem>>, vector<1x128x32xbf16>
    %275 = vector.shape_cast %274 : vector<1x128x32xbf16> to vector<128x32xbf16>
    %276 = arith.truncf %273 : vector<16x128xf32> to vector<16x128xbf16>
    %cst_151 = arith.constant dense<0.000000e+00> : vector<16x32xf32>
    %277 = tpu.matmul %276, %275, %cst_151 {dimension_numbers = #tpu.dot_dimension_numbers<[1], [0], [0], [1], [0, 0, 1, 1], [], []>} : vector<16x128xbf16>, vector<128x32xbf16>, vector<16x32xf32> -> vector<16x32xf32>
    %c0_152 = arith.constant 0 : index
    %c0_153 = arith.constant 0 : index
    %c0_154 = arith.constant 0 : index
    %278 = vector.load %arg24[%c0_152, %c0_153, %c0_154] : memref<2x1x32xf32, #tpu.memory_space<vmem>>, vector<1x1x32xf32>
    %279 = vector.shape_cast %278 : vector<1x1x32xf32> to vector<1x32xf32>
    %280 = vector.broadcast %279 : vector<1x32xf32> to vector<16x32xf32>
    %281 = arith.addf %277, %280 : vector<16x32xf32>
    %282 = vector.broadcast %90 : vector<1x32xf32> to vector<16x32xf32>
    %283 = arith.mulf %282, %281 : vector<16x32xf32>
    %284 = arith.addf %230, %283 : vector<16x32xf32>
    %c6 = arith.constant 6 : index
    %c0_155 = arith.constant 0 : index
    %c0_156 = arith.constant 0 : index
    %285 = vector.load %arg15[%c6, %c0_155, %c0_156] : memref<12x32x32xbf16, #tpu.memory_space<vmem>>, vector<1x32x32xbf16>
    %286 = vector.shape_cast %285 : vector<1x32x32xbf16> to vector<32x32xbf16>
    %287 = arith.truncf %48 : vector<1x32xf32> to vector<1x32xbf16>
    %cst_157 = arith.constant dense<0.000000e+00> : vector<1x32xf32>
    %288 = tpu.matmul %287, %286, %cst_157 {dimension_numbers = #tpu.dot_dimension_numbers<[1], [0], [0], [1], [0, 0, 1, 1], [], []>} : vector<1x32xbf16>, vector<32x32xbf16>, vector<1x32xf32> -> vector<1x32xf32>
    %c6_158 = arith.constant 6 : index
    %c0_159 = arith.constant 0 : index
    %c0_160 = arith.constant 0 : index
    %289 = vector.load %arg16[%c6_158, %c0_159, %c0_160] : memref<12x1x32xf32, #tpu.memory_space<vmem>>, vector<1x1x32xf32>
    %290 = vector.shape_cast %289 : vector<1x1x32xf32> to vector<1x32xf32>
    %291 = arith.addf %288, %290 : vector<1x32xf32>
    %c7 = arith.constant 7 : index
    %c0_161 = arith.constant 0 : index
    %c0_162 = arith.constant 0 : index
    %292 = vector.load %arg15[%c7, %c0_161, %c0_162] : memref<12x32x32xbf16, #tpu.memory_space<vmem>>, vector<1x32x32xbf16>
    %293 = vector.shape_cast %292 : vector<1x32x32xbf16> to vector<32x32xbf16>
    %294 = arith.truncf %48 : vector<1x32xf32> to vector<1x32xbf16>
    %cst_163 = arith.constant dense<0.000000e+00> : vector<1x32xf32>
    %295 = tpu.matmul %294, %293, %cst_163 {dimension_numbers = #tpu.dot_dimension_numbers<[1], [0], [0], [1], [0, 0, 1, 1], [], []>} : vector<1x32xbf16>, vector<32x32xbf16>, vector<1x32xf32> -> vector<1x32xf32>
    %c7_164 = arith.constant 7 : index
    %c0_165 = arith.constant 0 : index
    %c0_166 = arith.constant 0 : index
    %296 = vector.load %arg16[%c7_164, %c0_165, %c0_166] : memref<12x1x32xf32, #tpu.memory_space<vmem>>, vector<1x1x32xf32>
    %297 = vector.shape_cast %296 : vector<1x1x32xf32> to vector<1x32xf32>
    %298 = arith.addf %295, %297 : vector<1x32xf32>
    %c8 = arith.constant 8 : index
    %c0_167 = arith.constant 0 : index
    %c0_168 = arith.constant 0 : index
    %299 = vector.load %arg15[%c8, %c0_167, %c0_168] : memref<12x32x32xbf16, #tpu.memory_space<vmem>>, vector<1x32x32xbf16>
    %300 = vector.shape_cast %299 : vector<1x32x32xbf16> to vector<32x32xbf16>
    %301 = arith.truncf %48 : vector<1x32xf32> to vector<1x32xbf16>
    %cst_169 = arith.constant dense<0.000000e+00> : vector<1x32xf32>
    %302 = tpu.matmul %301, %300, %cst_169 {dimension_numbers = #tpu.dot_dimension_numbers<[1], [0], [0], [1], [0, 0, 1, 1], [], []>} : vector<1x32xbf16>, vector<32x32xbf16>, vector<1x32xf32> -> vector<1x32xf32>
    %c8_170 = arith.constant 8 : index
    %c0_171 = arith.constant 0 : index
    %c0_172 = arith.constant 0 : index
    %303 = vector.load %arg16[%c8_170, %c0_171, %c0_172] : memref<12x1x32xf32, #tpu.memory_space<vmem>>, vector<1x1x32xf32>
    %304 = vector.shape_cast %303 : vector<1x1x32xf32> to vector<1x32xf32>
    %305 = arith.addf %302, %304 : vector<1x32xf32>
    %c9 = arith.constant 9 : index
    %c0_173 = arith.constant 0 : index
    %c0_174 = arith.constant 0 : index
    %306 = vector.load %arg15[%c9, %c0_173, %c0_174] : memref<12x32x32xbf16, #tpu.memory_space<vmem>>, vector<1x32x32xbf16>
    %307 = vector.shape_cast %306 : vector<1x32x32xbf16> to vector<32x32xbf16>
    %308 = arith.truncf %48 : vector<1x32xf32> to vector<1x32xbf16>
    %cst_175 = arith.constant dense<0.000000e+00> : vector<1x32xf32>
    %309 = tpu.matmul %308, %307, %cst_175 {dimension_numbers = #tpu.dot_dimension_numbers<[1], [0], [0], [1], [0, 0, 1, 1], [], []>} : vector<1x32xbf16>, vector<32x32xbf16>, vector<1x32xf32> -> vector<1x32xf32>
    %c9_176 = arith.constant 9 : index
    %c0_177 = arith.constant 0 : index
    %c0_178 = arith.constant 0 : index
    %310 = vector.load %arg16[%c9_176, %c0_177, %c0_178] : memref<12x1x32xf32, #tpu.memory_space<vmem>>, vector<1x1x32xf32>
    %311 = vector.shape_cast %310 : vector<1x1x32xf32> to vector<1x32xf32>
    %312 = arith.addf %309, %311 : vector<1x32xf32>
    %c10 = arith.constant 10 : index
    %c0_179 = arith.constant 0 : index
    %c0_180 = arith.constant 0 : index
    %313 = vector.load %arg15[%c10, %c0_179, %c0_180] : memref<12x32x32xbf16, #tpu.memory_space<vmem>>, vector<1x32x32xbf16>
    %314 = vector.shape_cast %313 : vector<1x32x32xbf16> to vector<32x32xbf16>
    %315 = arith.truncf %48 : vector<1x32xf32> to vector<1x32xbf16>
    %cst_181 = arith.constant dense<0.000000e+00> : vector<1x32xf32>
    %316 = tpu.matmul %315, %314, %cst_181 {dimension_numbers = #tpu.dot_dimension_numbers<[1], [0], [0], [1], [0, 0, 1, 1], [], []>} : vector<1x32xbf16>, vector<32x32xbf16>, vector<1x32xf32> -> vector<1x32xf32>
    %c10_182 = arith.constant 10 : index
    %c0_183 = arith.constant 0 : index
    %c0_184 = arith.constant 0 : index
    %317 = vector.load %arg16[%c10_182, %c0_183, %c0_184] : memref<12x1x32xf32, #tpu.memory_space<vmem>>, vector<1x1x32xf32>
    %318 = vector.shape_cast %317 : vector<1x1x32xf32> to vector<1x32xf32>
    %319 = arith.addf %316, %318 : vector<1x32xf32>
    %c11 = arith.constant 11 : index
    %c0_185 = arith.constant 0 : index
    %c0_186 = arith.constant 0 : index
    %320 = vector.load %arg15[%c11, %c0_185, %c0_186] : memref<12x32x32xbf16, #tpu.memory_space<vmem>>, vector<1x32x32xbf16>
    %321 = vector.shape_cast %320 : vector<1x32x32xbf16> to vector<32x32xbf16>
    %322 = arith.truncf %48 : vector<1x32xf32> to vector<1x32xbf16>
    %cst_187 = arith.constant dense<0.000000e+00> : vector<1x32xf32>
    %323 = tpu.matmul %322, %321, %cst_187 {dimension_numbers = #tpu.dot_dimension_numbers<[1], [0], [0], [1], [0, 0, 1, 1], [], []>} : vector<1x32xbf16>, vector<32x32xbf16>, vector<1x32xf32> -> vector<1x32xf32>
    %c11_188 = arith.constant 11 : index
    %c0_189 = arith.constant 0 : index
    %c0_190 = arith.constant 0 : index
    %324 = vector.load %arg16[%c11_188, %c0_189, %c0_190] : memref<12x1x32xf32, #tpu.memory_space<vmem>>, vector<1x1x32xf32>
    %325 = vector.shape_cast %324 : vector<1x1x32xf32> to vector<1x32xf32>
    %326 = arith.addf %323, %325 : vector<1x32xf32>
    %cst_191 = arith.constant dense<0.000000e+00> : vector<16xf32>
    %327 = vector.multi_reduction <add>, %284, %cst_191 [1] : vector<16x32xf32> to vector<16xf32>
    %328 = vector.shape_cast %327 : vector<16xf32> to vector<16x1xf32>
    %cst_192 = arith.constant 3.200000e+01 : f32
    %329 = vector.broadcast %cst_192 : f32 to vector<16x1xf32>
    %330 = arith.divf %328, %329 : vector<16x1xf32>
    %331 = vector.broadcast %330 : vector<16x1xf32> to vector<16x32xf32>
    %332 = arith.subf %284, %331 : vector<16x32xf32>
    %333 = arith.mulf %332, %332 : vector<16x32xf32>
    %cst_193 = arith.constant dense<0.000000e+00> : vector<16xf32>
    %334 = vector.multi_reduction <add>, %333, %cst_193 [1] : vector<16x32xf32> to vector<16xf32>
    %335 = vector.shape_cast %334 : vector<16xf32> to vector<16x1xf32>
    %cst_194 = arith.constant 3.200000e+01 : f32
    %336 = vector.broadcast %cst_194 : f32 to vector<16x1xf32>
    %337 = arith.divf %335, %336 : vector<16x1xf32>
    %cst_195 = arith.constant 9.99999997E-7 : f32
    %338 = vector.broadcast %cst_195 : f32 to vector<16x1xf32>
    %339 = arith.addf %337, %338 : vector<16x1xf32>
    %340 = math.rsqrt %339 : vector<16x1xf32>
    %341 = vector.broadcast %340 : vector<16x1xf32> to vector<16x32xf32>
    %342 = arith.mulf %332, %341 : vector<16x32xf32>
    %cst_196 = arith.constant 1.000000e+00 : f32
    %343 = vector.broadcast %cst_196 : f32 to vector<1x32xf32>
    %344 = arith.addf %343, %298 : vector<1x32xf32>
    %345 = vector.broadcast %344 : vector<1x32xf32> to vector<16x32xf32>
    %346 = arith.mulf %342, %345 : vector<16x32xf32>
    %347 = vector.broadcast %291 : vector<1x32xf32> to vector<16x32xf32>
    %348 = arith.addf %346, %347 : vector<16x32xf32>
    %c3_197 = arith.constant 3 : index
    %c0_198 = arith.constant 0 : index
    %c0_199 = arith.constant 0 : index
    %349 = vector.load %arg17[%c3_197, %c0_198, %c0_199] : memref<6x32x32xbf16, #tpu.memory_space<vmem>>, vector<1x32x32xbf16>
    %350 = vector.shape_cast %349 : vector<1x32x32xbf16> to vector<32x32xbf16>
    %351 = arith.truncf %348 : vector<16x32xf32> to vector<16x32xbf16>
    %cst_200 = arith.constant dense<0.000000e+00> : vector<16x32xf32>
    %352 = tpu.matmul %351, %350, %cst_200 {dimension_numbers = #tpu.dot_dimension_numbers<[1], [0], [0], [1], [0, 0, 1, 1], [], []>} : vector<16x32xbf16>, vector<32x32xbf16>, vector<16x32xf32> -> vector<16x32xf32>
    %c3_201 = arith.constant 3 : index
    %c0_202 = arith.constant 0 : index
    %c0_203 = arith.constant 0 : index
    %353 = vector.load %arg18[%c3_201, %c0_202, %c0_203] : memref<6x1x32xf32, #tpu.memory_space<vmem>>, vector<1x1x32xf32>
    %354 = vector.shape_cast %353 : vector<1x1x32xf32> to vector<1x32xf32>
    %355 = vector.broadcast %354 : vector<1x32xf32> to vector<16x32xf32>
    %356 = arith.addf %352, %355 : vector<16x32xf32>
    %c4_204 = arith.constant 4 : index
    %c0_205 = arith.constant 0 : index
    %c0_206 = arith.constant 0 : index
    %357 = vector.load %arg17[%c4_204, %c0_205, %c0_206] : memref<6x32x32xbf16, #tpu.memory_space<vmem>>, vector<1x32x32xbf16>
    %358 = vector.shape_cast %357 : vector<1x32x32xbf16> to vector<32x32xbf16>
    %359 = arith.truncf %348 : vector<16x32xf32> to vector<16x32xbf16>
    %cst_207 = arith.constant dense<0.000000e+00> : vector<16x32xf32>
    %360 = tpu.matmul %359, %358, %cst_207 {dimension_numbers = #tpu.dot_dimension_numbers<[1], [0], [0], [1], [0, 0, 1, 1], [], []>} : vector<16x32xbf16>, vector<32x32xbf16>, vector<16x32xf32> -> vector<16x32xf32>
    %c4_208 = arith.constant 4 : index
    %c0_209 = arith.constant 0 : index
    %c0_210 = arith.constant 0 : index
    %361 = vector.load %arg18[%c4_208, %c0_209, %c0_210] : memref<6x1x32xf32, #tpu.memory_space<vmem>>, vector<1x1x32xf32>
    %362 = vector.shape_cast %361 : vector<1x1x32xf32> to vector<1x32xf32>
    %363 = vector.broadcast %362 : vector<1x32xf32> to vector<16x32xf32>
    %364 = arith.addf %360, %363 : vector<16x32xf32>
    %c5_211 = arith.constant 5 : index
    %c0_212 = arith.constant 0 : index
    %c0_213 = arith.constant 0 : index
    %365 = vector.load %arg17[%c5_211, %c0_212, %c0_213] : memref<6x32x32xbf16, #tpu.memory_space<vmem>>, vector<1x32x32xbf16>
    %366 = vector.shape_cast %365 : vector<1x32x32xbf16> to vector<32x32xbf16>
    %367 = arith.truncf %348 : vector<16x32xf32> to vector<16x32xbf16>
    %cst_214 = arith.constant dense<0.000000e+00> : vector<16x32xf32>
    %368 = tpu.matmul %367, %366, %cst_214 {dimension_numbers = #tpu.dot_dimension_numbers<[1], [0], [0], [1], [0, 0, 1, 1], [], []>} : vector<16x32xbf16>, vector<32x32xbf16>, vector<16x32xf32> -> vector<16x32xf32>
    %c5_215 = arith.constant 5 : index
    %c0_216 = arith.constant 0 : index
    %c0_217 = arith.constant 0 : index
    %369 = vector.load %arg18[%c5_215, %c0_216, %c0_217] : memref<6x1x32xf32, #tpu.memory_space<vmem>>, vector<1x1x32xf32>
    %370 = vector.shape_cast %369 : vector<1x1x32xf32> to vector<1x32xf32>
    %371 = vector.broadcast %370 : vector<1x32xf32> to vector<16x32xf32>
    %372 = arith.addf %368, %371 : vector<16x32xf32>
    %c1_218 = arith.constant 1 : index
    %c0_219 = arith.constant 0 : index
    %c0_220 = arith.constant 0 : index
    %373 = vector.load %arg19[%c1_218, %c0_219, %c0_220] : memref<2x32x32xbf16, #tpu.memory_space<vmem>>, vector<1x32x32xbf16>
    %374 = vector.shape_cast %373 : vector<1x32x32xbf16> to vector<32x32xbf16>
    %cst_221 = arith.constant 0.000000e+00 : f32
    %375 = vector.broadcast %cst_221 : f32 to vector<16x32xf32>
    %376 = vector.extract_strided_slice %356 {offsets = [0, 0], sizes = [16, 8], strides = [1, 1]} : vector<16x32xf32> to vector<16x8xf32>
    %cst_222 = arith.constant 0.353553385 : f32
    %377 = vector.broadcast %cst_222 : f32 to vector<16x8xf32>
    %378 = arith.mulf %376, %377 : vector<16x8xf32>
    %379 = vector.extract_strided_slice %364 {offsets = [0, 0], sizes = [16, 8], strides = [1, 1]} : vector<16x32xf32> to vector<16x8xf32>
    %380 = vector.extract_strided_slice %372 {offsets = [0, 0], sizes = [16, 8], strides = [1, 1]} : vector<16x32xf32> to vector<16x8xf32>
    %cst_223 = arith.constant dense<0.000000e+00> : vector<16x16xf32>
    %381 = tpu.matmul %378, %379, %cst_223 {dimension_numbers = #tpu.dot_dimension_numbers<[1], [1], [0], [0], [0, 0, 1, 0], [], []>} : vector<16x8xf32>, vector<16x8xf32>, vector<16x16xf32> -> vector<16x16xf32>
    %cst_224 = arith.constant dense<0xFF800000> : vector<16xf32>
    %382 = vector.multi_reduction <maximumf>, %381, %cst_224 [1] : vector<16x16xf32> to vector<16xf32>
    %383 = vector.shape_cast %382 : vector<16xf32> to vector<16x1xf32>
    %384 = vector.broadcast %383 : vector<16x1xf32> to vector<16x16xf32>
    %385 = arith.subf %381, %384 : vector<16x16xf32>
    %386 = math.exp %385 : vector<16x16xf32>
    %cst_225 = arith.constant dense<0.000000e+00> : vector<16x8xf32>
    %387 = tpu.matmul %386, %380, %cst_225 {dimension_numbers = #tpu.dot_dimension_numbers<[1], [0], [0], [1], [0, 0, 1, 1], [], []>} : vector<16x16xf32>, vector<16x8xf32>, vector<16x8xf32> -> vector<16x8xf32>
    %cst_226 = arith.constant dense<0.000000e+00> : vector<16xf32>
    %388 = vector.multi_reduction <add>, %386, %cst_226 [1] : vector<16x16xf32> to vector<16xf32>
    %389 = vector.shape_cast %388 : vector<16xf32> to vector<16x1xf32>
    %390 = tpu.reciprocal %389 {approx = true} : vector<16x1xf32> -> vector<16x1xf32>
    %391 = vector.broadcast %390 : vector<16x1xf32> to vector<16x8xf32>
    %392 = arith.mulf %387, %391 : vector<16x8xf32>
    %393 = vector.extract_strided_slice %374 {offsets = [0, 0], sizes = [8, 32], strides = [1, 1]} : vector<32x32xbf16> to vector<8x32xbf16>
    %394 = arith.truncf %392 : vector<16x8xf32> to vector<16x8xbf16>
    %cst_227 = arith.constant dense<0.000000e+00> : vector<16x32xf32>
    %395 = tpu.matmul %394, %393, %cst_227 {dimension_numbers = #tpu.dot_dimension_numbers<[1], [0], [0], [1], [0, 0, 1, 1], [], []>} : vector<16x8xbf16>, vector<8x32xbf16>, vector<16x32xf32> -> vector<16x32xf32>
    %396 = arith.addf %375, %395 : vector<16x32xf32>
    %397 = vector.extract_strided_slice %356 {offsets = [0, 8], sizes = [16, 8], strides = [1, 1]} : vector<16x32xf32> to vector<16x8xf32>
    %cst_228 = arith.constant 0.353553385 : f32
    %398 = vector.broadcast %cst_228 : f32 to vector<16x8xf32>
    %399 = arith.mulf %397, %398 : vector<16x8xf32>
    %400 = vector.extract_strided_slice %364 {offsets = [0, 8], sizes = [16, 8], strides = [1, 1]} : vector<16x32xf32> to vector<16x8xf32>
    %401 = vector.extract_strided_slice %372 {offsets = [0, 8], sizes = [16, 8], strides = [1, 1]} : vector<16x32xf32> to vector<16x8xf32>
    %cst_229 = arith.constant dense<0.000000e+00> : vector<16x16xf32>
    %402 = tpu.matmul %399, %400, %cst_229 {dimension_numbers = #tpu.dot_dimension_numbers<[1], [1], [0], [0], [0, 0, 1, 0], [], []>} : vector<16x8xf32>, vector<16x8xf32>, vector<16x16xf32> -> vector<16x16xf32>
    %cst_230 = arith.constant dense<0xFF800000> : vector<16xf32>
    %403 = vector.multi_reduction <maximumf>, %402, %cst_230 [1] : vector<16x16xf32> to vector<16xf32>
    %404 = vector.shape_cast %403 : vector<16xf32> to vector<16x1xf32>
    %405 = vector.broadcast %404 : vector<16x1xf32> to vector<16x16xf32>
    %406 = arith.subf %402, %405 : vector<16x16xf32>
    %407 = math.exp %406 : vector<16x16xf32>
    %cst_231 = arith.constant dense<0.000000e+00> : vector<16x8xf32>
    %408 = tpu.matmul %407, %401, %cst_231 {dimension_numbers = #tpu.dot_dimension_numbers<[1], [0], [0], [1], [0, 0, 1, 1], [], []>} : vector<16x16xf32>, vector<16x8xf32>, vector<16x8xf32> -> vector<16x8xf32>
    %cst_232 = arith.constant dense<0.000000e+00> : vector<16xf32>
    %409 = vector.multi_reduction <add>, %407, %cst_232 [1] : vector<16x16xf32> to vector<16xf32>
    %410 = vector.shape_cast %409 : vector<16xf32> to vector<16x1xf32>
    %411 = tpu.reciprocal %410 {approx = true} : vector<16x1xf32> -> vector<16x1xf32>
    %412 = vector.broadcast %411 : vector<16x1xf32> to vector<16x8xf32>
    %413 = arith.mulf %408, %412 : vector<16x8xf32>
    %414 = vector.extract_strided_slice %374 {offsets = [8, 0], sizes = [8, 32], strides = [1, 1]} : vector<32x32xbf16> to vector<8x32xbf16>
    %415 = arith.truncf %413 : vector<16x8xf32> to vector<16x8xbf16>
    %cst_233 = arith.constant dense<0.000000e+00> : vector<16x32xf32>
    %416 = tpu.matmul %415, %414, %cst_233 {dimension_numbers = #tpu.dot_dimension_numbers<[1], [0], [0], [1], [0, 0, 1, 1], [], []>} : vector<16x8xbf16>, vector<8x32xbf16>, vector<16x32xf32> -> vector<16x32xf32>
    %417 = arith.addf %396, %416 : vector<16x32xf32>
    %418 = vector.extract_strided_slice %356 {offsets = [0, 16], sizes = [16, 8], strides = [1, 1]} : vector<16x32xf32> to vector<16x8xf32>
    %cst_234 = arith.constant 0.353553385 : f32
    %419 = vector.broadcast %cst_234 : f32 to vector<16x8xf32>
    %420 = arith.mulf %418, %419 : vector<16x8xf32>
    %421 = vector.extract_strided_slice %364 {offsets = [0, 16], sizes = [16, 8], strides = [1, 1]} : vector<16x32xf32> to vector<16x8xf32>
    %422 = vector.extract_strided_slice %372 {offsets = [0, 16], sizes = [16, 8], strides = [1, 1]} : vector<16x32xf32> to vector<16x8xf32>
    %cst_235 = arith.constant dense<0.000000e+00> : vector<16x16xf32>
    %423 = tpu.matmul %420, %421, %cst_235 {dimension_numbers = #tpu.dot_dimension_numbers<[1], [1], [0], [0], [0, 0, 1, 0], [], []>} : vector<16x8xf32>, vector<16x8xf32>, vector<16x16xf32> -> vector<16x16xf32>
    %cst_236 = arith.constant dense<0xFF800000> : vector<16xf32>
    %424 = vector.multi_reduction <maximumf>, %423, %cst_236 [1] : vector<16x16xf32> to vector<16xf32>
    %425 = vector.shape_cast %424 : vector<16xf32> to vector<16x1xf32>
    %426 = vector.broadcast %425 : vector<16x1xf32> to vector<16x16xf32>
    %427 = arith.subf %423, %426 : vector<16x16xf32>
    %428 = math.exp %427 : vector<16x16xf32>
    %cst_237 = arith.constant dense<0.000000e+00> : vector<16x8xf32>
    %429 = tpu.matmul %428, %422, %cst_237 {dimension_numbers = #tpu.dot_dimension_numbers<[1], [0], [0], [1], [0, 0, 1, 1], [], []>} : vector<16x16xf32>, vector<16x8xf32>, vector<16x8xf32> -> vector<16x8xf32>
    %cst_238 = arith.constant dense<0.000000e+00> : vector<16xf32>
    %430 = vector.multi_reduction <add>, %428, %cst_238 [1] : vector<16x16xf32> to vector<16xf32>
    %431 = vector.shape_cast %430 : vector<16xf32> to vector<16x1xf32>
    %432 = tpu.reciprocal %431 {approx = true} : vector<16x1xf32> -> vector<16x1xf32>
    %433 = vector.broadcast %432 : vector<16x1xf32> to vector<16x8xf32>
    %434 = arith.mulf %429, %433 : vector<16x8xf32>
    %435 = vector.extract_strided_slice %374 {offsets = [16, 0], sizes = [8, 32], strides = [1, 1]} : vector<32x32xbf16> to vector<8x32xbf16>
    %436 = arith.truncf %434 : vector<16x8xf32> to vector<16x8xbf16>
    %cst_239 = arith.constant dense<0.000000e+00> : vector<16x32xf32>
    %437 = tpu.matmul %436, %435, %cst_239 {dimension_numbers = #tpu.dot_dimension_numbers<[1], [0], [0], [1], [0, 0, 1, 1], [], []>} : vector<16x8xbf16>, vector<8x32xbf16>, vector<16x32xf32> -> vector<16x32xf32>
    %438 = arith.addf %417, %437 : vector<16x32xf32>
    %439 = vector.extract_strided_slice %356 {offsets = [0, 24], sizes = [16, 8], strides = [1, 1]} : vector<16x32xf32> to vector<16x8xf32>
    %cst_240 = arith.constant 0.353553385 : f32
    %440 = vector.broadcast %cst_240 : f32 to vector<16x8xf32>
    %441 = arith.mulf %439, %440 : vector<16x8xf32>
    %442 = vector.extract_strided_slice %364 {offsets = [0, 24], sizes = [16, 8], strides = [1, 1]} : vector<16x32xf32> to vector<16x8xf32>
    %443 = vector.extract_strided_slice %372 {offsets = [0, 24], sizes = [16, 8], strides = [1, 1]} : vector<16x32xf32> to vector<16x8xf32>
    %cst_241 = arith.constant dense<0.000000e+00> : vector<16x16xf32>
    %444 = tpu.matmul %441, %442, %cst_241 {dimension_numbers = #tpu.dot_dimension_numbers<[1], [1], [0], [0], [0, 0, 1, 0], [], []>} : vector<16x8xf32>, vector<16x8xf32>, vector<16x16xf32> -> vector<16x16xf32>
    %cst_242 = arith.constant dense<0xFF800000> : vector<16xf32>
    %445 = vector.multi_reduction <maximumf>, %444, %cst_242 [1] : vector<16x16xf32> to vector<16xf32>
    %446 = vector.shape_cast %445 : vector<16xf32> to vector<16x1xf32>
    %447 = vector.broadcast %446 : vector<16x1xf32> to vector<16x16xf32>
    %448 = arith.subf %444, %447 : vector<16x16xf32>
    %449 = math.exp %448 : vector<16x16xf32>
    %cst_243 = arith.constant dense<0.000000e+00> : vector<16x8xf32>
    %450 = tpu.matmul %449, %443, %cst_243 {dimension_numbers = #tpu.dot_dimension_numbers<[1], [0], [0], [1], [0, 0, 1, 1], [], []>} : vector<16x16xf32>, vector<16x8xf32>, vector<16x8xf32> -> vector<16x8xf32>
    %cst_244 = arith.constant dense<0.000000e+00> : vector<16xf32>
    %451 = vector.multi_reduction <add>, %449, %cst_244 [1] : vector<16x16xf32> to vector<16xf32>
    %452 = vector.shape_cast %451 : vector<16xf32> to vector<16x1xf32>
    %453 = tpu.reciprocal %452 {approx = true} : vector<16x1xf32> -> vector<16x1xf32>
    %454 = vector.broadcast %453 : vector<16x1xf32> to vector<16x8xf32>
    %455 = arith.mulf %450, %454 : vector<16x8xf32>
    %456 = vector.extract_strided_slice %374 {offsets = [24, 0], sizes = [8, 32], strides = [1, 1]} : vector<32x32xbf16> to vector<8x32xbf16>
    %457 = arith.truncf %455 : vector<16x8xf32> to vector<16x8xbf16>
    %cst_245 = arith.constant dense<0.000000e+00> : vector<16x32xf32>
    %458 = tpu.matmul %457, %456, %cst_245 {dimension_numbers = #tpu.dot_dimension_numbers<[1], [0], [0], [1], [0, 0, 1, 1], [], []>} : vector<16x8xbf16>, vector<8x32xbf16>, vector<16x32xf32> -> vector<16x32xf32>
    %459 = arith.addf %438, %458 : vector<16x32xf32>
    %c1_246 = arith.constant 1 : index
    %c0_247 = arith.constant 0 : index
    %c0_248 = arith.constant 0 : index
    %460 = vector.load %arg20[%c1_246, %c0_247, %c0_248] : memref<2x1x32xf32, #tpu.memory_space<vmem>>, vector<1x1x32xf32>
    %461 = vector.shape_cast %460 : vector<1x1x32xf32> to vector<1x32xf32>
    %462 = vector.broadcast %461 : vector<1x32xf32> to vector<16x32xf32>
    %463 = arith.addf %459, %462 : vector<16x32xf32>
    %464 = vector.broadcast %305 : vector<1x32xf32> to vector<16x32xf32>
    %465 = arith.mulf %464, %463 : vector<16x32xf32>
    %466 = arith.addf %284, %465 : vector<16x32xf32>
    %cst_249 = arith.constant dense<0.000000e+00> : vector<16xf32>
    %467 = vector.multi_reduction <add>, %466, %cst_249 [1] : vector<16x32xf32> to vector<16xf32>
    %468 = vector.shape_cast %467 : vector<16xf32> to vector<16x1xf32>
    %cst_250 = arith.constant 3.200000e+01 : f32
    %469 = vector.broadcast %cst_250 : f32 to vector<16x1xf32>
    %470 = arith.divf %468, %469 : vector<16x1xf32>
    %471 = vector.broadcast %470 : vector<16x1xf32> to vector<16x32xf32>
    %472 = arith.subf %466, %471 : vector<16x32xf32>
    %473 = arith.mulf %472, %472 : vector<16x32xf32>
    %cst_251 = arith.constant dense<0.000000e+00> : vector<16xf32>
    %474 = vector.multi_reduction <add>, %473, %cst_251 [1] : vector<16x32xf32> to vector<16xf32>
    %475 = vector.shape_cast %474 : vector<16xf32> to vector<16x1xf32>
    %cst_252 = arith.constant 3.200000e+01 : f32
    %476 = vector.broadcast %cst_252 : f32 to vector<16x1xf32>
    %477 = arith.divf %475, %476 : vector<16x1xf32>
    %cst_253 = arith.constant 9.99999997E-7 : f32
    %478 = vector.broadcast %cst_253 : f32 to vector<16x1xf32>
    %479 = arith.addf %477, %478 : vector<16x1xf32>
    %480 = math.rsqrt %479 : vector<16x1xf32>
    %481 = vector.broadcast %480 : vector<16x1xf32> to vector<16x32xf32>
    %482 = arith.mulf %472, %481 : vector<16x32xf32>
    %cst_254 = arith.constant 1.000000e+00 : f32
    %483 = vector.broadcast %cst_254 : f32 to vector<1x32xf32>
    %484 = arith.addf %483, %319 : vector<1x32xf32>
    %485 = vector.broadcast %484 : vector<1x32xf32> to vector<16x32xf32>
    %486 = arith.mulf %482, %485 : vector<16x32xf32>
    %487 = vector.broadcast %312 : vector<1x32xf32> to vector<16x32xf32>
    %488 = arith.addf %486, %487 : vector<16x32xf32>
    %c1_255 = arith.constant 1 : index
    %c0_256 = arith.constant 0 : index
    %c0_257 = arith.constant 0 : index
    %489 = vector.load %arg21[%c1_255, %c0_256, %c0_257] : memref<2x32x128xbf16, #tpu.memory_space<vmem>>, vector<1x32x128xbf16>
    %490 = vector.shape_cast %489 : vector<1x32x128xbf16> to vector<32x128xbf16>
    %491 = arith.truncf %488 : vector<16x32xf32> to vector<16x32xbf16>
    %cst_258 = arith.constant dense<0.000000e+00> : vector<16x128xf32>
    %492 = tpu.matmul %491, %490, %cst_258 {dimension_numbers = #tpu.dot_dimension_numbers<[1], [0], [0], [1], [0, 0, 1, 1], [], []>} : vector<16x32xbf16>, vector<32x128xbf16>, vector<16x128xf32> -> vector<16x128xf32>
    %c1_259 = arith.constant 1 : index
    %c0_260 = arith.constant 0 : index
    %c0_261 = arith.constant 0 : index
    %493 = vector.load %arg22[%c1_259, %c0_260, %c0_261] : memref<2x1x128xf32, #tpu.memory_space<vmem>>, vector<1x1x128xf32>
    %494 = vector.shape_cast %493 : vector<1x1x128xf32> to vector<1x128xf32>
    %495 = vector.broadcast %494 : vector<1x128xf32> to vector<16x128xf32>
    %496 = arith.addf %492, %495 : vector<16x128xf32>
    %497 = arith.mulf %496, %496 : vector<16x128xf32>
    %498 = arith.mulf %496, %497 : vector<16x128xf32>
    %cst_262 = arith.constant 4.471500e-02 : f32
    %499 = vector.broadcast %cst_262 : f32 to vector<16x128xf32>
    %500 = arith.mulf %499, %498 : vector<16x128xf32>
    %501 = arith.addf %496, %500 : vector<16x128xf32>
    %cst_263 = arith.constant 0.797884583 : f32
    %502 = vector.broadcast %cst_263 : f32 to vector<16x128xf32>
    %503 = arith.mulf %502, %501 : vector<16x128xf32>
    %504 = math.tanh %503 : vector<16x128xf32>
    %cst_264 = arith.constant 1.000000e+00 : f32
    %505 = vector.broadcast %cst_264 : f32 to vector<16x128xf32>
    %506 = arith.addf %505, %504 : vector<16x128xf32>
    %cst_265 = arith.constant 5.000000e-01 : f32
    %507 = vector.broadcast %cst_265 : f32 to vector<16x128xf32>
    %508 = arith.mulf %507, %506 : vector<16x128xf32>
    %509 = arith.mulf %496, %508 : vector<16x128xf32>
    %c1_266 = arith.constant 1 : index
    %c0_267 = arith.constant 0 : index
    %c0_268 = arith.constant 0 : index
    %510 = vector.load %arg23[%c1_266, %c0_267, %c0_268] : memref<2x128x32xbf16, #tpu.memory_space<vmem>>, vector<1x128x32xbf16>
    %511 = vector.shape_cast %510 : vector<1x128x32xbf16> to vector<128x32xbf16>
    %512 = arith.truncf %509 : vector<16x128xf32> to vector<16x128xbf16>
    %cst_269 = arith.constant dense<0.000000e+00> : vector<16x32xf32>
    %513 = tpu.matmul %512, %511, %cst_269 {dimension_numbers = #tpu.dot_dimension_numbers<[1], [0], [0], [1], [0, 0, 1, 1], [], []>} : vector<16x128xbf16>, vector<128x32xbf16>, vector<16x32xf32> -> vector<16x32xf32>
    %c1_270 = arith.constant 1 : index
    %c0_271 = arith.constant 0 : index
    %c0_272 = arith.constant 0 : index
    %514 = vector.load %arg24[%c1_270, %c0_271, %c0_272] : memref<2x1x32xf32, #tpu.memory_space<vmem>>, vector<1x1x32xf32>
    %515 = vector.shape_cast %514 : vector<1x1x32xf32> to vector<1x32xf32>
    %516 = vector.broadcast %515 : vector<1x32xf32> to vector<16x32xf32>
    %517 = arith.addf %513, %516 : vector<16x32xf32>
    %518 = vector.broadcast %326 : vector<1x32xf32> to vector<16x32xf32>
    %519 = arith.mulf %518, %517 : vector<16x32xf32>
    %520 = arith.addf %466, %519 : vector<16x32xf32>
    %cst_273 = arith.constant dense<0.000000e+00> : vector<16xf32>
    %521 = vector.multi_reduction <add>, %520, %cst_273 [1] : vector<16x32xf32> to vector<16xf32>
    %522 = vector.shape_cast %521 : vector<16xf32> to vector<16x1xf32>
    %cst_274 = arith.constant 3.200000e+01 : f32
    %523 = vector.broadcast %cst_274 : f32 to vector<16x1xf32>
    %524 = arith.divf %522, %523 : vector<16x1xf32>
    %525 = vector.broadcast %524 : vector<16x1xf32> to vector<16x32xf32>
    %526 = arith.subf %520, %525 : vector<16x32xf32>
    %527 = arith.mulf %526, %526 : vector<16x32xf32>
    %cst_275 = arith.constant dense<0.000000e+00> : vector<16xf32>
    %528 = vector.multi_reduction <add>, %527, %cst_275 [1] : vector<16x32xf32> to vector<16xf32>
    %529 = vector.shape_cast %528 : vector<16xf32> to vector<16x1xf32>
    %cst_276 = arith.constant 3.200000e+01 : f32
    %530 = vector.broadcast %cst_276 : f32 to vector<16x1xf32>
    %531 = arith.divf %529, %530 : vector<16x1xf32>
    %cst_277 = arith.constant 9.99999997E-7 : f32
    %532 = vector.broadcast %cst_277 : f32 to vector<16x1xf32>
    %533 = arith.addf %531, %532 : vector<16x1xf32>
    %534 = math.rsqrt %533 : vector<16x1xf32>
    %535 = vector.broadcast %534 : vector<16x1xf32> to vector<16x32xf32>
    %536 = arith.mulf %526, %535 : vector<16x32xf32>
    %c0_278 = arith.constant 0 : index
    %c0_279 = arith.constant 0 : index
    %537 = vector.load %arg25[%c0_278, %c0_279] : memref<32x32xbf16, #tpu.memory_space<vmem>>, vector<32x32xbf16>
    %538 = arith.truncf %536 : vector<16x32xf32> to vector<16x32xbf16>
    %cst_280 = arith.constant dense<0.000000e+00> : vector<16x32xf32>
    %539 = tpu.matmul %538, %537, %cst_280 {dimension_numbers = #tpu.dot_dimension_numbers<[1], [0], [0], [1], [0, 0, 1, 1], [], []>} : vector<16x32xbf16>, vector<32x32xbf16>, vector<16x32xf32> -> vector<16x32xf32>
    %c0_281 = arith.constant 0 : index
    %c0_282 = arith.constant 0 : index
    %540 = vector.load %arg26[%c0_281, %c0_282] : memref<1x32xf32, #tpu.memory_space<vmem>>, vector<1x32xf32>
    %541 = vector.broadcast %540 : vector<1x32xf32> to vector<16x32xf32>
    %542 = arith.addf %539, %541 : vector<16x32xf32>
    %c0_283 = arith.constant 0 : index
    %c0_284 = arith.constant 0 : index
    %543 = vector.load %arg27[%c0_283, %c0_284] : memref<32x32xbf16, #tpu.memory_space<vmem>>, vector<32x32xbf16>
    %544 = arith.truncf %24 : vector<16x32xf32> to vector<16x32xbf16>
    %cst_285 = arith.constant dense<0.000000e+00> : vector<16x32xf32>
    %545 = tpu.matmul %544, %543, %cst_285 {dimension_numbers = #tpu.dot_dimension_numbers<[1], [0], [0], [1], [0, 0, 1, 1], [], []>} : vector<16x32xbf16>, vector<32x32xbf16>, vector<16x32xf32> -> vector<16x32xf32>
    %c0_286 = arith.constant 0 : index
    %c0_287 = arith.constant 0 : index
    %546 = vector.load %arg28[%c0_286, %c0_287] : memref<1x32xf32, #tpu.memory_space<vmem>>, vector<1x32xf32>
    %547 = vector.broadcast %546 : vector<1x32xf32> to vector<16x32xf32>
    %548 = arith.addf %545, %547 : vector<16x32xf32>
    %c0_288 = arith.constant 0 : index
    %c0_289 = arith.constant 0 : index
    %549 = vector.load %arg29[%c0_288, %c0_289] : memref<32x32xbf16, #tpu.memory_space<vmem>>, vector<32x32xbf16>
    %550 = arith.truncf %24 : vector<16x32xf32> to vector<16x32xbf16>
    %cst_290 = arith.constant dense<0.000000e+00> : vector<16x32xf32>
    %551 = tpu.matmul %550, %549, %cst_290 {dimension_numbers = #tpu.dot_dimension_numbers<[1], [0], [0], [1], [0, 0, 1, 1], [], []>} : vector<16x32xbf16>, vector<32x32xbf16>, vector<16x32xf32> -> vector<16x32xf32>
    %c0_291 = arith.constant 0 : index
    %c0_292 = arith.constant 0 : index
    %552 = vector.load %arg30[%c0_291, %c0_292] : memref<1x32xf32, #tpu.memory_space<vmem>>, vector<1x32xf32>
    %553 = vector.broadcast %552 : vector<1x32xf32> to vector<16x32xf32>
    %554 = arith.addf %551, %553 : vector<16x32xf32>
    %c0_293 = arith.constant 0 : index
    %c0_294 = arith.constant 0 : index
    %555 = vector.load %arg31[%c0_293, %c0_294] : memref<32x32xbf16, #tpu.memory_space<vmem>>, vector<32x32xbf16>
    %cst_295 = arith.constant 0.000000e+00 : f32
    %556 = vector.broadcast %cst_295 : f32 to vector<16x32xf32>
    %557 = vector.extract_strided_slice %542 {offsets = [0, 0], sizes = [16, 8], strides = [1, 1]} : vector<16x32xf32> to vector<16x8xf32>
    %cst_296 = arith.constant 0.353553385 : f32
    %558 = vector.broadcast %cst_296 : f32 to vector<16x8xf32>
    %559 = arith.mulf %557, %558 : vector<16x8xf32>
    %560 = vector.extract_strided_slice %548 {offsets = [0, 0], sizes = [16, 8], strides = [1, 1]} : vector<16x32xf32> to vector<16x8xf32>
    %561 = vector.extract_strided_slice %554 {offsets = [0, 0], sizes = [16, 8], strides = [1, 1]} : vector<16x32xf32> to vector<16x8xf32>
    %cst_297 = arith.constant dense<0.000000e+00> : vector<16x16xf32>
    %562 = tpu.matmul %559, %560, %cst_297 {dimension_numbers = #tpu.dot_dimension_numbers<[1], [1], [0], [0], [0, 0, 1, 0], [], []>} : vector<16x8xf32>, vector<16x8xf32>, vector<16x16xf32> -> vector<16x16xf32>
    %cst_298 = arith.constant dense<0xFF800000> : vector<16xf32>
    %563 = vector.multi_reduction <maximumf>, %562, %cst_298 [1] : vector<16x16xf32> to vector<16xf32>
    %564 = vector.shape_cast %563 : vector<16xf32> to vector<16x1xf32>
    %565 = vector.broadcast %564 : vector<16x1xf32> to vector<16x16xf32>
    %566 = arith.subf %562, %565 : vector<16x16xf32>
    %567 = math.exp %566 : vector<16x16xf32>
    %cst_299 = arith.constant dense<0.000000e+00> : vector<16x8xf32>
    %568 = tpu.matmul %567, %561, %cst_299 {dimension_numbers = #tpu.dot_dimension_numbers<[1], [0], [0], [1], [0, 0, 1, 1], [], []>} : vector<16x16xf32>, vector<16x8xf32>, vector<16x8xf32> -> vector<16x8xf32>
    %cst_300 = arith.constant dense<0.000000e+00> : vector<16xf32>
    %569 = vector.multi_reduction <add>, %567, %cst_300 [1] : vector<16x16xf32> to vector<16xf32>
    %570 = vector.shape_cast %569 : vector<16xf32> to vector<16x1xf32>
    %571 = tpu.reciprocal %570 {approx = true} : vector<16x1xf32> -> vector<16x1xf32>
    %572 = vector.broadcast %571 : vector<16x1xf32> to vector<16x8xf32>
    %573 = arith.mulf %568, %572 : vector<16x8xf32>
    %574 = vector.extract_strided_slice %555 {offsets = [0, 0], sizes = [8, 32], strides = [1, 1]} : vector<32x32xbf16> to vector<8x32xbf16>
    %575 = arith.truncf %573 : vector<16x8xf32> to vector<16x8xbf16>
    %cst_301 = arith.constant dense<0.000000e+00> : vector<16x32xf32>
    %576 = tpu.matmul %575, %574, %cst_301 {dimension_numbers = #tpu.dot_dimension_numbers<[1], [0], [0], [1], [0, 0, 1, 1], [], []>} : vector<16x8xbf16>, vector<8x32xbf16>, vector<16x32xf32> -> vector<16x32xf32>
    %577 = arith.addf %556, %576 : vector<16x32xf32>
    %578 = vector.extract_strided_slice %542 {offsets = [0, 8], sizes = [16, 8], strides = [1, 1]} : vector<16x32xf32> to vector<16x8xf32>
    %cst_302 = arith.constant 0.353553385 : f32
    %579 = vector.broadcast %cst_302 : f32 to vector<16x8xf32>
    %580 = arith.mulf %578, %579 : vector<16x8xf32>
    %581 = vector.extract_strided_slice %548 {offsets = [0, 8], sizes = [16, 8], strides = [1, 1]} : vector<16x32xf32> to vector<16x8xf32>
    %582 = vector.extract_strided_slice %554 {offsets = [0, 8], sizes = [16, 8], strides = [1, 1]} : vector<16x32xf32> to vector<16x8xf32>
    %cst_303 = arith.constant dense<0.000000e+00> : vector<16x16xf32>
    %583 = tpu.matmul %580, %581, %cst_303 {dimension_numbers = #tpu.dot_dimension_numbers<[1], [1], [0], [0], [0, 0, 1, 0], [], []>} : vector<16x8xf32>, vector<16x8xf32>, vector<16x16xf32> -> vector<16x16xf32>
    %cst_304 = arith.constant dense<0xFF800000> : vector<16xf32>
    %584 = vector.multi_reduction <maximumf>, %583, %cst_304 [1] : vector<16x16xf32> to vector<16xf32>
    %585 = vector.shape_cast %584 : vector<16xf32> to vector<16x1xf32>
    %586 = vector.broadcast %585 : vector<16x1xf32> to vector<16x16xf32>
    %587 = arith.subf %583, %586 : vector<16x16xf32>
    %588 = math.exp %587 : vector<16x16xf32>
    %cst_305 = arith.constant dense<0.000000e+00> : vector<16x8xf32>
    %589 = tpu.matmul %588, %582, %cst_305 {dimension_numbers = #tpu.dot_dimension_numbers<[1], [0], [0], [1], [0, 0, 1, 1], [], []>} : vector<16x16xf32>, vector<16x8xf32>, vector<16x8xf32> -> vector<16x8xf32>
    %cst_306 = arith.constant dense<0.000000e+00> : vector<16xf32>
    %590 = vector.multi_reduction <add>, %588, %cst_306 [1] : vector<16x16xf32> to vector<16xf32>
    %591 = vector.shape_cast %590 : vector<16xf32> to vector<16x1xf32>
    %592 = tpu.reciprocal %591 {approx = true} : vector<16x1xf32> -> vector<16x1xf32>
    %593 = vector.broadcast %592 : vector<16x1xf32> to vector<16x8xf32>
    %594 = arith.mulf %589, %593 : vector<16x8xf32>
    %595 = vector.extract_strided_slice %555 {offsets = [8, 0], sizes = [8, 32], strides = [1, 1]} : vector<32x32xbf16> to vector<8x32xbf16>
    %596 = arith.truncf %594 : vector<16x8xf32> to vector<16x8xbf16>
    %cst_307 = arith.constant dense<0.000000e+00> : vector<16x32xf32>
    %597 = tpu.matmul %596, %595, %cst_307 {dimension_numbers = #tpu.dot_dimension_numbers<[1], [0], [0], [1], [0, 0, 1, 1], [], []>} : vector<16x8xbf16>, vector<8x32xbf16>, vector<16x32xf32> -> vector<16x32xf32>
    %598 = arith.addf %577, %597 : vector<16x32xf32>
    %599 = vector.extract_strided_slice %542 {offsets = [0, 16], sizes = [16, 8], strides = [1, 1]} : vector<16x32xf32> to vector<16x8xf32>
    %cst_308 = arith.constant 0.353553385 : f32
    %600 = vector.broadcast %cst_308 : f32 to vector<16x8xf32>
    %601 = arith.mulf %599, %600 : vector<16x8xf32>
    %602 = vector.extract_strided_slice %548 {offsets = [0, 16], sizes = [16, 8], strides = [1, 1]} : vector<16x32xf32> to vector<16x8xf32>
    %603 = vector.extract_strided_slice %554 {offsets = [0, 16], sizes = [16, 8], strides = [1, 1]} : vector<16x32xf32> to vector<16x8xf32>
    %cst_309 = arith.constant dense<0.000000e+00> : vector<16x16xf32>
    %604 = tpu.matmul %601, %602, %cst_309 {dimension_numbers = #tpu.dot_dimension_numbers<[1], [1], [0], [0], [0, 0, 1, 0], [], []>} : vector<16x8xf32>, vector<16x8xf32>, vector<16x16xf32> -> vector<16x16xf32>
    %cst_310 = arith.constant dense<0xFF800000> : vector<16xf32>
    %605 = vector.multi_reduction <maximumf>, %604, %cst_310 [1] : vector<16x16xf32> to vector<16xf32>
    %606 = vector.shape_cast %605 : vector<16xf32> to vector<16x1xf32>
    %607 = vector.broadcast %606 : vector<16x1xf32> to vector<16x16xf32>
    %608 = arith.subf %604, %607 : vector<16x16xf32>
    %609 = math.exp %608 : vector<16x16xf32>
    %cst_311 = arith.constant dense<0.000000e+00> : vector<16x8xf32>
    %610 = tpu.matmul %609, %603, %cst_311 {dimension_numbers = #tpu.dot_dimension_numbers<[1], [0], [0], [1], [0, 0, 1, 1], [], []>} : vector<16x16xf32>, vector<16x8xf32>, vector<16x8xf32> -> vector<16x8xf32>
    %cst_312 = arith.constant dense<0.000000e+00> : vector<16xf32>
    %611 = vector.multi_reduction <add>, %609, %cst_312 [1] : vector<16x16xf32> to vector<16xf32>
    %612 = vector.shape_cast %611 : vector<16xf32> to vector<16x1xf32>
    %613 = tpu.reciprocal %612 {approx = true} : vector<16x1xf32> -> vector<16x1xf32>
    %614 = vector.broadcast %613 : vector<16x1xf32> to vector<16x8xf32>
    %615 = arith.mulf %610, %614 : vector<16x8xf32>
    %616 = vector.extract_strided_slice %555 {offsets = [16, 0], sizes = [8, 32], strides = [1, 1]} : vector<32x32xbf16> to vector<8x32xbf16>
    %617 = arith.truncf %615 : vector<16x8xf32> to vector<16x8xbf16>
    %cst_313 = arith.constant dense<0.000000e+00> : vector<16x32xf32>
    %618 = tpu.matmul %617, %616, %cst_313 {dimension_numbers = #tpu.dot_dimension_numbers<[1], [0], [0], [1], [0, 0, 1, 1], [], []>} : vector<16x8xbf16>, vector<8x32xbf16>, vector<16x32xf32> -> vector<16x32xf32>
    %619 = arith.addf %598, %618 : vector<16x32xf32>
    %620 = vector.extract_strided_slice %542 {offsets = [0, 24], sizes = [16, 8], strides = [1, 1]} : vector<16x32xf32> to vector<16x8xf32>
    %cst_314 = arith.constant 0.353553385 : f32
    %621 = vector.broadcast %cst_314 : f32 to vector<16x8xf32>
    %622 = arith.mulf %620, %621 : vector<16x8xf32>
    %623 = vector.extract_strided_slice %548 {offsets = [0, 24], sizes = [16, 8], strides = [1, 1]} : vector<16x32xf32> to vector<16x8xf32>
    %624 = vector.extract_strided_slice %554 {offsets = [0, 24], sizes = [16, 8], strides = [1, 1]} : vector<16x32xf32> to vector<16x8xf32>
    %cst_315 = arith.constant dense<0.000000e+00> : vector<16x16xf32>
    %625 = tpu.matmul %622, %623, %cst_315 {dimension_numbers = #tpu.dot_dimension_numbers<[1], [1], [0], [0], [0, 0, 1, 0], [], []>} : vector<16x8xf32>, vector<16x8xf32>, vector<16x16xf32> -> vector<16x16xf32>
    %cst_316 = arith.constant dense<0xFF800000> : vector<16xf32>
    %626 = vector.multi_reduction <maximumf>, %625, %cst_316 [1] : vector<16x16xf32> to vector<16xf32>
    %627 = vector.shape_cast %626 : vector<16xf32> to vector<16x1xf32>
    %628 = vector.broadcast %627 : vector<16x1xf32> to vector<16x16xf32>
    %629 = arith.subf %625, %628 : vector<16x16xf32>
    %630 = math.exp %629 : vector<16x16xf32>
    %cst_317 = arith.constant dense<0.000000e+00> : vector<16x8xf32>
    %631 = tpu.matmul %630, %624, %cst_317 {dimension_numbers = #tpu.dot_dimension_numbers<[1], [0], [0], [1], [0, 0, 1, 1], [], []>} : vector<16x16xf32>, vector<16x8xf32>, vector<16x8xf32> -> vector<16x8xf32>
    %cst_318 = arith.constant dense<0.000000e+00> : vector<16xf32>
    %632 = vector.multi_reduction <add>, %630, %cst_318 [1] : vector<16x16xf32> to vector<16xf32>
    %633 = vector.shape_cast %632 : vector<16xf32> to vector<16x1xf32>
    %634 = tpu.reciprocal %633 {approx = true} : vector<16x1xf32> -> vector<16x1xf32>
    %635 = vector.broadcast %634 : vector<16x1xf32> to vector<16x8xf32>
    %636 = arith.mulf %631, %635 : vector<16x8xf32>
    %637 = vector.extract_strided_slice %555 {offsets = [24, 0], sizes = [8, 32], strides = [1, 1]} : vector<32x32xbf16> to vector<8x32xbf16>
    %638 = arith.truncf %636 : vector<16x8xf32> to vector<16x8xbf16>
    %cst_319 = arith.constant dense<0.000000e+00> : vector<16x32xf32>
    %639 = tpu.matmul %638, %637, %cst_319 {dimension_numbers = #tpu.dot_dimension_numbers<[1], [0], [0], [1], [0, 0, 1, 1], [], []>} : vector<16x8xbf16>, vector<8x32xbf16>, vector<16x32xf32> -> vector<16x32xf32>
    %640 = arith.addf %619, %639 : vector<16x32xf32>
    %c0_320 = arith.constant 0 : index
    %c0_321 = arith.constant 0 : index
    %641 = vector.load %arg32[%c0_320, %c0_321] : memref<1x32xf32, #tpu.memory_space<vmem>>, vector<1x32xf32>
    %642 = vector.broadcast %641 : vector<1x32xf32> to vector<16x32xf32>
    %643 = arith.addf %640, %642 : vector<16x32xf32>
    %644 = arith.addf %520, %643 : vector<16x32xf32>
    %cst_322 = arith.constant dense<0.000000e+00> : vector<16xf32>
    %645 = vector.multi_reduction <add>, %644, %cst_322 [1] : vector<16x32xf32> to vector<16xf32>
    %646 = vector.shape_cast %645 : vector<16xf32> to vector<16x1xf32>
    %cst_323 = arith.constant 3.200000e+01 : f32
    %647 = vector.broadcast %cst_323 : f32 to vector<16x1xf32>
    %648 = arith.divf %646, %647 : vector<16x1xf32>
    %649 = vector.broadcast %648 : vector<16x1xf32> to vector<16x32xf32>
    %650 = arith.subf %644, %649 : vector<16x32xf32>
    %651 = arith.mulf %650, %650 : vector<16x32xf32>
    %cst_324 = arith.constant dense<0.000000e+00> : vector<16xf32>
    %652 = vector.multi_reduction <add>, %651, %cst_324 [1] : vector<16x32xf32> to vector<16xf32>
    %653 = vector.shape_cast %652 : vector<16xf32> to vector<16x1xf32>
    %cst_325 = arith.constant 3.200000e+01 : f32
    %654 = vector.broadcast %cst_325 : f32 to vector<16x1xf32>
    %655 = arith.divf %653, %654 : vector<16x1xf32>
    %cst_326 = arith.constant 9.99999997E-7 : f32
    %656 = vector.broadcast %cst_326 : f32 to vector<16x1xf32>
    %657 = arith.addf %655, %656 : vector<16x1xf32>
    %658 = math.rsqrt %657 : vector<16x1xf32>
    %659 = vector.broadcast %658 : vector<16x1xf32> to vector<16x32xf32>
    %660 = arith.mulf %650, %659 : vector<16x32xf32>
    %c0_327 = arith.constant 0 : index
    %c0_328 = arith.constant 0 : index
    %661 = vector.load %arg33[%c0_327, %c0_328] : memref<32x64xbf16, #tpu.memory_space<vmem>>, vector<32x64xbf16>
    %662 = arith.truncf %660 : vector<16x32xf32> to vector<16x32xbf16>
    %cst_329 = arith.constant dense<0.000000e+00> : vector<16x64xf32>
    %663 = tpu.matmul %662, %661, %cst_329 {dimension_numbers = #tpu.dot_dimension_numbers<[1], [0], [0], [1], [0, 0, 1, 1], [], []>} : vector<16x32xbf16>, vector<32x64xbf16>, vector<16x64xf32> -> vector<16x64xf32>
    %c0_330 = arith.constant 0 : index
    %c0_331 = arith.constant 0 : index
    %664 = vector.load %arg34[%c0_330, %c0_331] : memref<1x64xf32, #tpu.memory_space<vmem>>, vector<1x64xf32>
    %665 = vector.broadcast %664 : vector<1x64xf32> to vector<16x64xf32>
    %666 = arith.addf %663, %665 : vector<16x64xf32>
    %c0_332 = arith.constant 0 : index
    %c0_333 = arith.constant 0 : index
    %c0_334 = arith.constant 0 : index
    %667 = vector.load %arg35[%c0_332, %c0_333, %c0_334] : memref<1x16x64xf32, #tpu.memory_space<vmem>>, vector<1x16x64xf32>
    %668 = vector.shape_cast %667 : vector<1x16x64xf32> to vector<16x64xf32>
    %669 = vector.shape_cast %666 : vector<16x64xf32> to vector<1x16x64xf32>
    tpu.vector_store %arg35[%c0_332, %c0_333, %c0_334], %669 {strides = array<i32>} : memref<1x16x64xf32, #tpu.memory_space<vmem>>, vector<1x16x64xf32>,
    return
  }
  func.func @transform_0(%arg0: i32) -> (i32, i32, i32) {
    %c0_i32 = arith.constant 0 : i32
    %c0_i32_0 = arith.constant 0 : i32
    %c0_i32_1 = arith.constant 0 : i32
    return %arg0, %c0_i32, %c0_i32_0 : i32, i32, i32
  }
  func.func @transform_1(%arg0: i32) -> (i32, i32, i32) {
    %c0_i32 = arith.constant 0 : i32
    %c0_i32_0 = arith.constant 0 : i32
    %c0_i32_1 = arith.constant 0 : i32
    return %arg0, %c0_i32, %c0_i32_0 : i32, i32, i32
  }
  func.func @transform_2(%arg0: i32) -> (i32, i32, i32) {
    %c0_i32 = arith.constant 0 : i32
    %c0_i32_0 = arith.constant 0 : i32
    %c0_i32_1 = arith.constant 0 : i32
    return %arg0, %c0_i32, %c0_i32_0 : i32, i32, i32
  }
  func.func @transform_3(%arg0: i32) -> (i32, i32) {
    %c0_i32 = arith.constant 0 : i32
    %c0_i32_0 = arith.constant 0 : i32
    %c0_i32_1 = arith.constant 0 : i32
    return %c0_i32, %c0_i32_0 : i32, i32
  }
  func.func @transform_4(%arg0: i32) -> (i32, i32) {
    %c0_i32 = arith.constant 0 : i32
    %c0_i32_0 = arith.constant 0 : i32
    %c0_i32_1 = arith.constant 0 : i32
    return %c0_i32, %c0_i32_0 : i32, i32
  }
  func.func @transform_5(%arg0: i32) -> (i32, i32) {
    %c0_i32 = arith.constant 0 : i32
    %c0_i32_0 = arith.constant 0 : i32
    %c0_i32_1 = arith.constant 0 : i32
    return %c0_i32, %c0_i32_0 : i32, i32
  }
  func.func @transform_6(%arg0: i32) -> (i32, i32) {
    %c0_i32 = arith.constant 0 : i32
    %c0_i32_0 = arith.constant 0 : i32
    %c0_i32_1 = arith.constant 0 : i32
    return %c0_i32, %c0_i32_0 : i32, i32
  }
  func.func @transform_7(%arg0: i32) -> (i32, i32) {
    %c0_i32 = arith.constant 0 : i32
    %c0_i32_0 = arith.constant 0 : i32
    %c0_i32_1 = arith.constant 0 : i32
    return %c0_i32, %c0_i32_0 : i32, i32
  }
  func.func @transform_8(%arg0: i32) -> (i32, i32) {
    %c0_i32 = arith.constant 0 : i32
    %c0_i32_0 = arith.constant 0 : i32
    %c0_i32_1 = arith.constant 0 : i32
    return %c0_i32, %c0_i32_0 : i32, i32
  }
  func.func @transform_9(%arg0: i32) -> (i32, i32) {
    %c0_i32 = arith.constant 0 : i32
    %c0_i32_0 = arith.constant 0 : i32
    %c0_i32_1 = arith.constant 0 : i32
    return %c0_i32, %c0_i32_0 : i32, i32
  }
  func.func @transform_10(%arg0: i32) -> (i32, i32) {
    %c0_i32 = arith.constant 0 : i32
    %c0_i32_0 = arith.constant 0 : i32
    %c0_i32_1 = arith.constant 0 : i32
    return %c0_i32, %c0_i32_0 : i32, i32
  }
  func.func @transform_11(%arg0: i32) -> (i32, i32) {
    %c0_i32 = arith.constant 0 : i32
    %c0_i32_0 = arith.constant 0 : i32
    %c0_i32_1 = arith.constant 0 : i32
    return %c0_i32, %c0_i32_0 : i32, i32
  }
  func.func @transform_12(%arg0: i32) -> (i32, i32) {
    %c0_i32 = arith.constant 0 : i32
    %c0_i32_0 = arith.constant 0 : i32
    %c0_i32_1 = arith.constant 0 : i32
    return %c0_i32, %c0_i32_0 : i32, i32
  }
  func.func @transform_13(%arg0: i32) -> (i32, i32) {
    %c0_i32 = arith.constant 0 : i32
    %c0_i32_0 = arith.constant 0 : i32
    %c0_i32_1 = arith.constant 0 : i32
    return %c0_i32, %c0_i32_0 : i32, i32
  }
  func.func @transform_14(%arg0: i32) -> (i32, i32, i32) {
    %c0_i32 = arith.constant 0 : i32
    %c0_i32_0 = arith.constant 0 : i32
    %c0_i32_1 = arith.constant 0 : i32
    %c0_i32_2 = arith.constant 0 : i32
    return %c0_i32, %c0_i32_0, %c0_i32_1 : i32, i32, i32
  }
  func.func @transform_15(%arg0: i32) -> (i32, i32, i32) {
    %c0_i32 = arith.constant 0 : i32
    %c0_i32_0 = arith.constant 0 : i32
    %c0_i32_1 = arith.constant 0 : i32
    %c0_i32_2 = arith.constant 0 : i32
    return %c0_i32, %c0_i32_0, %c0_i32_1 : i32, i32, i32
  }
  func.func @transform_16(%arg0: i32) -> (i32, i32, i32) {
    %c0_i32 = arith.constant 0 : i32
    %c0_i32_0 = arith.constant 0 : i32
    %c0_i32_1 = arith.constant 0 : i32
    %c0_i32_2 = arith.constant 0 : i32
    return %c0_i32, %c0_i32_0, %c0_i32_1 : i32, i32, i32
  }
  func.func @transform_17(%arg0: i32) -> (i32, i32, i32) {
    %c0_i32 = arith.constant 0 : i32
    %c0_i32_0 = arith.constant 0 : i32
    %c0_i32_1 = arith.constant 0 : i32
    %c0_i32_2 = arith.constant 0 : i32
    return %c0_i32, %c0_i32_0, %c0_i32_1 : i32, i32, i32
  }
  func.func @transform_18(%arg0: i32) -> (i32, i32, i32) {
    %c0_i32 = arith.constant 0 : i32
    %c0_i32_0 = arith.constant 0 : i32
    %c0_i32_1 = arith.constant 0 : i32
    %c0_i32_2 = arith.constant 0 : i32
    return %c0_i32, %c0_i32_0, %c0_i32_1 : i32, i32, i32
  }
  func.func @transform_19(%arg0: i32) -> (i32, i32, i32) {
    %c0_i32 = arith.constant 0 : i32
    %c0_i32_0 = arith.constant 0 : i32
    %c0_i32_1 = arith.constant 0 : i32
    %c0_i32_2 = arith.constant 0 : i32
    return %c0_i32, %c0_i32_0, %c0_i32_1 : i32, i32, i32
  }
  func.func @transform_20(%arg0: i32) -> (i32, i32, i32) {
    %c0_i32 = arith.constant 0 : i32
    %c0_i32_0 = arith.constant 0 : i32
    %c0_i32_1 = arith.constant 0 : i32
    %c0_i32_2 = arith.constant 0 : i32
    return %c0_i32, %c0_i32_0, %c0_i32_1 : i32, i32, i32
  }
  func.func @transform_21(%arg0: i32) -> (i32, i32, i32) {
    %c0_i32 = arith.constant 0 : i32
    %c0_i32_0 = arith.constant 0 : i32
    %c0_i32_1 = arith.constant 0 : i32
    %c0_i32_2 = arith.constant 0 : i32
    return %c0_i32, %c0_i32_0, %c0_i32_1 : i32, i32, i32
  }
  func.func @transform_22(%arg0: i32) -> (i32, i32, i32) {
    %c0_i32 = arith.constant 0 : i32
    %c0_i32_0 = arith.constant 0 : i32
    %c0_i32_1 = arith.constant 0 : i32
    %c0_i32_2 = arith.constant 0 : i32
    return %c0_i32, %c0_i32_0, %c0_i32_1 : i32, i32, i32
  }
  func.func @transform_23(%arg0: i32) -> (i32, i32, i32) {
    %c0_i32 = arith.constant 0 : i32
    %c0_i32_0 = arith.constant 0 : i32
    %c0_i32_1 = arith.constant 0 : i32
    %c0_i32_2 = arith.constant 0 : i32
    return %c0_i32, %c0_i32_0, %c0_i32_1 : i32, i32, i32
  }
  func.func @transform_24(%arg0: i32) -> (i32, i32) {
    %c0_i32 = arith.constant 0 : i32
    %c0_i32_0 = arith.constant 0 : i32
    %c0_i32_1 = arith.constant 0 : i32
    return %c0_i32, %c0_i32_0 : i32, i32
  }
  func.func @transform_25(%arg0: i32) -> (i32, i32) {
    %c0_i32 = arith.constant 0 : i32
    %c0_i32_0 = arith.constant 0 : i32
    %c0_i32_1 = arith.constant 0 : i32
    return %c0_i32, %c0_i32_0 : i32, i32
  }
  func.func @transform_26(%arg0: i32) -> (i32, i32) {
    %c0_i32 = arith.constant 0 : i32
    %c0_i32_0 = arith.constant 0 : i32
    %c0_i32_1 = arith.constant 0 : i32
    return %c0_i32, %c0_i32_0 : i32, i32
  }
  func.func @transform_27(%arg0: i32) -> (i32, i32) {
    %c0_i32 = arith.constant 0 : i32
    %c0_i32_0 = arith.constant 0 : i32
    %c0_i32_1 = arith.constant 0 : i32
    return %c0_i32, %c0_i32_0 : i32, i32
  }
  func.func @transform_28(%arg0: i32) -> (i32, i32) {
    %c0_i32 = arith.constant 0 : i32
    %c0_i32_0 = arith.constant 0 : i32
    %c0_i32_1 = arith.constant 0 : i32
    return %c0_i32, %c0_i32_0 : i32, i32
  }
  func.func @transform_29(%arg0: i32) -> (i32, i32) {
    %c0_i32 = arith.constant 0 : i32
    %c0_i32_0 = arith.constant 0 : i32
    %c0_i32_1 = arith.constant 0 : i32
    return %c0_i32, %c0_i32_0 : i32, i32
  }
  func.func @transform_30(%arg0: i32) -> (i32, i32) {
    %c0_i32 = arith.constant 0 : i32
    %c0_i32_0 = arith.constant 0 : i32
    %c0_i32_1 = arith.constant 0 : i32
    return %c0_i32, %c0_i32_0 : i32, i32
  }
  func.func @transform_31(%arg0: i32) -> (i32, i32) {
    %c0_i32 = arith.constant 0 : i32
    %c0_i32_0 = arith.constant 0 : i32
    %c0_i32_1 = arith.constant 0 : i32
    return %c0_i32, %c0_i32_0 : i32, i32
  }
  func.func @transform_32(%arg0: i32) -> (i32, i32) {
    %c0_i32 = arith.constant 0 : i32
    %c0_i32_0 = arith.constant 0 : i32
    %c0_i32_1 = arith.constant 0 : i32
    return %c0_i32, %c0_i32_0 : i32, i32
  }
  func.func @transform_33(%arg0: i32) -> (i32, i32) {
    %c0_i32 = arith.constant 0 : i32
    %c0_i32_0 = arith.constant 0 : i32
    %c0_i32_1 = arith.constant 0 : i32
    return %c0_i32, %c0_i32_0 : i32, i32
  }
  func.func @transform_34(%arg0: i32) -> (i32, i32, i32) {
    %c0_i32 = arith.constant 0 : i32
    %c0_i32_0 = arith.constant 0 : i32
    %c0_i32_1 = arith.constant 0 : i32
    return %arg0, %c0_i32, %c0_i32_0 : i32, i32, i32
  }
}

</mosaic_0001>

<bundles_post_ra>
// kernel: pan_dit_forward.1
= control target key start
LH: loop header
LB: loop body
LE: loop exit
PB: predicated region body
PF: predicated region fallthrough
CT: control target
= control target key end

     0   :  { %s5261_s6 = smov 1   ;;  %s5262_s10 = smov 2   ;;  %s6075_s0 = inlined_call_operand.smem [shape: u32[35], index: -1, kind: input, shape index: {}] }
   0x1   :  { %s5307_s5 = sld [smem:[%s6075_s0]]   ;;  %s5263_s14 = smov 3  }
   0x2   :  { %s5312_s9 = sld [smem:[%s6075_s0 + %s5261_s6]]   ;;  %s5264_s18 = smov 4  }
   0x3   :  { %s5317_s13 = sld [smem:[%s6075_s0 + %s5262_s10]]   ;;  %s5265_s22 = smov 5  }
   0x4   :  { %s5322_s17 = sld [smem:[%s6075_s0 + %s5263_s14]]   ;;  %s5266_s26 = smov 6  }
   0x5   :  { %s5327_s21 = sld [smem:[%s6075_s0 + %s5264_s18]]   ;;  %s5267_s30 = smov 7  }
   0x6   :  { %s5332_s25 = sld [smem:[%s6075_s0 + %s5265_s22]]   ;;  %s5268_s4 = smov 8  }
   0x7   :  { %6098 = sst [smem:[#allocation2_spill]] %s5307_s5  ;;  %s5269_s10 = smov 9  }
   0x8   :  { %s5337_s29 = sld [smem:[%s6075_s0 + %s5266_s26]]   ;;  %s5270_s15 = smov 10  }
   0x9   :  { %s5342_s3 = sld [smem:[%s6075_s0 + %s5267_s30]]   ;;  %s5271_s20 = smov 11  }
   0xa   :  { %s5347_s8 = sld [smem:[%s6075_s0 + %s5268_s4]]   ;;  %s5272_s26 = smov 12  }
   0xb   :  { %s5352_s14 = sld [smem:[%s6075_s0 + %s5269_s10]]   ;;  %s5273_s1 = smov 13  }
   0xc   :  { %s5357_s19 = sld [smem:[%s6075_s0 + %s5270_s15]]   ;;  %s5274_s7 = smov 14  }
   0xd   :  { %s5362_s24 = sld [smem:[%s6075_s0 + %s5271_s20]]   ;;  %s5275_s15 = smov 15  }
   0xe   :  { %s5367_s30 = sld [smem:[%s6075_s0 + %s5272_s26]]   ;;  %s5276_s22 = smov 16  }
   0xf   :  { %6099 = sst [smem:[#allocation3_spill]] %s5342_s3  ;;  %s5277_s28 = smov 17  }
  0x10   :  { %s5372_s6 = sld [smem:[%s6075_s0 + %s5273_s1]]  }
  0x11   :  { %6100 = sst [smem:[#allocation4_spill]] %s5352_s14 }
  0x12   :  { %s5377_s12 = sld [smem:[%s6075_s0 + %s5274_s7]]   ;;  %s5278_s7 = smov 18  }
  0x13   :  { %s5382_s20 = sld [smem:[%s6075_s0 + %s5275_s15]]   ;;  %s5279_s15 = smov 19  }
  0x14   :  { %s5387_s27 = sld [smem:[%s6075_s0 + %s5276_s22]]   ;;  %s5280_s22 = smov 20  }
  0x15   :  { %s5392_s4 = sld [smem:[%s6075_s0 + %s5277_s28]]   ;;  %s5281_s28 = smov 21  }
  0x16   :  { %6101 = sst [smem:[#allocation5_spill]] %s5372_s6 }
  0x17   :  { %s5397_s14 = sld [smem:[%s6075_s0 + %s5278_s7]]   ;;  %s5282_s7 = smov 22  }
  0x19   :  { %6102 = sst [smem:[#allocation6_spill]] %s5382_s20 }
  0x1a   :  { %6103 = sst [smem:[#allocation7_spill]] %s5387_s27 }
  0x1b   :  { %6104 = sst [smem:[#allocation8_spill]] %s5392_s4 }
  0x1c   :  { %s5402_s20 = sld [smem:[%s6075_s0 + %s5279_s15]]   ;;  %s5283_s15 = smov 23  }
  0x1d   :  { %6105 = sst [smem:[#allocation9_spill]] %s5397_s14 }
  0x1e   :  { %s5407_s27 = sld [smem:[%s6075_s0 + %s5280_s22]]   ;;  %s5284_s22 = smov 24  }
  0x1f   :  { %s5412_s4 = sld [smem:[%s6075_s0 + %s5281_s28]]   ;;  %s5285_s28 = smov 25  }
  0x20   :  { %s5417_s14 = sld [smem:[%s6075_s0 + %s5282_s7]]   ;;  %s5286_s7 = smov 26  }
  0x22   :  { %6106 = sst [smem:[#allocation10_spill]] %s5402_s20 }
  0x23   :  { %s5422_s20 = sld [smem:[%s6075_s0 + %s5283_s15]]   ;;  %s5287_s15 = smov 27  }
  0x24   :  { %6107 = sst [smem:[#allocation11_spill]] %s5407_s27 }
  0x25   :  { %6108 = sst [smem:[#allocation12_spill]] %s5412_s4 }
  0x26   :  { %6109 = sst [smem:[#allocation13_spill]] %s5417_s14 }
  0x27   :  { %s5427_s27 = sld [smem:[%s6075_s0 + %s5284_s22]]   ;;  %s5288_s22 = smov 28  }
  0x28   :  { %s5432_s4 = sld [smem:[%s6075_s0 + %s5285_s28]]   ;;  %s5289_s28 = smov 29  }
  0x29   :  { %6110 = sst [smem:[#allocation14_spill]] %s5422_s20 }
  0x2a   :  { %s5437_s14 = sld [smem:[%s6075_s0 + %s5286_s7]]   ;;  %s5290_s7 = smov 30  }
  0x2b   :  { %s5442_s20 = sld [smem:[%s6075_s0 + %s5287_s15]]   ;;  %s5291_s15 = smov 31  }
  0x2d   :  { %6111 = sst [smem:[#allocation15_spill]] %s5427_s27 }
  0x2e   :  { %6112 = sst [smem:[#allocation16_spill]] %s5432_s4 }
  0x2f   :  { %s5447_s27 = sld [smem:[%s6075_s0 + %s5288_s22]]   ;;  %s5292_s22 = smov 32  }
  0x30   :  { %6113 = sst [smem:[#allocation17_spill]] %s5437_s14 }
  0x31   :  { %6114 = sst [smem:[#allocation18_spill]] %s5442_s20 }
  0x32   :  { %s5452_s4 = sld [smem:[%s6075_s0 + %s5289_s28]]   ;;  %s5293_s28 = smov 33  }
  0x33   :  { %s5457_s14 = sld [smem:[%s6075_s0 + %s5290_s7]]   ;;  %s5294_s7 = smov 34  }
  0x34   :  { %s5462_s20 = sld [smem:[%s6075_s0 + %s5291_s15]]   ;;  %s5479_s15 = smov 0  }
  0x35   :  { %6115 = sst [smem:[#allocation19_spill]] %s5447_s27 }
  0x36   :  { %s5467_s27 = sld [smem:[%s6075_s0 + %s5292_s22]]  }
  0x38   :  { %6116 = sst [smem:[#allocation20_spill]] %s5452_s4 }
  0x39   :  { %6117 = sst [smem:[#allocation21_spill]] %s5457_s14 }
  0x3a   :  { %s5472_s4 = sld [smem:[%s6075_s0 + %s5293_s28]]  }
  0x3b   :  { %s5477_s14 = sld [smem:[%s6075_s0 + %s5294_s7]]  }
  0x3c LB: > { %s4325_s16 = sadd.s32 4294967295, %s5259_s15   ;;  %p4329_p0 = scmp.ge.s32.totalorder %s5259_s15, 1  ;;  %s5259_s15 = sphi %s5479_s15, %s79_s15  }
  0x3d   : > { %p965_p1 = scmp.lt.s32.totalorder %s5259_s15, 3 }
  0x3f   : > { %p966_p2 = pnand %p4329_p0, %p965_p1 }
  0x40   : > { %s6118_s5 = sld [smem:[#allocation2_spill]] (!%p966_p2)  ;;  %p1059_p3 = scmp.lt.s32.totalorder (!%p966_p2), %s4325_s16, 1 }
  0x41   : > { %969 = sbr.rel (%p966_p2) target bundleno = 5956 (0x1744), region = 156  ;;  %s6119_s3 = sld [smem:[#allocation3_spill]] (!%p966_p2) }
  0x42   : > { %s6120_s6 = sld [smem:[#allocation5_spill]] (!%p966_p2)  ;;  %s6091_s2 = smov (!%p966_p2), 120  }
  0x43   : > { %s6121_s26 = sld [smem:[#allocation7_spill]] (!%p966_p2)  ;;  %s6093_s7 = smov (!%p966_p2), 112  }
  0x44   : > { %s6122_s28 = sld [smem:[#allocation6_spill]] (!%p966_p2)  ;;  %s6089_s10 = smov (!%p966_p2), 104  }
  0x45   : > { %s6123_s1 = sld [smem:[#allocation8_spill]] (!%p966_p2) }
  0x46   : > { %v4917_v0 = vld [vmem:[%s5322_s17 + $0x18] sm:$0xff]  ;;  %v4922_v1 = vld [vmem:[%s5337_s29 + $0x20] sm:$0xff]  ;;  %v4929_v2 = vld [vmem:[%s5357_s19 + $0x8] sm:$0xff]  ;;  %s6142_s16 = smov (!%p1059_p3, %s4325_s16), 1  ;;  %vm1285_vm0 = vcmask 261120   ;;  %vm1119_vm1 = vcmask 523264  }
  0x47   : > { %1127 = vmatpush.bf16.msra.mxu0 %v4917_v0  ;;  %1189 = vmatpush.bf16.msra.mxu1 %v4922_v1  ;;  %v4916_v3 = vld [vmem:[%s5322_s17 + $0x10] sm:$0xff]  ;;  %v4921_v4 = vld [vmem:[%s5337_s29 + $0x18] sm:$0xff]  ;;  %v4928_v5 = vld [vmem:[%s5357_s19] sm:$0xff]  ;;  %s1071_s0 = scalar_lea.vmem %s5317_s13, %s6142_s16  ;;  %s5494_s18 = sshll.u32 %s6142_s16, 4  ;;  %vm1182_vm2 = vcmask 654336   ;;  %v5295_v0 = vmov 32.0  }
  0x48   : > { %1295 = vmatpush.bf16.msra.mxu3 %v4929_v2  ;;  %v1266_v6 = vld [vmem:[%s1071_s0] sm:$0x1]  ;;  %s1063_s22 = scalar_lea.vmem %s6118_s5, %s5494_s18  ;;  %v4915_v8 = vld [vmem:[%s5322_s17 + $0x8] sm:$0xff]  ;;  %v4920_v9 = vld [vmem:[%s5337_s29 + $0x10] sm:$0xff]  ;;  %s1068_s23 = scalar_lea.vmem %s5312_s9, %s5494_s18 }
  0x49   : > { %v1271_v7 = vpack.c.bf16 %v1266_v6, %v1266_v6  ;;  %v4914_v10 = vld [vmem:[%s5322_s17] sm:$0xff]  ;;  %v1079_v12 = vld [vmem:[%s1063_s22 + $0x8] sm:$0xff]  ;;  %v4937_v19 = vld [vmem:[%s5367_s30 + $0x38] sm:$0xff]  ;;  %s6124_s11 = sld [smem:[#allocation9_spill]] }
  0x4a   : > { %v1078_v11 = vld [vmem:[%s1063_s22] sm:$0xff]  ;;  %v4919_v13 = vld [vmem:[%s5337_s29 + $0x8] sm:$0xff]  ;;  %v4936_v20 = vld [vmem:[%s5367_s30 + $0x30] sm:$0xff]  ;;  %s6125_s16 = sld [smem:[#allocation10_spill]] }
  0x4b   : > { %1128 = vmatpush.bf16.msra.mxu0 %v4916_v3  ;;  %1190 = vmatpush.bf16.msra.mxu1 %v4921_v4  ;;  %v1090_v14 = vpack.c.bf16 %v1079_v12, %v1078_v11  ;;  %v4918_v15 = vld [vmem:[%s5337_s29] sm:$0xff]  ;;  %v1081_v17 = vld [vmem:[%s1068_s23 + $0x8] sm:$0xff]  ;;  %v4933_v23 = vld [vmem:[%s5367_s30 + $0x18] sm:$0xff]  ;;  %s6126_s0 = sld [smem:[#allocation11_spill]] }
  0x4c   : > { %1296 = vmatpush.bf16.msra.mxu3 %v4928_v5  ;;  %v1080_v16 = vld [vmem:[%s1068_s23] sm:$0xff]  ;;  %v4935_v21 = vld [vmem:[%s5367_s30 + $0x28] sm:$0xff]  ;;  %v4932_v24 = vld [vmem:[%s5367_s30 + $0x10] sm:$0xff]  ;;  %s6127_s22 = sld [smem:[#allocation13_spill]] }
  0x4d   : > { %v5507_v18 = vpack.c.bf16 %v1081_v17, %v1080_v16  ;;  %v4934_v22 = vld [vmem:[%s5367_s30 + $0x20] sm:$0xff]  ;;  %v4931_v25 = vld [vmem:[%s5367_s30 + $0x8] sm:$0xff]  ;;  %s6128_s23 = sld [smem:[#allocation12_spill]] }
  0x4e   : > { %v1272_v26 = vld [vmem:[%s5362_s24] sm:$0x1]  ;;  %v1138_v42 = vld [vmem:[%s5332_s25 + $0x8] sm:$0xff]  ;;  %s6134_s5 = sld [smem:[#allocation4_spill]] }
  0x4f   : > { %4403 = vmatmul.msk.bf16.vlgmr.msra.gmra.mxu3 %vm1285_vm0, %v1271_v7  ;;  %1129 = vmatpush.bf16.msra.mxu0 %v4915_v8  ;;  %v5095_v27 = vld [vmem:[%s5327_s21] ss:$0 sm:$0xff] }
  0x50   : > { %1191 = vmatpush.bf16.msra.mxu1 %v4920_v9  ;;  %1388 = vmatpush.bf16.msrb.mxu3 %v4937_v19  ;;  %v4930_v28 = vld [vmem:[%s5367_s30] sm:$0xff]  ;;  %v4925_v19 = vld [vmem:[%s5347_s8 + $0x10] sm:$0xff] }
  0x51   : > { %v1137_v32 = vld [vmem:[%s5332_s25] sm:$0xff] }
  0x52   : > { %v5096_v36 = vld [vmem:[%s6119_s3] ss:$0 sm:$0xff]  ;;  %s6133_s3 = sld [smem:[#allocation17_spill]] }
  0x53   : > { %1130 = vmatpush.bf16.msra.mxu0 %v4914_v10  ;;  %v4927_v3 = vld [vmem:[%s5347_s8 + $0x20] sm:$0xff] }
  0x54   : > { %1192 = vmatpush.bf16.msra.mxu1 %v4919_v13  ;;  %1389 = vmatpush.bf16.msrb.mxu3 %v4936_v20 }
  0x55   : > { %1255 = vmatpush.bf16.msra.mxu2 %v4927_v3 }
  0x56   : > { %4352 = vmatmul.msk.bf16.vlgmr.msra.gmra.mxu0 %vm1119_vm1, %v1090_v14 }
  0x58   : > { %1193 = vmatpush.bf16.msra.mxu1 %v4918_v15  ;;  %1390 = vmatpush.bf16.msrb.mxu3 %v4935_v21  ;;  %v4926_v15 = vld [vmem:[%s5347_s8 + $0x18] sm:$0xff]  ;;  %v4924_v21 = vld [vmem:[%s5347_s8 + $0x8] sm:$0xff] }
  0x59   : > { %1256 = vmatpush.bf16.msra.mxu2 %v4926_v15 }
  0x5b   : > { %4373 = vmatmul.msk.bf16.vlgmr.msra.gmra.mxu1 %vm1182_vm2, %v5507_v18 }
  0x5c   : > { %1391 = vmatpush.bf16.msrb.mxu3 %v4934_v22  ;;  %v4923_v22 = vld [vmem:[%s5347_s8] sm:$0xff] }
  0x5d   : > { %1257 = vmatpush.bf16.msra.mxu2 %v4925_v19 }
  0x60   : > { %1392 = vmatpush.bf16.msrb.mxu3 %v4933_v23  ;;  %v4939_v23 = vld [vmem:[%s5377_s12 + $0x8] sm:$0xff] }
  0x61   : > { %1258 = vmatpush.bf16.msra.mxu2 %v4924_v21  ;;  %1448 = vmatpush.bf16.msrb.mxu0 %v4939_v23  ;;  %v4451_v21 = vld [vmem:[%s6122_s28 + $0x1] sm:$0x1] }
  0x64   : > { %1393 = vmatpush.bf16.msrb.mxu3 %v4932_v24  ;;  %v4941_v24 = vld [vmem:[%s5377_s12 + $0x18] sm:$0xff] }
  0x65   : > { %1259 = vmatpush.bf16.msra.mxu2 %v4923_v22  ;;  %1480 = vmatpush.bf16.msrb.mxu1 %v4941_v24  ;;  %v1426_v22 = vld [vmem:[%s6122_s28] sm:$0x1] }
  0x68   : > { %1394 = vmatpush.bf16.msrb.mxu3 %v4931_v25  ;;  %4394 = vmatmul.msk.bf16.vlgmr.msra.gmra.mxu2 %vm1182_vm2, %v5507_v18  ;;  %v4943_v25 = vld [vmem:[%s5377_s12 + $0x28] sm:$0xff] }
  0x69   : > { %1512 = vmatpush.bf16.msrb.mxu2 %v4943_v25 }
  0x6c   : > { %1395 = vmatpush.bf16.msrb.mxu3 %v4930_v28  ;;  %v4940_v28 = vld [vmem:[%s5377_s12 + $0x10] sm:$0xff] }
  0x6d   : > { %1481 = vmatpush.bf16.msrb.mxu1 %v4940_v28 }
  0xd2   : > { %v1298_v29 = vpop.f32.mrf.mxu3 }
  0xd3   : > { %v1299_v30 = vadd.f32 %v1298_v29, %v1272_v26  ;;  %v1132_v31 = vpop.f32.mrf.mxu0  ;;  %v1339_v26 = vld [vmem:[%s6120_s6] sm:$0x1]  ;;  %s6135_s6 = sld [smem:[#allocation15_spill]] }
  0xd4   : > { %v1133_v33 = vadd.f32 %v5095_v27, %v1132_v31  ;;  %v4942_v29 = vld [vmem:[%s5377_s12 + $0x20] sm:$0xff] }
  0xd5   : > { %v4404_v34 = vmul.f32 -1.442695, %v1299_v30  ;;  %1513 = vmatpush.bf16.msrb.mxu2 %v4942_v29 }
  0xd6   : > { %v1139_v35 = vadd.f32 %v1137_v32, %v1133_v33  ;;  %v4945_v32 = vld [vmem:[%s5377_s12 + $0x38] sm:$0xff]  ;;  %v4947_v33 = vld [vmem:[%s5377_s12 + $0x48] sm:$0xff] }
  0xd7   : > { %5115 = vpow2.f32 %v4404_v34  ;;  %v4949_v34 = vld [vmem:[%s5377_s12 + $0x58] sm:$0xff]  ;;  %1576 = vmatpush.bf16.msra.mxu1 %v4947_v33 }
  0xd8   : > { %v1195_v37 = vpop.f32.mrf.mxu1 }
  0xd9   : > { %v1200_v38 = vadd.f32 %v1195_v37, %v1139_v35  ;;  %v4944_v35 = vld [vmem:[%s5377_s12 + $0x30] sm:$0xff]  ;;  %1608 = vmatpush.bf16.msra.mxu2 %v4949_v34 }
  0xda   : > { %v1300_v39 = vpop.f32.mrf.mxu3  ;;  %v4948_v37 = vld [vmem:[%s5377_s12 + $0x50] sm:$0xff] }
  0xdb   : > { %v5523_v40 = vadd.f32 %v5096_v36, %v1200_v38  ;;  %v1134_v41 = vpop.f32.mrf.mxu0 }
  0xdc   : > { %v1135_v43 = vadd.f32 %v5095_v27, %v1134_v41  ;;  %v4938_v27 = vld [vmem:[%s5377_s12] sm:$0xff] }
  0xdd   : > { %v5116_v44 = vpop.eup %5115  ;;  %v1615_v45 = vsel %vm1285_vm0, %v5523_v40, 0.0  ;;  %1449 = vmatpush.bf16.msrb.mxu0 %v4938_v27  ;;  %1609 = vmatpush.bf16.msra.mxu2 %v4948_v37 }
  0xde   : > { %v1305_v46 = vadd.f32 1.0, %v5116_v44  ;;  %1616 = vadd.xlane.f32.xlu0 %v1615_v45  ;;  %v1140_v47 = vadd.f32 %v1138_v42, %v1135_v43 }
  0xe0   : > { %5117 = vrcp.f32 %v1305_v46  ;;  %v1197_v48 = vpop.f32.mrf.mxu1  ;;  %v1317_v55 = vand.u32 2147483648, %v1305_v46  ;;  %v1315_v57 = vand.u32 2147483647, %v1305_v46  ;;  %vm1311_vm4 = vweird.f32 %v1305_v46 }
  0xe1   : > { %v1201_v49 = vadd.f32 %v1197_v48, %v1140_v47  ;;  %5119 = vrcp.f32 %v5295_v0  ;;  %1544 = vmatpush.bf16.msra.mxu0 %v4945_v32  ;;  %v4950_v0 = vld [vmem:[%s6121_s26] sm:$0xff] }
  0xe2   : > { %v1318_v59 = vor.u32 1.1754944e-38, %v1317_v55  ;;  %vm1316_vm6 = vcmp.eq.f32.partialorder %v1315_v57, 8.507059e+37 }
  0xe3   : > { %v5528_v50 = vadd.f32 %v5096_v36, %v1201_v49  ;;  %v4946_v36 = vld [vmem:[%s5377_s12 + $0x40] sm:$0xff] }
  0xe4   : > { %1577 = vmatpush.bf16.msra.mxu1 %v4946_v36 }
  0xe5   : > { %v1618_v51 = vsel %vm1285_vm0, %v5528_v50, 0.0  ;;  %1545 = vmatpush.bf16.msra.mxu0 %v4944_v35 }
  0xe6   : > { %v5118_v52 = vpop.eup %5117  ;;  %1619 = vadd.xlane.f32.xlu0 %v1618_v51 }
  0xe7   : > { %v1307_v53 = vmul.f32 %v5118_v52, %v1305_v46  ;;  %vm1312_vm3 = vweird.f32 %v5118_v52  ;;  %v5120_v1 = vpop.eup %5119 }
  0xe8   : > { %vm1313_vm5 = vmor %vm1311_vm4, %vm1312_vm3  ;;  %v1622_v2 = vmul.f32 32.0, %v5120_v1  ;;  %vm1626_vm7 = vweird.f32 %v5120_v1  ;;  %vm1789_vm4 = vcmask 64512  }
  0xe9   : > { %v1308_v54 = vsub.f32 1.0, %v1307_v53 }
  0xea   : > { %v1623_v4 = vsub.f32 1.0, %v1622_v2  ;;  %v4954_v2 = vld [vmem:[%s6121_s26 + $0x20] sm:$0xff] }
  0xeb   : > { %v1309_v56 = vmul.f32 %v5118_v52, %v1308_v54 }
  0xec   : > { %v1624_v5 = vmul.f32 %v5120_v1, %v1623_v4 }
  0xed   : > { %v1310_v58 = vadd.f32 %v5118_v52, %v1309_v56 }
  0xee   : > { %v1625_v6 = vadd.f32 %v5120_v1, %v1624_v5 }
  0xef   : > { %v1314_v60 = vsel %vm1313_vm5, %v5118_v52, %v1310_v58  ;;  %vm1825_vm5 = vcmask 130048  }
  0xf0   : > { %v1319_v61 = vsel %vm1316_vm6, %v1318_v59, %v1314_v60  ;;  %v5533_v7 = vsel %vm1626_vm7, %v5120_v1, %v1625_v6  ;;  %v4952_v1 = vld [vmem:[%s6121_s26 + $0x10] sm:$0xff]  ;;  %vm1980_vm6 = vcmask 1043456  }
  0xf1   : > { %v1321_v62 = vmul.f32 %v1319_v61, %v1299_v30  ;;  %v4951_v61 = vld [vmem:[%s6121_s26 + $0x8] sm:$0xff] }
  0xf2   : > { %1703 = vmatpush.bf16.msra.mxu3 %v4951_v61 }
  0xf3   : > { %v1338_v63 = vpack.c.bf16 %v1321_v62, %v1321_v62  ;;  %v4953_v62 = vld [vmem:[%s6121_s26 + $0x18] sm:$0xff] }
  0xf5   : > { %1396 = vmatmul.bf16.vlgmr.msrb.gmra.mxu3 %v1338_v63  ;;  %v4955_v63 = vld [vmem:[%s6121_s26 + $0x28] sm:$0xff] }
  0xf6   : > { %1704 = vmatpush.bf16.msra.mxu3 %v4950_v0 }
 0x151   : > { %v1617_v8 = vpop.xlane.xlu0 %1616 }
 0x152   : > { %v1628_v9 = vmul.f32 %v5533_v7, %v1617_v8 }
 0x154   : > { %v5537_v10 = vsub.f32 %v5523_v40, %v1628_v9 }
 0x156   : > { %v1632_v11 = vmul.f32 %v5537_v10, %v5537_v10 }
 0x158   : > { %v1634_v12 = vsel %vm1285_vm0, %v1632_v11, 0.0  ;;  %v5590_v11 = vpop.f32.mrf.mxu2 }
 0x159   : > { %1635 = vadd.xlane.f32.xlu1 %v1634_v12  ;;  %v1620_v13 = vpop.xlane.xlu0 %1619 }
 0x15a   : > { %v1629_v14 = vmul.f32 %v5533_v7, %v1620_v13 }
 0x15c   : > { %v5545_v16 = vsub.f32 %v5528_v50, %v1629_v14 }
 0x15e   : > { %v1633_v17 = vmul.f32 %v5545_v16, %v5545_v16 }
 0x160   : > { %v1637_v20 = vsel %vm1285_vm0, %v1633_v17, 0.0  ;;  %v5592_v17 = vpop.f32.mrf.mxu2 }
 0x161   : > { %1638 = vadd.xlane.f32.xlu1 %v1637_v20 }
 0x178   : > { %v1397_v30 = vpop.f32.mrf.mxu3 }
 0x179   : > { %v1398_v18 = vadd.f32 %v1397_v30, %v1339_v26 }
 0x17b   : > { %v4437_v31 = vmul.f32 -1.442695, %v1398_v18 }
 0x17d   : > { %5121 = vpow2.f32 %v4437_v31 }
 0x180   : > { %v1399_v38 = vpop.f32.mrf.mxu3 }
 0x183   : > { %v5122_v39 = vpop.eup %5121 }
 0x184   : > { %v1404_v41 = vadd.f32 1.0, %v5122_v39 }
 0x186   : > { %5123 = vrcp.f32 %v1404_v41  ;;  %v1416_v45 = vand.u32 2147483648, %v1404_v41  ;;  %v1414_v47 = vand.u32 2147483647, %v1404_v41  ;;  %vm1410_vm9 = vweird.f32 %v1404_v41 }
 0x188   : > { %v1417_v49 = vor.u32 1.1754944e-38, %v1416_v45  ;;  %vm1415_vm11 = vcmp.eq.f32.partialorder %v1414_v47, 8.507059e+37  ;;  %v5098_v47 = vld [vmem:[%s6123_s1 + $0x1] ss:$0 sm:$0xff] }
 0x18c   : > { %v5124_v42 = vpop.eup %5123 }
 0x18d   : > { %v1406_v43 = vmul.f32 %v5124_v42, %v1404_v41  ;;  %vm1411_vm8 = vweird.f32 %v5124_v42 }
 0x18e   : > { %vm1412_vm10 = vmor %vm1410_vm9, %vm1411_vm8 }
 0x18f   : > { %v1407_v44 = vsub.f32 1.0, %v1406_v43 }
 0x191   : > { %v1408_v46 = vmul.f32 %v5124_v42, %v1407_v44 }
 0x193   : > { %v1409_v48 = vadd.f32 %v5124_v42, %v1408_v46 }
 0x195   : > { %v1413_v51 = vsel %vm1412_vm10, %v5124_v42, %v1409_v48 }
 0x196   : > { %v1418_v52 = vsel %vm1415_vm11, %v1417_v49, %v1413_v51 }
 0x197   : > { %v1420_v53 = vmul.f32 %v1418_v52, %v1398_v18  ;;  %v5100_v52 = vld [vmem:[%s6123_s1] ss:$0 sm:$0xff] }
 0x199   : > { %v5568_v54 = vpack.c.bf16 %v1420_v53, %v1420_v53  ;;  %v5099_v53 = vld [vmem:[%s6123_s1 + $0x2] ss:$0 sm:$0xff] }
 0x19b   : > { %4446 = vmatmul.msk.bf16.vlgmr.msrb.gmra.mxu0 %vm1285_vm0, %v5568_v54  ;;  %4460 = vmatmul.msk.bf16.vlgmr.msrb.gmra.mxu1 %vm1285_vm0, %v5568_v54 }
 0x19c   : > { %4474 = vmatmul.msk.bf16.vlgmr.msrb.gmra.mxu2 %vm1285_vm0, %v5568_v54  ;;  %1739 = vmatpush.bf16.msrb.mxu0 %v4953_v62 }
 0x19d   : > { %1775 = vmatpush.bf16.msrb.mxu1 %v4955_v63 }
 0x1a0   : > { %1740 = vmatpush.bf16.msrb.mxu0 %v4952_v1 }
 0x1a1   : > { %1776 = vmatpush.bf16.msrb.mxu1 %v4954_v2 }
 0x1ab   : > { %4488 = vmatmul.msk.bf16.vlgmr.msra.gmra.mxu0 %vm1285_vm0, %v5568_v54  ;;  %4502 = vmatmul.msk.bf16.vlgmr.msra.gmra.mxu1 %vm1285_vm0, %v5568_v54 }
 0x1ac   : > { %4516 = vmatmul.msk.bf16.vlgmr.msra.gmra.mxu2 %vm1285_vm0, %v5568_v54 }
 0x1cc   : > { %v1636_v55 = vpop.xlane.xlu1 %1635 }
 0x1cd   : > { %v1640_v57 = vmul.f32 %v1636_v55, %v5533_v7 }
 0x1cf   : > { %v1642_v59 = vadd.f32 1e-06, %v1640_v57 }
 0x1d1   : > { %5125 = vrsqrt.f32 %v1642_v59  ;;  %vm1650_vm14 = vweird.f32 %v1642_v59 }
 0x1d4   : > { %v1639_v56 = vpop.xlane.xlu1 %1638 }
 0x1d5   : > { %v1641_v58 = vmul.f32 %v1639_v56, %v5533_v7 }
 0x1d7   : > { %v1643_v60 = vadd.f32 1e-06, %v1641_v58  ;;  %v5126_v3 = vpop.eup %5125 }
 0x1d8   : > { %v1645_v5 = vmul.f32 %v5126_v3, %v1642_v59  ;;  %vm1651_vm12 = vweird.f32 %v5126_v3 }
 0x1d9   : > { %5127 = vrsqrt.f32 %v1643_v60  ;;  %vm1652_vm15 = vmor %vm1650_vm14, %vm1651_vm12  ;;  %vm1660_vm2 = vweird.f32 %v1643_v60 }
 0x1da   : > { %v1646_v8 = vmul.f32 %v5126_v3, %v1645_v5 }
 0x1dc   : > { %v1647_v12 = vmul.f32 0.5, %v1646_v8  ;;  %v1783_v8 = vld [vmem:[%s6124_s11] sm:$0xf] }
 0x1de   : > { %v1648_v14 = vsub.f32 1.5, %v1647_v12 }
 0x1df   : > { %v5128_v4 = vpop.eup %5127 }
 0x1e0   : > { %v1655_v6 = vmul.f32 %v5128_v4, %v1643_v60  ;;  %v1649_v19 = vmul.f32 %v5126_v3, %v1648_v14  ;;  %vm1661_vm13 = vweird.f32 %v5128_v4 }
 0x1e1   : > { %vm1662_vm3 = vmor %vm1660_vm2, %vm1661_vm13 }
 0x1e2   : > { %v1656_v9 = vmul.f32 %v5128_v4, %v1655_v6  ;;  %v1653_v26 = vsel %vm1652_vm15, %v5126_v3, %v1649_v19 }
 0x1e3   : > { %v1664_v30 = vmul.f32 %v1653_v26, %v5537_v10 }
 0x1e4   : > { %v1657_v13 = vmul.f32 0.5, %v1656_v9  ;;  %v2002_v9 = vsel %vm1980_vm6, %v1783_v8, 0 }
 0x1e6   : > { %v1658_v15 = vsub.f32 1.5, %v1657_v13 }
 0x1e8   : > { %v1659_v20 = vmul.f32 %v5128_v4, %v1658_v15 }
 0x1ea   : > { %v1663_v27 = vsel %vm1662_vm3, %v5128_v4, %v1659_v20 }
 0x1eb   : > { %v1665_v18 = vmul.f32 %v1663_v27, %v5545_v16 }
 0x218   : > { %v1451_v23 = vpop.f32.mrf.mxu0  ;;  %v1483_v24 = vpop.f32.mrf.mxu1 }
 0x219   : > { %v1484_v25 = vadd.f32 %v4451_v21, %v1483_v24  ;;  %v1452_v28 = vadd.f32 %v1451_v23, %v1426_v22 }
 0x21b   : > { %v1666_v29 = vadd.f32 1.0, %v1484_v25  ;;  %v1670_v32 = vperm.slane %v1452_v28, 0 }
 0x21d   : > { %v1667_v31 = vperm.slane %v1666_v29, 0 }
 0x21f   : > { %v1668_v33 = vmul.f32 %v1667_v31, %v1664_v30  ;;  %v1669_v34 = vmul.f32 %v1667_v31, %v1665_v18  ;;  %v5598_v35 = vpop.f32.mrf.mxu2 }
 0x220   : > { %v1453_v36 = vpop.f32.mrf.mxu0  ;;  %v1485_v37 = vpop.f32.mrf.mxu1 }
 0x221   : > { %v1671_v38 = vadd.f32 %v1670_v32, %v1668_v33  ;;  %v1672_v39 = vadd.f32 %v1670_v32, %v1669_v34 }
 0x223   : > { %v1677_v41 = vpack.c.bf16 %v1672_v39, %v1671_v38 }
 0x225   : > { %4525 = vmatmul.msk.bf16.vlgmr.msra.gmra.mxu3 %vm1285_vm0, %v1677_v41  ;;  %4539 = vmatmul.msk.bf16.vlgmr.msrb.gmra.mxu0 %vm1285_vm0, %v1677_v41 }
 0x226   : > { %4553 = vmatmul.msk.bf16.vlgmr.msrb.gmra.mxu1 %vm1285_vm0, %v1677_v41 }
 0x227   : > { %v1517_v10 = vpop.f32.mrf.mxu2 }
 0x228   : > { %v5603_v16 = vpop.f32.mrf.mxu0  ;;  %v5605_v42 = vpop.f32.mrf.mxu1 }
 0x22f   : > { %v5607_v43 = vpop.f32.mrf.mxu2 }
 0x230   : > { %v1549_v44 = vpop.f32.mrf.mxu0  ;;  %v1581_v45 = vpop.f32.mrf.mxu1 }
 0x237   : > { %v1613_v46 = vpop.f32.mrf.mxu2 }
 0x2a2   : > { %v1742_v48 = vpop.f32.mrf.mxu0 }
 0x2a3   : > { %v1743_v49 = vadd.f32 %v5098_v47, %v1742_v48  ;;  %v1778_v51 = vpop.f32.mrf.mxu1 }
 0x2a4   : > { %v1779_v61 = vadd.f32 %v5099_v53, %v1778_v51 }
 0x2a5   : > { %1882 = vrot.lane.b32.xlu0 %v1743_v49, %s6091_s2 }
 0x2a8   : > { %v1706_v55 = vpop.f32.mrf.mxu3 }
 0x2a9   : > { %v1707_v56 = vadd.f32 %v5100_v52, %v1706_v55 }
 0x2aa   : > { %v1744_v57 = vpop.f32.mrf.mxu0 }
 0x2ab   : > { %v5613_v58 = vmul.f32 0.35355338, %v1707_v56  ;;  %v1745_v59 = vadd.f32 %v5098_v47, %v1744_v57  ;;  %v1780_v60 = vpop.f32.mrf.mxu1 }
 0x2ac   : > { %v1781_v62 = vadd.f32 %v5099_v53, %v1780_v60 }
 0x2ad   : > { %4554 = vmatpush.xpose.msk.msrb.mxu2 %vm1789_vm4, %v1745_v59  ;;  %2024 = vrot.lane.b32.xlu0 %v1745_v59, %s6093_s7 }
 0x2ae   : > { %1858 = vmatpush.msrb.mxu3 %v1781_v62  ;;  %1878 = vrot.lane.b32.xlu1 %v5613_v58, %s6091_s2  ;;  %v5619_v63 = vpack.i.bf16 %v1779_v61, %v1781_v62 }
 0x2b0   : > { %1859 = vmatpush.msrb.mxu3 %v1779_v61  ;;  %v1708_v0 = vpop.f32.mrf.mxu3 }
 0x2b1   : > { %4555 = vmatpush.xpose.msk.msrb.mxu2 %vm1789_vm4, %v1743_v49  ;;  %v1709_v1 = vadd.f32 %v5100_v52, %v1708_v0 }
 0x2b2   : > { %2011 = vmatpush.bf16.msra.mxu3 %v2002_v9 }
 0x2b3   : > { %v1788_v2 = vmul.f32 0.35355338, %v1709_v1 }
 0x2b4   : > { %4556 = vmatmul.msk.f32.vlgmr.msrb.gmra.mxu2 %vm1789_vm4, %v5613_v58 }
 0x2b5   : > { %2141 = vrot.lane.b32.xlu0 %v1743_v49, %s6089_s10 }
 0x2b6   : > { %2022 = vrot.lane.b32.xlu1 %v1743_v49, %s6093_s7 }
 0x2bc   : > { %4557 = vmatmul.msk.f32.gmra.mxu2 %vm1789_vm4, %v1788_v2 }
 0x317   : > { %v1883_v21 = vpop.permute.xlu0 %1882 }
 0x31f   : > { %v2025_v28 = vpop.permute.xlu0 %2024 }
 0x320   : > { %v1879_v24 = vpop.permute.xlu1 %1878 }
 0x327   : > { %v2142_v31 = vpop.permute.xlu0 %2141 }
 0x328   : > { %v2023_v30 = vpop.permute.xlu1 %2022 }
 0x337   : > { %v1819_v3 = vpop.f32.mrf.mxu2 }
 0x338   : > { %v1826_v4 = vsel %vm1825_vm5, %v1819_v3, -inf }
 0x339   : > { %1827 = vmax.xlane.f32.xlu2 %v1826_v4 }
 0x33f   : > { %v1822_v5 = vpop.f32.mrf.mxu2 }
 0x340   : > { %v1829_v6 = vsel %vm1825_vm5, %v1822_v5, -inf }
 0x341   : > { %1830 = vmax.xlane.f32.xlu2 %v1829_v6 }
 0x359   : > { %1884 = vrot.lane.b32.xlu2 %v1745_v59, %s6091_s2 }
 0x361   : > { %1880 = vrot.lane.b32.xlu2 %v1788_v2, %s6091_s2 }
 0x369   : > { %2143 = vrot.lane.b32.xlu2 %v1745_v59, %s6089_s10 }
 0x371   : > { %2018 = vrot.lane.b32.xlu2 %v5613_v58, %s6093_s7 }
 0x379   : > { %2139 = vrot.lane.b32.xlu2 %v1788_v2, %s6089_s10 }
 0x381   : > { %5051 = vrot.lane.b32.xlu2 %v5619_v63, %s6091_s2 }
 0x3ac   : > { %v1828_v12 = vpop.xlane.xlu2 %1827 }
 0x3ad   : > { %v1832_v13 = vsub.f32 %v1819_v3, %v1828_v12 }
 0x3af   : > { %v1834_v14 = vmul.f32 1.442695, %v1832_v13 }
 0x3b1   : > { %5129 = vpow2.f32 %v1834_v14 }
 0x3b4   : > { %v1831_v15 = vpop.xlane.xlu2 %1830 }
 0x3b5   : > { %v1833_v19 = vsub.f32 %v1822_v5, %v1831_v15 }
 0x3b7   : > { %v5130_v20 = vpop.eup %5129  ;;  %v1836_v22 = vmul.f32 1.442695, %v1833_v19 }
 0x3b8   : > { %4558 = vmatmul.msk.f32.vlgmr.msrb.gmra.mxu3 %vm1825_vm5, %v5130_v20  ;;  %v1867_v23 = vsel %vm1825_vm5, %v5130_v20, 0.0 }
 0x3b9   : > { %5131 = vpow2.f32 %v1836_v22  ;;  %1868 = vadd.xlane.f32.xlu0 %v1867_v23 }
 0x3bc   : > { %v1885_v25 = vpop.permute.xlu2 %1884 }
 0x3bd   : > { %4560 = vmatpush.xpose.msk.msra.mxu0 %vm1789_vm4, %v1885_v25  ;;  %5002 = vmatpush.xpose.msk.msra.mxu1 %vm1789_vm4, %v1885_v25 }
 0x3bf   : > { %v5132_v26 = vpop.eup %5131 }
 0x3c0   : > { %4559 = vmatmul.msk.f32.gmra.mxu3 %vm1825_vm5, %v5132_v26  ;;  %v1870_v27 = vsel %vm1825_vm5, %v5132_v26, 0.0 }
 0x3c1   : > { %1871 = vadd.xlane.f32.xlu1 %v1870_v27  ;;  %4561 = vmatpush.xpose.msk.msra.mxu0 %vm1789_vm4, %v1883_v21 }
 0x3c2   : > { %5003 = vmatpush.xpose.msk.msra.mxu1 %vm1789_vm4, %v1883_v21 }
 0x3c4   : > { %4562 = vmatmul.msk.f32.vlgmr.msra.gmra.mxu0 %vm1789_vm4, %v1879_v24  ;;  %v1881_v29 = vpop.permute.xlu2 %1880 }
 0x3c5   : > { %4568 = vmatpush.xpose.msk.msrb.mxu0 %vm1789_vm4, %v2025_v28  ;;  %4563 = vmatmul.msk.f32.vlgmr.msra.gmra.mxu1 %vm1789_vm4, %v1881_v29 }
 0x3c9   : > { %4569 = vmatpush.xpose.msk.msrb.mxu0 %vm1789_vm4, %v2023_v30 }
 0x3cc   : > { %v2144_v18 = vpop.permute.xlu2 %2143 }
 0x3cd   : > { %2020 = vrot.lane.b32.xlu0 %v1788_v2, %s6093_s7  ;;  %4575 = vmatpush.xpose.msk.msrb.mxu3 %vm1789_vm4, %v2144_v18 }
 0x3d1   : > { %4576 = vmatpush.xpose.msk.msrb.mxu3 %vm1789_vm4, %v2142_v31  ;;  %v4967_v31 = vld [vmem:[%s5377_s12 + $0x68] sm:$0xff] }
 0x3d4   : > { %v2019_v32 = vpop.permute.xlu2 %2018 }
 0x3d5   : > { %4570 = vmatmul.msk.f32.vlgmr.msrb.gmra.mxu0 %vm1789_vm4, %v2019_v32  ;;  %v4966_v32 = vld [vmem:[%s5377_s12 + $0x60] sm:$0xff] }
 0x3da   : > { %2137 = vrot.lane.b32.xlu1 %v5613_v58, %s6089_s10 }
 0x3dc   : > { %v2140_v33 = vpop.permute.xlu2 %2139 }
 0x3e4   : > { %v5052_v34 = vpop.permute.xlu2 %5051 }
 0x3e5   : > { %v5053_v36 = vunpack.i.l.bf16 %v5052_v34  ;;  %v5054_v37 = vunpack.i.h.bf16 %v5052_v34 }
 0x3e7   : > { %1957 = vmatpush.msrb.mxu1 %v5053_v36 }
 0x3e9   : > { %1958 = vmatpush.msrb.mxu1 %v5054_v37 }
 0x42c   : > { %v1869_v38 = vpop.xlane.xlu0 %1868 }
 0x42d   : > { %5133 = vrcp.f32 %v1869_v38  ;;  %v1784_v38 = vld [vmem:[%s6124_s11 + $0x4] sm:$0xf] }
 0x433   : > { %v5134_v45 = vpop.eup %5133 }
 0x434   : > { %v1872_v39 = vpop.xlane.xlu1 %1871 }
 0x435   : > { %5135 = vrcp.f32 %v1872_v39 }
 0x43b   : > { %v1861_v41 = vpop.f32.mrf.mxu3  ;;  %v5136_v48 = vpop.eup %5135 }
 0x43c   : > { %v1875_v52 = vmul.f32 %v5134_v45, %v1861_v41  ;;  %v1982_v41 = vsel %vm1980_vm6, %v1784_v38, 0 }
 0x43d   : > { %1991 = vmatpush.bf16.msra.mxu2 %v1982_v41 }
 0x43f   : > { %v2021_v10 = vpop.permute.xlu0 %2020 }
 0x440   : > { %4571 = vmatmul.msk.f32.gmra.mxu0 %vm1789_vm4, %v2021_v10 }
 0x441   : > { %v1911_v44 = vpop.f32.mrf.mxu0 }
 0x442   : > { %v1914_v46 = vpop.f32.mrf.mxu1  ;;  %v1917_v47 = vsel %vm1825_vm5, %v1911_v44, -inf }
 0x443   : > { %v1864_v49 = vpop.f32.mrf.mxu3  ;;  %1918 = vmax.xlane.f32.xlu1 %v1917_v47  ;;  %v1920_v51 = vsel %vm1825_vm5, %v1914_v46, -inf }
 0x444   : > { %v1876_v53 = vmul.f32 %v5136_v48, %v1864_v49  ;;  %1921 = vmax.xlane.f32.xlu0 %v1920_v51  ;;  %v4972_v51 = vld [vmem:[%s5377_s12 + $0x90] sm:$0xff] }
 0x446   : > { %v1877_v55 = vpack.c.bf16 %v1876_v53, %v1875_v52 }
 0x448   : > { %4567 = vmatmul.msk.bf16.vlgmr.msra.gmra.mxu3 %vm1789_vm4, %v1877_v55 }
 0x44c   : > { %v2138_v58 = vpop.permute.xlu1 %2137 }
 0x452   : > { %v2051_v56 = vpop.f32.mrf.mxu0 }
 0x453   : > { %v2057_v57 = vsel %vm1825_vm5, %v2051_v56, -inf }
 0x454   : > { %2058 = vmax.xlane.f32.xlu2 %v2057_v57 }
 0x458   : > { %4577 = vmatmul.msk.f32.vlgmr.msrb.gmra.mxu3 %vm1789_vm4, %v2138_v58 }
 0x460   : > { %4578 = vmatmul.msk.f32.gmra.mxu3 %vm1789_vm4, %v2140_v33 }
 0x46c   : > { %5061 = vrot.lane.b32.xlu2 %v5619_v63, %s6089_s10  ;;  %s6129_s10 = sld [smem:[#allocation14_spill]] }
 0x4b6   : > { %v1919_v59 = vpop.xlane.xlu1 %1918 }
 0x4b7   : > { %v1923_v60 = vsub.f32 %v1911_v44, %v1919_v59  ;;  %v1922_v61 = vpop.xlane.xlu0 %1921 }
 0x4b8   : > { %v1924_v0 = vsub.f32 %v1914_v46, %v1922_v61  ;;  %v4973_v46 = vld [vmem:[%s5377_s12 + $0x98] sm:$0xff] }
 0x4b9   : > { %v1925_v62 = vmul.f32 1.442695, %v1923_v60 }
 0x4ba   : > { %v1927_v3 = vmul.f32 1.442695, %v1924_v0 }
 0x4bb   : > { %5137 = vpow2.f32 %v1925_v62 }
 0x4bc   : > { %5139 = vpow2.f32 %v1927_v3  ;;  %v1786_v3 = vld [vmem:[%s6124_s11 + $0xc] sm:$0xf] }
 0x4bd   : > { %v2054_v1 = vpop.f32.mrf.mxu0 }
 0x4be   : > { %v2060_v2 = vsel %vm1825_vm5, %v2054_v1, -inf }
 0x4bf   : > { %2061 = vmax.xlane.f32.xlu1 %v2060_v2 }
 0x4c1   : > { %v5138_v4 = vpop.eup %5137 }
 0x4c2   : > { %4564 = vmatmul.msk.f32.vlgmr.msrb.gmra.mxu1 %vm1825_vm5, %v5138_v4  ;;  %v5140_v6 = vpop.eup %5139  ;;  %v1966_v22 = vsel %vm1825_vm5, %v5138_v4, 0.0  ;;  %v2238_v4 = vsel %vm1980_vm6, %v1786_v3, 0 }
 0x4c3   : > { %v1969_v25 = vsel %vm1825_vm5, %v5140_v6, 0.0 }
 0x4c7   : > { %v2059_v5 = vpop.xlane.xlu2 %2058 }
 0x4c8   : > { %v2063_v23 = vsub.f32 %v2051_v56, %v2059_v5 }
 0x4ca   : > { %4565 = vmatmul.msk.f32.gmra.mxu1 %vm1825_vm5, %v5140_v6  ;;  %v2065_v24 = vmul.f32 1.442695, %v2063_v23 }
 0x4cb   : > { %v5669_v8 = vpop.f32.mrf.mxu3 }
 0x4cc   : > { %5141 = vpow2.f32 %v2065_v24 }
 0x4cf   : > { %v5062_v9 = vpop.permute.xlu2 %5061 }
 0x4d0   : > { %v5063_v12 = vunpack.i.l.bf16 %v5062_v9  ;;  %v5064_v13 = vunpack.i.h.bf16 %v5062_v9  ;;  %v4969_v9 = vld [vmem:[%s5377_s12 + $0x78] sm:$0xff] }
 0x4d2   : > { %2214 = vmatpush.msra.mxu0 %v5063_v12 }
 0x4d3   : > { %v5671_v14 = vpop.f32.mrf.mxu3 }
 0x4d4   : > { %2215 = vmatpush.msra.mxu0 %v5064_v13  ;;  %v4968_v13 = vld [vmem:[%s5377_s12 + $0x70] sm:$0xff] }
 0x4d6   : > { %2487 = vmatpush.bf16.msrb.mxu0 %v4967_v31 }
 0x4d8   : > { %5056 = vrot.lane.b32.xlu1 %v5619_v63, %s6093_s7  ;;  %v5142_v63 = vpop.eup %5141 }
 0x4d9   : > { %v2104_v26 = vsel %vm1825_vm5, %v5142_v63, 0.0 }
 0x4da   : > { %2488 = vmatpush.bf16.msrb.mxu0 %v4966_v32  ;;  %v4974_v32 = vld [vmem:[%s5377_s12 + $0xa0] sm:$0xff] }
 0x4db   : > { %v2170_v15 = vpop.f32.mrf.mxu3 }
 0x4dc   : > { %v2176_v19 = vsel %vm1825_vm5, %v2170_v15, -inf }
 0x4dd   : > { %2177 = vmax.xlane.f32.xlu0 %v2176_v19 }
 0x4e3   : > { %v2173_v20 = vpop.f32.mrf.mxu3 }
 0x4e4   : > { %v2179_v21 = vsel %vm1825_vm5, %v2173_v20, -inf }
 0x4e5   : > { %2180 = vmax.xlane.f32.xlu0 %v2179_v21 }
 0x4ed   : > { %1967 = vadd.xlane.f32.xlu0 %v1966_v22 }
 0x4f5   : > { %1970 = vadd.xlane.f32.xlu0 %v1969_v25 }
 0x502   : > { %2105 = vadd.xlane.f32.xlu1 %v2104_v26 }
 0x532   : > { %v2062_v27 = vpop.xlane.xlu1 %2061 }
 0x533   : > { %v2064_v28 = vsub.f32 %v2054_v1, %v2062_v27  ;;  %v1785_v1 = vld [vmem:[%s6124_s11 + $0x8] sm:$0xf] }
 0x534   : > { %v2119_v2 = vsel %vm1980_vm6, %v1785_v1, 0 }
 0x535   : > { %v2067_v29 = vmul.f32 1.442695, %v2064_v28  ;;  %2128 = vmatpush.bf16.msrb.mxu2 %v2119_v2 }
 0x537   : > { %5143 = vpow2.f32 %v2067_v29 }
 0x53d   : > { %v5144_v30 = vpop.eup %5143 }
 0x53e   : > { %v2107_v18 = vsel %vm1825_vm5, %v5144_v30, 0.0 }
 0x53f   : > { %2108 = vadd.xlane.f32.xlu0 %v2107_v18  ;;  %v1960_v56 = vpop.f32.mrf.mxu1  ;;  %v4975_v18 = vld [vmem:[%s5377_s12 + $0xa8] sm:$0xff] }
 0x547   : > { %v1963_v60 = vpop.f32.mrf.mxu1 }
 0x54a   : > { %v5057_v33 = vpop.permute.xlu1 %5056 }
 0x54b   : > { %v5058_v34 = vunpack.i.l.bf16 %v5057_v33  ;;  %v5059_v36 = vunpack.i.h.bf16 %v5057_v33 }
 0x54d   : > { %2095 = vmatpush.msra.mxu1 %v5058_v34 }
 0x54f   : > { %2096 = vmatpush.msra.mxu1 %v5059_v36 }
 0x550   : > { %v2178_v37 = vpop.xlane.xlu0 %2177  ;;  %4572 = vmatmul.msk.f32.vlgmr.msra.gmra.mxu1 %vm1825_vm5, %v5142_v63 }
 0x551   : > { %v2182_v39 = vsub.f32 %v2170_v15, %v2178_v37  ;;  %2247 = vmatpush.bf16.msrb.mxu1 %v2238_v4 }
 0x553   : > { %v2184_v10 = vmul.f32 1.442695, %v2182_v39 }
 0x555   : > { %5145 = vpow2.f32 %v2184_v10  ;;  %2519 = vmatpush.bf16.msra.mxu1 %v4969_v9  ;;  %v4465_v10 = vld [vmem:[%s6122_s28 + $0x2] sm:$0x1] }
 0x558   : > { %v2181_v44 = vpop.xlane.xlu0 %2180  ;;  %4573 = vmatmul.msk.f32.gmra.mxu1 %vm1825_vm5, %v5144_v30 }
 0x559   : > { %v2183_v45 = vsub.f32 %v2173_v20, %v2181_v44  ;;  %2520 = vmatpush.bf16.msra.mxu1 %v4968_v13 }
 0x55b   : > { %v5146_v47 = vpop.eup %5145  ;;  %v2186_v48 = vmul.f32 1.442695, %v2183_v45  ;;  %v1516_v45 = vadd.f32 %v4465_v10, %v5598_v35 }
 0x55c   : > { %4579 = vmatmul.msk.f32.vlgmr.msra.gmra.mxu0 %vm1825_vm5, %v5146_v47  ;;  %v2223_v49 = vsel %vm1825_vm5, %v5146_v47, 0.0  ;;  %v5101_v47 = vld [vmem:[%s6125_s16] ss:$0 sm:$0xff] }
 0x55d   : > { %5147 = vpow2.f32 %v2186_v48  ;;  %2224 = vadd.xlane.f32.xlu2 %v2223_v49  ;;  %2583 = vmatpush.bf16.msra.mxu0 %v4973_v46 }
 0x560   : > { %v1968_v52 = vpop.xlane.xlu0 %1967 }
 0x561   : > { %2584 = vmatpush.bf16.msra.mxu0 %v4972_v51  ;;  %5149 = vrcp.f32 %v1968_v52  ;;  %v2262_v51 = vperm.slane %v1516_v45, 0 }
 0x563   : > { %v5148_v53 = vpop.eup %5147 }
 0x564   : > { %4580 = vmatmul.msk.f32.gmra.mxu0 %vm1825_vm5, %v5148_v53  ;;  %v2226_v55 = vsel %vm1825_vm5, %v5148_v53, 0.0 }
 0x565   : > { %2227 = vadd.xlane.f32.xlu0 %v2226_v55 }
 0x567   : > { %v5150_v58 = vpop.eup %5149 }
 0x568   : > { %v1971_v57 = vpop.xlane.xlu0 %1970  ;;  %v1974_v61 = vmul.f32 %v5150_v58, %v1960_v56 }
 0x569   : > { %5151 = vrcp.f32 %v1971_v57 }
 0x56c   : > { %4636 = vmatmul.msk.bf16.vlgmr.msrb.gmra.mxu0 %vm1285_vm0, %v5568_v54 }
 0x56f   : > { %v5152_v59 = vpop.eup %5151 }
 0x570   : > { %v1975_v62 = vmul.f32 %v5152_v59, %v1963_v60 }
 0x572   : > { %v1976_v0 = vpack.c.bf16 %v1975_v62, %v1974_v61 }
 0x574   : > { %4566 = vmatmul.msk.bf16.vlgmr.msra.gmra.mxu2 %vm1789_vm4, %v1976_v0 }
 0x575   : > { %v2106_v5 = vpop.xlane.xlu1 %2105 }
 0x576   : > { %5153 = vrcp.f32 %v2106_v5 }
 0x57c   : > { %4678 = vmatmul.msk.bf16.vlgmr.msra.gmra.mxu0 %vm1285_vm0, %v5568_v54  ;;  %v5154_v15 = vpop.eup %5153 }
 0x5b2   : > { %v2109_v6 = vpop.xlane.xlu0 %2108 }
 0x5b3   : > { %5155 = vrcp.f32 %v2109_v6 }
 0x5b9   : > { %v5156_v19 = vpop.eup %5155 }
 0x5cd   : > { %v2098_v12 = vpop.f32.mrf.mxu1 }
 0x5ce   : > { %v2112_v21 = vmul.f32 %v5154_v15, %v2098_v12 }
 0x5d0   : > { %v2225_v23 = vpop.xlane.xlu2 %2224 }
 0x5d1   : > { %5157 = vrcp.f32 %v2225_v23 }
 0x5d5   : > { %v2101_v20 = vpop.f32.mrf.mxu1 }
 0x5d6   : > { %v2113_v22 = vmul.f32 %v5156_v19, %v2101_v20  ;;  %v4957_v20 = vld [vmem:[%s6126_s0 + $0x8] sm:$0xff] }
 0x5d7   : > { %v5158_v26 = vpop.eup %5157  ;;  %2348 = vmatpush.bf16.msra.mxu2 %v4957_v20 }
 0x5d8   : > { %v2114_v24 = vpack.c.bf16 %v2113_v22, %v2112_v21  ;;  %v2228_v25 = vpop.xlane.xlu0 %2227 }
 0x5d9   : > { %v2217_v63 = vpop.f32.mrf.mxu0  ;;  %5159 = vrcp.f32 %v2228_v25  ;;  %v4971_v25 = vld [vmem:[%s5377_s12 + $0x88] sm:$0xff] }
 0x5da   : > { %4574 = vmatmul.msk.bf16.vlgmr.msrb.gmra.mxu2 %vm1789_vm4, %v2114_v24  ;;  %v2231_v29 = vmul.f32 %v5158_v26, %v2217_v63  ;;  %v4956_v24 = vld [vmem:[%s6126_s0] sm:$0xff] }
 0x5db   : > { %2349 = vmatpush.bf16.msra.mxu2 %v4956_v24 }
 0x5df   : > { %v5160_v27 = vpop.eup %5159  ;;  %2551 = vmatpush.bf16.msrb.mxu2 %v4971_v25 }
 0x5e1   : > { %v2220_v28 = vpop.f32.mrf.mxu0 }
 0x5e2   : > { %v2232_v30 = vmul.f32 %v5160_v27, %v2220_v28  ;;  %v4970_v27 = vld [vmem:[%s5377_s12 + $0x80] sm:$0xff] }
 0x5e3   : > { %2552 = vmatpush.bf16.msrb.mxu2 %v4970_v27 }
 0x5e4   : > { %v2233_v31 = vpack.c.bf16 %v2232_v30, %v2231_v29 }
 0x5e6   : > { %4581 = vmatmul.msk.bf16.vlgmr.msrb.gmra.mxu1 %vm1789_vm4, %v2233_v31 }
 0x5e7   : > { %2615 = vmatpush.bf16.msrb.mxu1 %v4975_v18 }
 0x5e9   : > { %v5708_v33 = vpop.f32.mrf.mxu0 }
 0x5eb   : > { %2616 = vmatpush.bf16.msrb.mxu1 %v4974_v32  ;;  %v4493_v32 = vld [vmem:[%s6122_s28 + $0x4] sm:$0x1] }
 0x5f1   : > { %v2492_v34 = vpop.f32.mrf.mxu0 }
 0x5f6   : > { %4650 = vmatmul.msk.bf16.vlgmr.msra.gmra.mxu1 %vm1285_vm0, %v5568_v54 }
 0x5f7   : > { %v1993_v38 = vpop.f32.mrf.mxu2 }
 0x5f8   : > { %v2014_v44 = vadd.f32 %v5669_v8, %v1993_v38 }
 0x5f9   : > { %v5712_v36 = vpop.f32.mrf.mxu0 }
 0x5ff   : > { %v1995_v39 = vpop.f32.mrf.mxu2 }
 0x600   : > { %v2016_v55 = vadd.f32 %v5671_v14, %v1995_v39 }
 0x601   : > { %v2588_v37 = vpop.f32.mrf.mxu0 }
 0x606   : > { %4692 = vmatmul.msk.bf16.vlgmr.msrb.gmra.mxu1 %vm1285_vm0, %v5568_v54 }
 0x65d   : > { %v2130_v41 = vpop.f32.mrf.mxu2 }
 0x65e   : > { %v2135_v46 = vadd.f32 %v2130_v41, %v2014_v44  ;;  %v1580_v41 = vadd.f32 %v4493_v32, %v5605_v42 }
 0x663   : > { %v2249_v48 = vpop.f32.mrf.mxu1 }
 0x664   : > { %v2254_v49 = vadd.f32 %v2249_v48, %v2135_v46  ;;  %v2311_v46 = vadd.f32 1.0, %v1580_v41 }
 0x665   : > { %v2132_v53 = vpop.f32.mrf.mxu2 }
 0x666   : > { %v2260_v52 = vadd.f32 %v5101_v47, %v2254_v49  ;;  %v2136_v57 = vadd.f32 %v2132_v53, %v2016_v55  ;;  %v2312_v53 = vperm.slane %v2311_v46, 0 }
 0x668   : > { %v2263_v56 = vmul.f32 %v2262_v51, %v2260_v52 }
 0x66a   : > { %v5722_v58 = vadd.f32 %v2263_v56, %v5523_v40 }
 0x66b   : > { %v2251_v59 = vpop.f32.mrf.mxu1 }
 0x66c   : > { %v2255_v60 = vadd.f32 %v2251_v59, %v2136_v57  ;;  %v2267_v8 = vsel %vm1285_vm0, %v5722_v58, 0.0 }
 0x66d   : > { %2268 = vadd.xlane.f32.xlu0 %v2267_v8 }
 0x66e   : > { %v2261_v35 = vadd.f32 %v5101_v47, %v2255_v60  ;;  %v4479_v47 = vld [vmem:[%s6122_s28 + $0x3] sm:$0x1] }
 0x66f   : > { %v1548_v52 = vadd.f32 %v4479_v47, %v5603_v16  ;;  %v4976_v16 = vld [vmem:[%s5377_s12 + $0xb0] sm:$0xff]  ;;  %v5103_v47 = vld [vmem:[%s6129_s10] ss:$0 sm:$0xff] }
 0x670   : > { %v2264_v61 = vmul.f32 %v2262_v51, %v2261_v35  ;;  %v4977_v35 = vld [vmem:[%s5377_s12 + $0xb8] sm:$0xff] }
 0x671   : > { %v2315_v57 = vperm.slane %v1548_v52, 0 }
 0x672   : > { %v5727_v62 = vadd.f32 %v2264_v61, %v5528_v50 }
 0x673   : > { %v5729_v0 = vpop.f32.mrf.mxu1 }
 0x674   : > { %v2270_v14 = vsel %vm1285_vm0, %v5727_v62, 0.0 }
 0x675   : > { %2271 = vadd.xlane.f32.xlu0 %v2270_v14  ;;  %v4965_v14 = vld [vmem:[%s6127_s22 + $0x38] sm:$0xff] }
 0x676   : > { %2443 = vmatpush.bf16.msra.mxu3 %v4965_v14 }
 0x67b   : > { %v2524_v40 = vpop.f32.mrf.mxu1 }
 0x67c   : > { %v4964_v40 = vld [vmem:[%s6127_s22 + $0x30] sm:$0xff] }
 0x67d   : > { %2444 = vmatpush.bf16.msra.mxu3 %v4964_v40 }
 0x683   : > { %v5733_v1 = vpop.f32.mrf.mxu1 }
 0x68b   : > { %v2620_v2 = vpop.f32.mrf.mxu1 }
 0x68c   : > { %v4963_v2 = vld [vmem:[%s6127_s22 + $0x28] sm:$0xff] }
 0x68d   : > { %2445 = vmatpush.bf16.msra.mxu3 %v4963_v2 }
 0x6e0   : > { %v2269_v3 = vpop.xlane.xlu0 %2268 }
 0x6e1   : > { %v2273_v4 = vmul.f32 %v2269_v3, %v5533_v7  ;;  %v4962_v3 = vld [vmem:[%s6127_s22 + $0x20] sm:$0xff] }
 0x6e2   : > { %2446 = vmatpush.bf16.msra.mxu3 %v4962_v3  ;;  %v4979_v3 = vld [vmem:[%s6121_s26 + $0x38] sm:$0xff] }
 0x6e3   : > { %v2275_v5 = vsub.f32 %v5722_v58, %v2273_v4  ;;  %v4961_v4 = vld [vmem:[%s6127_s22 + $0x18] sm:$0xff] }
 0x6e5   : > { %v2277_v6 = vmul.f32 %v2275_v5, %v2275_v5 }
 0x6e6   : > { %2447 = vmatpush.bf16.msra.mxu3 %v4961_v4  ;;  %v4981_v4 = vld [vmem:[%s6121_s26 + $0x48] sm:$0xff] }
 0x6e7   : > { %v2279_v50 = vsel %vm1285_vm0, %v2277_v6, 0.0  ;;  %v4959_v6 = vld [vmem:[%s6127_s22 + $0x8] sm:$0xff]  ;;  %2773 = vmatpush.bf16.msrb.mxu0 %v4981_v4 }
 0x6e8   : > { %2280 = vadd.xlane.f32.xlu0 %v2279_v50  ;;  %v2272_v9 = vpop.xlane.xlu0 %2271  ;;  %v5102_v50 = vld [vmem:[%s6128_s23] ss:$0 sm:$0xff] }
 0x6e9   : > { %v2274_v12 = vmul.f32 %v2272_v9, %v5533_v7 }
 0x6eb   : > { %v2276_v13 = vsub.f32 %v5727_v62, %v2274_v12  ;;  %v4958_v12 = vld [vmem:[%s6127_s22] sm:$0xff] }
 0x6ed   : > { %v2278_v15 = vmul.f32 %v2276_v13, %v2276_v13 }
 0x6ef   : > { %v2282_v19 = vsel %vm1285_vm0, %v2278_v15, 0.0 }
 0x6f0   : > { %2283 = vadd.xlane.f32.xlu0 %v2282_v19 }
 0x75b   : > { %v2281_v21 = vpop.xlane.xlu0 %2280 }
 0x75c   : > { %v2285_v22 = vmul.f32 %v2281_v21, %v5533_v7 }
 0x75e   : > { %v2287_v23 = vadd.f32 1e-06, %v2285_v22 }
 0x760   : > { %5161 = vrsqrt.f32 %v2287_v23  ;;  %vm2295_vm8 = vweird.f32 %v2287_v23 }
 0x763   : > { %v2284_v63 = vpop.xlane.xlu0 %2283 }
 0x764   : > { %v2286_v26 = vmul.f32 %v2284_v63, %v5533_v7 }
 0x766   : > { %v5162_v28 = vpop.eup %5161  ;;  %v2288_v29 = vadd.f32 1e-06, %v2286_v26 }
 0x767   : > { %v2290_v30 = vmul.f32 %v5162_v28, %v2287_v23  ;;  %vm2296_vm7 = vweird.f32 %v5162_v28 }
 0x768   : > { %5163 = vrsqrt.f32 %v2288_v29  ;;  %vm2297_vm9 = vmor %vm2295_vm8, %vm2296_vm7  ;;  %vm2305_vm11 = vweird.f32 %v2288_v29 }
 0x769   : > { %v2291_v18 = vmul.f32 %v5162_v28, %v2290_v30 }
 0x76b   : > { %v2292_v31 = vmul.f32 0.5, %v2291_v18 }
 0x76d   : > { %v2293_v34 = vsub.f32 1.5, %v2292_v31 }
 0x76e   : > { %v5164_v37 = vpop.eup %5163 }
 0x76f   : > { %v2294_v38 = vmul.f32 %v5162_v28, %v2293_v34  ;;  %v2300_v39 = vmul.f32 %v5164_v37, %v2288_v29  ;;  %vm2306_vm10 = vweird.f32 %v5164_v37 }
 0x770   : > { %vm2307_vm12 = vmor %vm2305_vm11, %vm2306_vm10 }
 0x771   : > { %v2301_v10 = vmul.f32 %v5164_v37, %v2300_v39  ;;  %v2298_v44 = vsel %vm2297_vm9, %v5162_v28, %v2294_v38 }
 0x772   : > { %v2309_v49 = vmul.f32 %v2298_v44, %v2275_v5  ;;  %v4960_v5 = vld [vmem:[%s6127_s22 + $0x10] sm:$0xff] }
 0x773   : > { %v2302_v45 = vmul.f32 0.5, %v2301_v10  ;;  %2448 = vmatpush.bf16.msra.mxu3 %v4960_v5  ;;  %v4983_v5 = vld [vmem:[%s6121_s26 + $0x58] sm:$0xff] }
 0x774   : > { %v2313_v55 = vmul.f32 %v2312_v53, %v2309_v49  ;;  %2809 = vmatpush.bf16.msra.mxu1 %v4983_v5 }
 0x775   : > { %v2303_v48 = vsub.f32 1.5, %v2302_v45  ;;  %v4507_v45 = vld [vmem:[%s6122_s28 + $0x5] sm:$0x1] }
 0x776   : > { %v2316_v60 = vadd.f32 %v2315_v57, %v2313_v55  ;;  %v1612_v46 = vadd.f32 %v4507_v45, %v5607_v43 }
 0x777   : > { %v2304_v51 = vmul.f32 %v5164_v37, %v2303_v48  ;;  %2449 = vmatpush.bf16.msra.mxu3 %v4959_v6 }
 0x778   : > { %v2457_v49 = vperm.slane %v1612_v46, 0 }
 0x779   : > { %v2308_v42 = vsel %vm2307_vm12, %v5164_v37, %v2304_v51 }
 0x77a   : > { %v2310_v56 = vmul.f32 %v2308_v42, %v2276_v13 }
 0x77b   : > { %2450 = vmatpush.bf16.msra.mxu3 %v4958_v12  ;;  %v4978_v12 = vld [vmem:[%s6121_s26 + $0x30] sm:$0xff] }
 0x77c   : > { %v2314_v59 = vmul.f32 %v2312_v53, %v2310_v56 }
 0x77e   : > { %v2317_v8 = vadd.f32 %v2315_v57, %v2314_v59 }
 0x77f   : > { %2737 = vmatpush.bf16.msrb.mxu3 %v4979_v3 }
 0x780   : > { %v2322_v61 = vpack.c.bf16 %v2317_v8, %v2316_v60 }
 0x782   : > { %4590 = vmatmul.msk.bf16.vlgmr.msra.gmra.mxu2 %vm1285_vm0, %v2322_v61 }
 0x783   : > { %2647 = vmatpush.bf16.msra.mxu2 %v4977_v35  ;;  %2738 = vmatpush.bf16.msrb.mxu3 %v4978_v12 }
 0x787   : > { %2648 = vmatpush.bf16.msra.mxu2 %v4976_v16 }
 0x792   : > { %4664 = vmatmul.msk.bf16.vlgmr.msrb.gmra.mxu2 %vm1285_vm0, %v5568_v54 }
 0x7a2   : > { %4706 = vmatmul.msk.bf16.vlgmr.msra.gmra.mxu2 %vm1285_vm0, %v5568_v54 }
 0x805   : > { %v2351_v9 = vpop.f32.mrf.mxu2 }
 0x806   : > { %v2352_v13 = vadd.f32 %v5102_v50, %v2351_v9 }
 0x808   : > { %v2356_v54 = vmul.f32 %v2352_v13, %v2352_v13 }
 0x80a   : > { %v2358_v15 = vmul.f32 %v2356_v54, %v2352_v13  ;;  %v4982_v54 = vld [vmem:[%s6121_s26 + $0x50] sm:$0xff] }
 0x80b   : > { %2810 = vmatpush.bf16.msra.mxu1 %v4982_v54 }
 0x80c   : > { %v2360_v19 = vmul.f32 0.044715, %v2358_v15 }
 0x80d   : > { %v2353_v20 = vpop.f32.mrf.mxu2 }
 0x80e   : > { %v2362_v21 = vadd.f32 %v2360_v19, %v2352_v13  ;;  %v2354_v22 = vadd.f32 %v5102_v50, %v2353_v20 }
 0x810   : > { %v2364_v23 = vmul.f32 0.7978846, %v2362_v21  ;;  %v2357_v24 = vmul.f32 %v2354_v22, %v2354_v22 }
 0x812   : > { %v2359_v25 = vmul.f32 %v2357_v24, %v2354_v22  ;;  %5165 = vtanh.f32 %v2364_v23 }
 0x814   : > { %v2361_v63 = vmul.f32 0.044715, %v2359_v25 }
 0x815   : > { %v5767_v26 = vpop.f32.mrf.mxu2 }
 0x816   : > { %v2363_v27 = vadd.f32 %v2361_v63, %v2354_v22 }
 0x818   : > { %v2365_v28 = vmul.f32 0.7978846, %v2363_v27  ;;  %v5166_v29 = vpop.eup %5165  ;;  %v4627_v27 = vld [vmem:[%s6122_s28 + $0x6] sm:$0x1] }
 0x819   : > { %v2368_v30 = vadd.f32 1.0, %v5166_v29 }
 0x81a   : > { %5167 = vtanh.f32 %v2365_v28 }
 0x81b   : > { %v2370_v32 = vmul.f32 0.5, %v2368_v30 }
 0x81d   : > { %v2556_v18 = vpop.f32.mrf.mxu2  ;;  %v2372_v38 = vmul.f32 %v2370_v32, %v2352_v13  ;;  %v4980_v13 = vld [vmem:[%s6121_s26 + $0x40] sm:$0xff]  ;;  %v2491_v32 = vadd.f32 %v4627_v27, %v5708_v33 }
 0x81e   : > { %2774 = vmatpush.bf16.msrb.mxu0 %v4980_v13 }
 0x820   : > { %v5168_v31 = vpop.eup %5167 }
 0x821   : > { %v2369_v34 = vadd.f32 1.0, %v5168_v31 }
 0x823   : > { %v2371_v37 = vmul.f32 0.5, %v2369_v34 }
 0x825   : > { %v2373_v39 = vmul.f32 %v2371_v37, %v2354_v22  ;;  %v5769_v41 = vpop.f32.mrf.mxu2  ;;  %v4641_v22 = vld [vmem:[%s6122_s28 + $0x7] sm:$0x1] }
 0x826   : > { %v2523_v25 = vadd.f32 %v4641_v22, %v5729_v0 }
 0x827   : > { %v2390_v10 = vpack.c.bf16 %v2373_v39, %v2372_v38 }
 0x828   : > { %v2698_v30 = vadd.f32 1.0, %v2523_v25 }
 0x829   : > { %2451 = vmatmul.bf16.vlgmr.msra.gmra.mxu3 %v2390_v10 }
 0x82a   : > { %v2699_v38 = vperm.slane %v2698_v30, 0 }
 0x82d   : > { %v2652_v44 = vpop.f32.mrf.mxu2 }
 0x82e   : > { %v2702_v44 = vperm.slane %v2491_v32, 0 }
 0x8ac   : > { %v2452_v48 = vpop.f32.mrf.mxu3 }
 0x8ad   : > { %v2453_v51 = vadd.f32 %v5103_v47, %v2452_v48 }
 0x8af   : > { %v2458_v52 = vmul.f32 %v2457_v49, %v2453_v51 }
 0x8b1   : > { %v5775_v53 = vadd.f32 %v2458_v52, %v5722_v58 }
 0x8b3   : > { %v2654_v42 = vsel %vm1285_vm0, %v5775_v53, 0.0 }
 0x8b4   : > { %v2454_v55 = vpop.f32.mrf.mxu3  ;;  %2655 = vadd.xlane.f32.xlu1 %v2654_v42  ;;  %v5104_v42 = vld [vmem:[%s6123_s1 + $0x4] ss:$0 sm:$0xff] }
 0x8b5   : > { %v2455_v56 = vadd.f32 %v5103_v47, %v2454_v55 }
 0x8b7   : > { %v2459_v57 = vmul.f32 %v2457_v49, %v2455_v56 }
 0x8b9   : > { %v5780_v59 = vadd.f32 %v2459_v57, %v5727_v62 }
 0x8bb   : > { %v2657_v43 = vsel %vm1285_vm0, %v5780_v59, 0.0 }
 0x8bc   : > { %2658 = vadd.xlane.f32.xlu2 %v2657_v43  ;;  %v5105_v43 = vld [vmem:[%s6123_s1 + $0x5] ss:$0 sm:$0xff] }
 0x927   : > { %v2656_v60 = vpop.xlane.xlu1 %2655 }
 0x928   : > { %v2660_v58 = vmul.f32 %v2656_v60, %v5533_v7 }
 0x92a   : > { %v2662_v8 = vsub.f32 %v5775_v53, %v2660_v58  ;;  %v5106_v58 = vld [vmem:[%s6123_s1 + $0x3] ss:$0 sm:$0xff]  ;;  %s6132_s1 = smov 112  }
 0x92c   : > { %v2664_v35 = vmul.f32 %v2662_v8, %v2662_v8 }
 0x92e   : > { %v2666_v61 = vsel %vm1285_vm0, %v2664_v35, 0.0 }
 0x92f   : > { %v2659_v16 = vpop.xlane.xlu2 %2658  ;;  %2667 = vadd.xlane.f32.xlu0 %v2666_v61 }
 0x930   : > { %v2661_v62 = vmul.f32 %v2659_v16, %v5533_v7 }
 0x932   : > { %v2663_v14 = vsub.f32 %v5780_v59, %v2661_v62 }
 0x934   : > { %v2665_v40 = vmul.f32 %v2663_v14, %v2663_v14 }
 0x936   : > { %v2669_v2 = vsel %vm1285_vm0, %v2665_v40, 0.0 }
 0x937   : > { %2670 = vadd.xlane.f32.xlu1 %v2669_v2 }
 0x9a2   : > { %v2668_v6 = vpop.xlane.xlu0 %2667 }
 0x9a3   : > { %v2672_v50 = vmul.f32 %v2668_v6, %v5533_v7 }
 0x9a5   : > { %v2674_v9 = vadd.f32 1e-06, %v2672_v50 }
 0x9a7   : > { %5169 = vrsqrt.f32 %v2674_v9  ;;  %vm2682_vm14 = vweird.f32 %v2674_v9 }
 0x9aa   : > { %v2671_v15 = vpop.xlane.xlu1 %2670 }
 0x9ab   : > { %v2673_v19 = vmul.f32 %v2671_v15, %v5533_v7 }
 0x9ad   : > { %v5170_v20 = vpop.eup %5169  ;;  %v2675_v21 = vadd.f32 1e-06, %v2673_v19 }
 0x9ae   : > { %v2677_v23 = vmul.f32 %v5170_v20, %v2674_v9  ;;  %vm2683_vm13 = vweird.f32 %v5170_v20 }
 0x9af   : > { %5171 = vrsqrt.f32 %v2675_v21  ;;  %vm2684_vm15 = vmor %vm2682_vm14, %vm2683_vm13  ;;  %vm2692_vm3 = vweird.f32 %v2675_v21 }
 0x9b0   : > { %v2678_v24 = vmul.f32 %v5170_v20, %v2677_v23 }
 0x9b2   : > { %v2679_v63 = vmul.f32 0.5, %v2678_v24 }
 0x9b4   : > { %v2680_v28 = vsub.f32 1.5, %v2679_v63 }
 0x9b5   : > { %v5172_v29 = vpop.eup %5171 }
 0x9b6   : > { %v2681_v18 = vmul.f32 %v5170_v20, %v2680_v28  ;;  %v2687_v31 = vmul.f32 %v5172_v29, %v2675_v21  ;;  %vm2693_vm2 = vweird.f32 %v5172_v29  ;;  %v4749_v21 = vld [vmem:[%s6124_s11 + $0x10] sm:$0xf] }
 0x9b7   : > { %vm2694_vm7 = vmor %vm2692_vm3, %vm2693_vm2  ;;  %v3034_v24 = vsel %vm1980_vm6, %v4749_v21, 0 }
 0x9b8   : > { %v2685_v34 = vsel %vm2684_vm15, %v5170_v20, %v2681_v18  ;;  %v2688_v37 = vmul.f32 %v5172_v29, %v2687_v31 }
 0x9b9   : > { %v2696_v39 = vmul.f32 %v2685_v34, %v2662_v8 }
 0x9ba   : > { %v2689_v10 = vmul.f32 0.5, %v2688_v37 }
 0x9bb   : > { %v2700_v0 = vmul.f32 %v2699_v38, %v2696_v39 }
 0x9bc   : > { %v2690_v45 = vsub.f32 1.5, %v2689_v10 }
 0x9bd   : > { %v2703_v46 = vadd.f32 %v2702_v44, %v2700_v0 }
 0x9be   : > { %v2691_v47 = vmul.f32 %v5172_v29, %v2690_v45 }
 0x9c0   : > { %v2695_v48 = vsel %vm2694_vm7, %v5172_v29, %v2691_v47 }
 0x9c1   : > { %v2697_v49 = vmul.f32 %v2695_v48, %v2663_v14 }
 0x9c3   : > { %v2701_v33 = vmul.f32 %v2699_v38, %v2697_v49 }
 0x9c5   : > { %v2704_v51 = vadd.f32 %v2702_v44, %v2701_v33 }
 0x9c7   : > { %v2710_v52 = vpack.c.bf16 %v2704_v51, %v2703_v46 }
 0x9c9   : > { %4720 = vmatmul.msk.bf16.vlgmr.msrb.gmra.mxu3 %vm1285_vm0, %v2710_v52  ;;  %4734 = vmatmul.msk.bf16.vlgmr.msrb.gmra.mxu0 %vm1285_vm0, %v2710_v52 }
 0x9ca   : > { %4748 = vmatmul.msk.bf16.vlgmr.msra.gmra.mxu1 %vm1285_vm0, %v2710_v52 }
 0xa46   : > { %v2776_v55 = vpop.f32.mrf.mxu0 }
 0xa47   : > { %v2777_v56 = vadd.f32 %v5104_v42, %v2776_v55  ;;  %v2812_v57 = vpop.f32.mrf.mxu1 }
 0xa48   : > { %v2813_v16 = vadd.f32 %v5105_v43, %v2812_v57 }
 0xa49   : > { %2915 = vrot.lane.b32.xlu1 %v2777_v56, %s6091_s2  ;;  %s6130_s2 = smov 104  }
 0xa4c   : > { %v2740_v60 = vpop.f32.mrf.mxu3 }
 0xa4d   : > { %v2741_v14 = vadd.f32 %v5106_v58, %v2740_v60 }
 0xa4e   : > { %v2778_v8 = vpop.f32.mrf.mxu0 }
 0xa4f   : > { %v2779_v35 = vadd.f32 %v5104_v42, %v2778_v8  ;;  %v2814_v61 = vpop.f32.mrf.mxu1  ;;  %v2822_v2 = vmul.f32 0.35355338, %v2741_v14 }
 0xa50   : > { %v2815_v62 = vadd.f32 %v5105_v43, %v2814_v61 }
 0xa51   : > { %4753 = vmatpush.xpose.msk.msrb.mxu2 %vm1789_vm4, %v2779_v35  ;;  %3056 = vrot.lane.b32.xlu1 %v2779_v35, %s6093_s7  ;;  %s6131_s7 = smov 120  }
 0xa52   : > { %2891 = vmatpush.msra.mxu3 %v2815_v62  ;;  %v5811_v40 = vpack.i.bf16 %v2813_v16, %v2815_v62 }
 0xa54   : > { %2892 = vmatpush.msra.mxu3 %v2813_v16  ;;  %v2742_v3 = vpop.f32.mrf.mxu3 }
 0xa55   : > { %4754 = vmatpush.xpose.msk.msrb.mxu2 %vm1789_vm4, %v2777_v56  ;;  %v2743_v4 = vadd.f32 %v5106_v58, %v2742_v3 }
 0xa56   : > { %3043 = vmatpush.bf16.msrb.mxu3 %v3034_v24 }
 0xa57   : > { %v2823_v5 = vmul.f32 0.35355338, %v2743_v4 }
 0xa58   : > { %4755 = vmatmul.msk.f32.vlgmr.msrb.gmra.mxu2 %vm1789_vm4, %v2822_v2 }
 0xa59   : > { %3173 = vrot.lane.b32.xlu1 %v2777_v56, %s6130_s2 }
 0xa60   : > { %4756 = vmatmul.msk.f32.gmra.mxu2 %vm1789_vm4, %v2823_v5 }
 0xabb   : > { %v2916_v28 = vpop.permute.xlu1 %2915 }
 0xac3   : > { %v3057_v18 = vpop.permute.xlu1 %3056 }
 0xacb   : > { %v3174_v37 = vpop.permute.xlu1 %3173 }
 0xadb   : > { %v2853_v6 = vpop.f32.mrf.mxu2 }
 0xadc   : > { %v2859_v50 = vsel %vm1825_vm5, %v2853_v6, -inf }
 0xadd   : > { %2860 = vmax.xlane.f32.xlu2 %v2859_v50 }
 0xae3   : > { %v2856_v9 = vpop.f32.mrf.mxu2 }
 0xae4   : > { %v2862_v12 = vsel %vm1825_vm5, %v2856_v9, -inf }
 0xae5   : > { %2863 = vmax.xlane.f32.xlu0 %v2862_v12 }
 0xaf5   : > { %2911 = vrot.lane.b32.xlu2 %v2822_v2, %s6131_s7 }
 0xaf9   : > { %2917 = vrot.lane.b32.xlu0 %v2779_v35, %s6131_s7 }
 0xafd   : > { %3054 = vrot.lane.b32.xlu2 %v2777_v56, %s6132_s1 }
 0xb01   : > { %2913 = vrot.lane.b32.xlu0 %v2823_v5, %s6131_s7 }
 0xb09   : > { %3175 = vrot.lane.b32.xlu0 %v2779_v35, %s6130_s2 }
 0xb11   : > { %3050 = vrot.lane.b32.xlu0 %v2822_v2, %s6132_s1 }
 0xb19   : > { %3171 = vrot.lane.b32.xlu0 %v2823_v5, %s6130_s2 }
 0xb21   : > { %5066 = vrot.lane.b32.xlu0 %v5811_v40, %s6131_s7 }
 0xb50   : > { %v2861_v13 = vpop.xlane.xlu2 %2860 }
 0xb51   : > { %v2865_v54 = vsub.f32 %v2853_v6, %v2861_v13 }
 0xb53   : > { %v2867_v15 = vmul.f32 1.442695, %v2865_v54 }
 0xb55   : > { %5173 = vpow2.f32 %v2867_v15 }
 0xb58   : > { %v2864_v19 = vpop.xlane.xlu0 %2863  ;;  %v2912_v29 = vpop.permute.xlu2 %2911 }
 0xb59   : > { %v2866_v20 = vsub.f32 %v2856_v9, %v2864_v19 }
 0xb5b   : > { %v5174_v22 = vpop.eup %5173  ;;  %v2869_v23 = vmul.f32 1.442695, %v2866_v20 }
 0xb5c   : > { %4757 = vmatmul.msk.f32.vlgmr.msra.gmra.mxu3 %vm1825_vm5, %v5174_v22  ;;  %v2900_v25 = vsel %vm1825_vm5, %v5174_v22, 0.0 }
 0xb5d   : > { %5175 = vpow2.f32 %v2869_v23  ;;  %2901 = vadd.xlane.f32.xlu1 %v2900_v25 }
 0xb60   : > { %v3055_v32 = vpop.permute.xlu2 %3054 }
 0xb63   : > { %v5176_v63 = vpop.eup %5175 }
 0xb64   : > { %4758 = vmatmul.msk.f32.gmra.mxu3 %vm1825_vm5, %v5176_v63  ;;  %v2903_v27 = vsel %vm1825_vm5, %v5176_v63, 0.0 }
 0xb65   : > { %2904 = vadd.xlane.f32.xlu2 %v2903_v27 }
 0xb6b   : > { %v2918_v30 = vpop.permute.xlu0 %2917 }
 0xb6c   : > { %4759 = vmatpush.xpose.msk.msra.mxu0 %vm1789_vm4, %v2918_v30 }
 0xb70   : > { %4760 = vmatpush.xpose.msk.msra.mxu0 %vm1789_vm4, %v2916_v28 }
 0xb73   : > { %4761 = vmatmul.msk.f32.vlgmr.msra.gmra.mxu0 %vm1789_vm4, %v2912_v29  ;;  %v2914_v31 = vpop.permute.xlu0 %2913 }
 0xb74   : > { %4767 = vmatpush.xpose.msk.msrb.mxu0 %vm1789_vm4, %v3057_v18 }
 0xb76   : > { %3052 = vrot.lane.b32.xlu1 %v2823_v5, %s6132_s1 }
 0xb78   : > { %4768 = vmatpush.xpose.msk.msrb.mxu0 %vm1789_vm4, %v3055_v32 }
 0xb7b   : > { %4762 = vmatmul.msk.f32.gmra.mxu0 %vm1789_vm4, %v2914_v31  ;;  %v3176_v34 = vpop.permute.xlu0 %3175 }
 0xb7c   : > { %4774 = vmatpush.xpose.msk.msra.mxu3 %vm1789_vm4, %v3176_v34 }
 0xb7d   : > { %3169 = vrot.lane.b32.xlu2 %v2822_v2, %s6130_s2 }
 0xb80   : > { %4775 = vmatpush.xpose.msk.msra.mxu3 %vm1789_vm4, %v3174_v37 }
 0xb83   : > { %v3051_v38 = vpop.permute.xlu0 %3050 }
 0xb84   : > { %4769 = vmatmul.msk.f32.vlgmr.msrb.gmra.mxu0 %vm1789_vm4, %v3051_v38 }
 0xb8b   : > { %v3172_v39 = vpop.permute.xlu0 %3171 }
 0xb93   : > { %v5067_v10 = vpop.permute.xlu0 %5066 }
 0xb94   : > { %v5068_v44 = vunpack.i.l.bf16 %v5067_v10  ;;  %v5069_v0 = vunpack.i.h.bf16 %v5067_v10  ;;  %v4750_v10 = vld [vmem:[%s6124_s11 + $0x14] sm:$0xf] }
 0xb96   : > { %2990 = vmatpush.msrb.mxu1 %v5068_v44 }
 0xb98   : > { %2991 = vmatpush.msrb.mxu1 %v5069_v0  ;;  %v3014_v0 = vsel %vm1980_vm6, %v4750_v10, 0  ;;  %v4655_v10 = vld [vmem:[%s6122_s28 + $0x8] sm:$0x1] }
 0xb99   : > { %3023 = vmatpush.bf16.msra.mxu2 %v3014_v0  ;;  %v2555_v0 = vadd.f32 %v4655_v10, %v5767_v26 }
 0xbd0   : > { %v2902_v45 = vpop.xlane.xlu1 %2901 }
 0xbd1   : > { %5177 = vrcp.f32 %v2902_v45 }
 0xbd7   : > { %v5178_v48 = vpop.eup %5177 }
 0xbd8   : > { %v2905_v46 = vpop.xlane.xlu2 %2904 }
 0xbd9   : > { %5179 = vrcp.f32 %v2905_v46 }
 0xbdf   : > { %v2894_v47 = vpop.f32.mrf.mxu3  ;;  %v5180_v49 = vpop.eup %5179 }
 0xbe0   : > { %v2908_v51 = vmul.f32 %v5178_v48, %v2894_v47  ;;  %v3170_v58 = vpop.permute.xlu2 %3169 }
 0xbe7   : > { %v2897_v33 = vpop.f32.mrf.mxu3 }
 0xbe8   : > { %v2909_v52 = vmul.f32 %v5180_v49, %v2897_v33  ;;  %v3053_v42 = vpop.permute.xlu1 %3052 }
 0xbe9   : > { %4770 = vmatmul.msk.f32.gmra.mxu0 %vm1789_vm4, %v3053_v42 }
 0xbea   : > { %v2910_v55 = vpack.c.bf16 %v2909_v52, %v2908_v51 }
 0xbec   : > { %4766 = vmatmul.msk.bf16.vlgmr.msrb.gmra.mxu3 %vm1789_vm4, %v2910_v55 }
 0xbf0   : > { %v2944_v56 = vpop.f32.mrf.mxu0 }
 0xbf1   : > { %v2950_v57 = vsel %vm1825_vm5, %v2944_v56, -inf }
 0xbf2   : > { %2951 = vmax.xlane.f32.xlu2 %v2950_v57 }
 0xbf8   : > { %v2947_v43 = vpop.f32.mrf.mxu0 }
 0xbf9   : > { %v2953_v60 = vsel %vm1825_vm5, %v2947_v43, -inf }
 0xbfa   : > { %2954 = vmax.xlane.f32.xlu1 %v2953_v60 }
 0xbfc   : > { %4776 = vmatmul.msk.f32.vlgmr.msra.gmra.mxu3 %vm1789_vm4, %v3170_v58 }
 0xc01   : > { %v3083_v8 = vpop.f32.mrf.mxu0 }
 0xc02   : > { %v3089_v35 = vsel %vm1825_vm5, %v3083_v8, -inf }
 0xc03   : > { %3090 = vmax.xlane.f32.xlu0 %v3089_v35 }
 0xc04   : > { %4777 = vmatmul.msk.f32.gmra.mxu3 %vm1789_vm4, %v3172_v39 }
 0xc17   : > { %5076 = vrot.lane.b32.xlu0 %v5811_v40, %s6130_s2 }
 0xc65   : > { %v2952_v61 = vpop.xlane.xlu2 %2951 }
 0xc66   : > { %v2956_v16 = vsub.f32 %v2944_v56, %v2952_v61  ;;  %v3086_v62 = vpop.f32.mrf.mxu0  ;;  %v4751_v61 = vld [vmem:[%s6124_s11 + $0x18] sm:$0xf] }
 0xc67   : > { %v3092_v14 = vsel %vm1825_vm5, %v3086_v62, -inf }
 0xc68   : > { %v2958_v2 = vmul.f32 1.442695, %v2956_v16  ;;  %3093 = vmax.xlane.f32.xlu2 %v3092_v14  ;;  %v3151_v16 = vsel %vm1980_vm6, %v4751_v61, 0 }
 0xc69   : > { %3160 = vmatpush.bf16.msrb.mxu2 %v3151_v16 }
 0xc6a   : > { %5181 = vpow2.f32 %v2958_v2 }
 0xc6d   : > { %v2955_v3 = vpop.xlane.xlu1 %2954 }
 0xc6e   : > { %v2957_v4 = vsub.f32 %v2947_v43, %v2955_v3  ;;  %v4752_v3 = vld [vmem:[%s6124_s11 + $0x1c] sm:$0xf] }
 0xc6f   : > { %v5855_v5 = vpop.f32.mrf.mxu3 }
 0xc70   : > { %v5182_v6 = vpop.eup %5181  ;;  %v2960_v50 = vmul.f32 1.442695, %v2957_v4  ;;  %v3270_v4 = vsel %vm1980_vm6, %v4752_v3, 0 }
 0xc71   : > { %4763 = vmatmul.msk.f32.vlgmr.msrb.gmra.mxu1 %vm1825_vm5, %v5182_v6  ;;  %v2999_v24 = vsel %vm1825_vm5, %v5182_v6, 0.0  ;;  %v4997_v6 = vld [vmem:[%s6133_s3 + $0x8] sm:$0xff] }
 0xc72   : > { %5183 = vpow2.f32 %v2960_v50  ;;  %v4996_v50 = vld [vmem:[%s6133_s3] sm:$0xff]  ;;  %s6140_s3 = sld [smem:[#allocation21_spill]] }
 0xc76   : > { %v3091_v15 = vpop.xlane.xlu0 %3090 }
 0xc77   : > { %v5858_v9 = vpop.f32.mrf.mxu3  ;;  %v3095_v25 = vsub.f32 %v3083_v8, %v3091_v15 }
 0xc78   : > { %v5184_v12 = vpop.eup %5183 }
 0xc79   : > { %4764 = vmatmul.msk.f32.gmra.mxu1 %vm1825_vm5, %v5184_v12  ;;  %v3002_v63 = vsel %vm1825_vm5, %v5184_v12, 0.0 }
 0xc7f   : > { %v3202_v13 = vpop.f32.mrf.mxu3 }
 0xc80   : > { %5071 = vrot.lane.b32.xlu2 %v5811_v40, %s6132_s1  ;;  %v3208_v54 = vsel %vm1825_vm5, %v3202_v13, -inf  ;;  %v3097_v40 = vmul.f32 1.442695, %v3095_v25 }
 0xc81   : > { %3209 = vmax.xlane.f32.xlu1 %v3208_v54 }
 0xc82   : > { %5185 = vpow2.f32 %v3097_v40 }
 0xc87   : > { %v3205_v19 = vpop.f32.mrf.mxu3 }
 0xc88   : > { %v3211_v20 = vsel %vm1825_vm5, %v3205_v19, -inf  ;;  %v5186_v27 = vpop.eup %5185 }
 0xc89   : > { %3212 = vmax.xlane.f32.xlu1 %v3211_v20  ;;  %v5077_v21 = vpop.permute.xlu0 %5076  ;;  %v3136_v28 = vsel %vm1825_vm5, %v5186_v27, 0.0 }
 0xc8a   : > { %v5078_v22 = vunpack.i.l.bf16 %v5077_v21  ;;  %v5079_v23 = vunpack.i.h.bf16 %v5077_v21 }
 0xc8c   : > { %3246 = vmatpush.msra.mxu0 %v5078_v22 }
 0xc8e   : > { %3247 = vmatpush.msra.mxu0 %v5079_v23 }
 0xc91   : > { %3000 = vadd.xlane.f32.xlu1 %v2999_v24 }
 0xc99   : > { %3003 = vadd.xlane.f32.xlu1 %v3002_v63 }
 0xca9   : > { %3137 = vadd.xlane.f32.xlu2 %v3136_v28 }
 0xcdb   : > { %v3094_v29 = vpop.xlane.xlu2 %3093 }
 0xcdc   : > { %v3096_v30 = vsub.f32 %v3086_v62, %v3094_v29  ;;  %v5097_v29 = vld [vmem:[%s6134_s5] ss:$0 sm:$0xff]  ;;  %s6136_s5 = sld [smem:[#allocation18_spill]] }
 0xcde   : > { %v3099_v18 = vmul.f32 1.442695, %v3096_v30  ;;  %v1262_v30 = vadd.f32 %v5097_v29, %v5590_v11 }
 0xce0   : > { %5187 = vpow2.f32 %v3099_v18  ;;  %v1264_v18 = vadd.f32 %v5097_v29, %v5592_v17 }
 0xce3   : > { %v5072_v31 = vpop.permute.xlu2 %5071 }
 0xce4   : > { %v5073_v32 = vunpack.i.l.bf16 %v5072_v31  ;;  %v5074_v37 = vunpack.i.h.bf16 %v5072_v31  ;;  %v5889_v31 = vpack.c.bf16 %v1264_v18, %v1262_v30  ;;  %v4669_v30 = vld [vmem:[%s6122_s28 + $0x9] sm:$0x1] }
 0xce6   : > { %v5188_v34 = vpop.eup %5187  ;;  %3127 = vmatpush.msra.mxu1 %v5073_v32 }
 0xce7   : > { %v3139_v38 = vsel %vm1825_vm5, %v5188_v34, 0.0 }
 0xce8   : > { %3140 = vadd.xlane.f32.xlu0 %v3139_v38  ;;  %3128 = vmatpush.msra.mxu1 %v5074_v37  ;;  %v4995_v37 = vld [vmem:[%s6135_s6 + $0x8] sm:$0xff]  ;;  %v4994_v38 = vld [vmem:[%s6135_s6] sm:$0xff] }
 0xce9   : > { %4771 = vmatmul.msk.f32.vlgmr.msra.gmra.mxu1 %vm1825_vm5, %v5186_v27  ;;  %3573 = vmatpush.bf16.msrb.mxu0 %v4995_v37 }
 0xcea   : > { %3279 = vmatpush.bf16.msrb.mxu1 %v3270_v4 }
 0xced   : > { %3574 = vmatpush.bf16.msrb.mxu0 %v4994_v38 }
 0xcee   : > { %v2993_v55 = vpop.f32.mrf.mxu1  ;;  %3611 = vmatpush.bf16.msra.mxu1 %v4997_v6 }
 0xcf1   : > { %4772 = vmatmul.msk.f32.gmra.mxu1 %vm1825_vm5, %v5188_v34 }
 0xcf2   : > { %3612 = vmatpush.bf16.msra.mxu1 %v4996_v50 }
 0xcf4   : > { %v3210_v39 = vpop.xlane.xlu1 %3209 }
 0xcf5   : > { %v3214_v44 = vsub.f32 %v3202_v13, %v3210_v39 }
 0xcf6   : > { %v2996_v60 = vpop.f32.mrf.mxu1 }
 0xcf7   : > { %v3216_v45 = vmul.f32 1.442695, %v3214_v44 }
 0xcf9   : > { %5189 = vpow2.f32 %v3216_v45  ;;  %v5107_v45 = vld [vmem:[%s6125_s16 + $0x1] ss:$0 sm:$0xff] }
 0xcfc   : > { %v3213_v46 = vpop.xlane.xlu1 %3212 }
 0xcfd   : > { %v3215_v47 = vsub.f32 %v3205_v19, %v3213_v46 }
 0xcff   : > { %v5190_v48 = vpop.eup %5189  ;;  %v3218_v49 = vmul.f32 1.442695, %v3215_v47  ;;  %v3295_v47 = vperm.slane %v2555_v0, 0 }
 0xd00   : > { %4778 = vmatmul.msk.f32.vlgmr.msra.gmra.mxu0 %vm1825_vm5, %v5190_v48  ;;  %v3255_v33 = vsel %vm1825_vm5, %v5190_v48, 0.0 }
 0xd01   : > { %5191 = vpow2.f32 %v3218_v49  ;;  %3256 = vadd.xlane.f32.xlu1 %v3255_v33 }
 0xd04   : > { %v3001_v51 = vpop.xlane.xlu1 %3000 }
 0xd05   : > { %5193 = vrcp.f32 %v3001_v51 }
 0xd07   : > { %v5192_v52 = vpop.eup %5191 }
 0xd08   : > { %4779 = vmatmul.msk.f32.gmra.mxu0 %vm1825_vm5, %v5192_v52  ;;  %v3258_v42 = vsel %vm1825_vm5, %v5192_v52, 0.0 }
 0xd09   : > { %3259 = vadd.xlane.f32.xlu1 %v3258_v42 }
 0xd0b   : > { %v5194_v57 = vpop.eup %5193 }
 0xd0c   : > { %v3004_v56 = vpop.xlane.xlu1 %3003  ;;  %v3007_v58 = vmul.f32 %v5194_v57, %v2993_v55 }
 0xd0d   : > { %5195 = vrcp.f32 %v3004_v56 }
 0xd13   : > { %v5196_v43 = vpop.eup %5195 }
 0xd14   : > { %v3008_v8 = vmul.f32 %v5196_v43, %v2996_v60 }
 0xd16   : > { %v3009_v35 = vpack.c.bf16 %v3008_v8, %v3007_v58  ;;  %v5108_v58 = vld [vmem:[%s6136_s5] ss:$0 sm:$0xff]  ;;  %s6137_s5 = sld [smem:[#allocation19_spill]] }
 0xd18   : > { %4765 = vmatmul.msk.bf16.vlgmr.msra.gmra.mxu2 %vm1789_vm4, %v3009_v35 }
 0xd1c   : > { %v3138_v62 = vpop.xlane.xlu2 %3137 }
 0xd1d   : > { %5197 = vrcp.f32 %v3138_v62 }
 0xd23   : > { %v5198_v12 = vpop.eup %5197 }
 0xd5b   : > { %v3141_v14 = vpop.xlane.xlu0 %3140 }
 0xd5c   : > { %5199 = vrcp.f32 %v3141_v14 }
 0xd62   : > { %v5200_v13 = vpop.eup %5199 }
 0xd66   : > { %v3130_v2 = vpop.f32.mrf.mxu1 }
 0xd67   : > { %v3144_v15 = vmul.f32 %v5198_v12, %v3130_v2  ;;  %v4985_v12 = vld [vmem:[%s6126_s0 + $0x18] sm:$0xff] }
 0xd68   : > { %3383 = vmatpush.bf16.msra.mxu2 %v4985_v12 }
 0xd6e   : > { %v3133_v54 = vpop.f32.mrf.mxu1 }
 0xd6f   : > { %v3145_v19 = vmul.f32 %v5200_v13, %v3133_v54 }
 0xd71   : > { %v3146_v20 = vpack.c.bf16 %v3145_v19, %v3144_v15  ;;  %v4984_v19 = vld [vmem:[%s6126_s0 + $0x10] sm:$0xff]  ;;  %s6138_s0 = sld [smem:[#allocation20_spill]] }
 0xd72   : > { %3384 = vmatpush.bf16.msra.mxu2 %v4984_v19 }
 0xd73   : > { %4773 = vmatmul.msk.bf16.vlgmr.msrb.gmra.mxu2 %vm1789_vm4, %v3146_v20  ;;  %v4999_v20 = vld [vmem:[%s6137_s5 + $0x8] sm:$0xff] }
 0xd74   : > { %v3257_v21 = vpop.xlane.xlu1 %3256 }
 0xd75   : > { %5201 = vrcp.f32 %v3257_v21 }
 0xd76   : > { %3645 = vmatpush.bf16.msrb.mxu2 %v4999_v20 }
 0xd77   : > { %v5110_v20 = vld [vmem:[%s6138_s0] ss:$0 sm:$0xff]  ;;  %s6139_s0 = sld [smem:[#allocation16_spill]] }
 0xd7b   : > { %v5202_v24 = vpop.eup %5201 }
 0xd7c   : > { %v3260_v22 = vpop.xlane.xlu1 %3259 }
 0xd7d   : > { %v3249_v23 = vpop.f32.mrf.mxu0  ;;  %5203 = vrcp.f32 %v3260_v22 }
 0xd7e   : > { %v3263_v40 = vmul.f32 %v5202_v24, %v3249_v23  ;;  %v4998_v23 = vld [vmem:[%s6137_s5] sm:$0xff] }
 0xd7f   : > { %3646 = vmatpush.bf16.msrb.mxu2 %v4998_v23 }
 0xd83   : > { %v5204_v25 = vpop.eup %5203 }
 0xd85   : > { %v3252_v63 = vpop.f32.mrf.mxu0 }
 0xd86   : > { %v3264_v27 = vmul.f32 %v5204_v25, %v3252_v63  ;;  %v4683_v63 = vld [vmem:[%s6122_s28 + $0xa] sm:$0x1] }
 0xd88   : > { %v3265_v28 = vpack.c.bf16 %v3264_v27, %v3263_v40 }
 0xd8a   : > { %4780 = vmatmul.msk.bf16.vlgmr.msrb.gmra.mxu1 %vm1789_vm4, %v3265_v28  ;;  %v2619_v28 = vadd.f32 %v4683_v63, %v5733_v1 }
 0xd9a   : > { %4862 = vmatmul.msk.bf16.vlgmr.msra.gmra.mxu1 %vm1285_vm0, %v5889_v31 }
 0xd9b   : > { %v3025_v32 = vpop.f32.mrf.mxu2 }
 0xd9c   : > { %v3046_v44 = vadd.f32 %v5855_v5, %v3025_v32 }
 0xda3   : > { %v3027_v34 = vpop.f32.mrf.mxu2 }
 0xda4   : > { %v3048_v33 = vadd.f32 %v5858_v9, %v3027_v34  ;;  %v3344_v34 = vadd.f32 1.0, %v2619_v28 }
 0xda6   : > { %v3345_v0 = vperm.slane %v3344_v34, 0 }
 0xdf6   : > { %v3162_v39 = vpop.f32.mrf.mxu2 }
 0xdf7   : > { %v3167_v11 = vadd.f32 %v3162_v39, %v3046_v44  ;;  %v2587_v39 = vadd.f32 %v4669_v30, %v5712_v36 }
 0xdfe   : > { %v3164_v49 = vpop.f32.mrf.mxu2 }
 0xdff   : > { %v3168_v52 = vadd.f32 %v3164_v49, %v3048_v33 }
 0xe07   : > { %v3281_v17 = vpop.f32.mrf.mxu1 }
 0xe08   : > { %v3286_v46 = vadd.f32 %v3281_v17, %v3167_v11  ;;  %v3348_v17 = vperm.slane %v2587_v39, 0 }
 0xe0a   : > { %v3293_v48 = vadd.f32 %v5107_v45, %v3286_v46 }
 0xe0c   : > { %v3296_v51 = vmul.f32 %v3295_v47, %v3293_v48 }
 0xe0e   : > { %v5901_v42 = vadd.f32 %v3296_v51, %v5775_v53 }
 0xe0f   : > { %v3283_v55 = vpop.f32.mrf.mxu1 }
 0xe10   : > { %v3287_v56 = vadd.f32 %v3283_v55, %v3168_v52  ;;  %v3300_v26 = vsel %vm1285_vm0, %v5901_v42, 0.0  ;;  %v4993_v55 = vld [vmem:[%s6127_s22 + $0x78] sm:$0xff] }
 0xe11   : > { %3301 = vadd.xlane.f32.xlu1 %v3300_v26  ;;  %3480 = vmatpush.bf16.msrb.mxu3 %v4993_v55  ;;  %v4991_v26 = vld [vmem:[%s6127_s22 + $0x68] sm:$0xff] }
 0xe12   : > { %v3294_v5 = vadd.f32 %v5107_v45, %v3287_v56  ;;  %v4992_v56 = vld [vmem:[%s6127_s22 + $0x70] sm:$0xff] }
 0xe14   : > { %v3297_v57 = vmul.f32 %v3295_v47, %v3294_v5  ;;  %v4990_v5 = vld [vmem:[%s6127_s22 + $0x60] sm:$0xff] }
 0xe15   : > { %3481 = vmatpush.bf16.msrb.mxu3 %v4992_v56 }
 0xe16   : > { %v5906_v43 = vadd.f32 %v3297_v57, %v5780_v59  ;;  %v4989_v57 = vld [vmem:[%s6127_s22 + $0x58] sm:$0xff] }
 0xe17   : > { %v3614_v60 = vpop.f32.mrf.mxu1 }
 0xe18   : > { %v3303_v9 = vsel %vm1285_vm0, %v5906_v43, 0.0  ;;  %v5915_v35 = vadd.f32 %v5108_v58, %v3614_v60  ;;  %v4988_v60 = vld [vmem:[%s6127_s22 + $0x50] sm:$0xff] }
 0xe19   : > { %3304 = vadd.xlane.f32.xlu1 %v3303_v9  ;;  %3482 = vmatpush.bf16.msrb.mxu3 %v4991_v26  ;;  %v4987_v9 = vld [vmem:[%s6127_s22 + $0x48] sm:$0xff] }
 0xe1d   : > { %3483 = vmatpush.bf16.msrb.mxu3 %v4990_v5 }
 0xe1f   : > { %v3616_v8 = vpop.f32.mrf.mxu1 }
 0xe20   : > { %v5911_v53 = vadd.f32 %v5108_v58, %v3616_v8  ;;  %v5109_v58 = vld [vmem:[%s6128_s23 + $0x1] ss:$0 sm:$0xff] }
 0xe21   : > { %3484 = vmatpush.bf16.msrb.mxu3 %v4989_v57 }
 0xe22   : > { %4872 = vmatpush.xpose.msk.msra.mxu0 %vm1789_vm4, %v5911_v53 }
 0xe25   : > { %3485 = vmatpush.bf16.msrb.mxu3 %v4988_v60 }
 0xe26   : > { %4873 = vmatpush.xpose.msk.msra.mxu0 %vm1789_vm4, %v5915_v35 }
 0xe29   : > { %3486 = vmatpush.bf16.msrb.mxu3 %v4987_v9 }
 0xe84   : > { %v3302_v59 = vpop.xlane.xlu1 %3301 }
 0xe85   : > { %v3306_v61 = vmul.f32 %v3302_v59, %v5533_v7  ;;  %v4986_v59 = vld [vmem:[%s6127_s22 + $0x40] sm:$0xff] }
 0xe86   : > { %3487 = vmatpush.bf16.msrb.mxu3 %v4986_v59 }
 0xe87   : > { %v3308_v16 = vsub.f32 %v5901_v42, %v3306_v61 }
 0xe89   : > { %v3310_v62 = vmul.f32 %v3308_v16, %v3308_v16 }
 0xe8b   : > { %v3312_v14 = vsel %vm1285_vm0, %v3310_v62, 0.0 }
 0xe8c   : > { %3313 = vadd.xlane.f32.xlu1 %v3312_v14  ;;  %v3305_v2 = vpop.xlane.xlu1 %3304 }
 0xe8d   : > { %v3307_v3 = vmul.f32 %v3305_v2, %v5533_v7 }
 0xe8f   : > { %v3309_v4 = vsub.f32 %v5906_v43, %v3307_v3 }
 0xe91   : > { %v3311_v6 = vmul.f32 %v3309_v4, %v3309_v4 }
 0xe93   : > { %v3315_v50 = vsel %vm1285_vm0, %v3311_v6, 0.0 }
 0xe94   : > { %3316 = vadd.xlane.f32.xlu2 %v3315_v50 }
 0xeff   : > { %v3314_v13 = vpop.xlane.xlu1 %3313 }
 0xf00   : > { %v3318_v54 = vmul.f32 %v3314_v13, %v5533_v7 }
 0xf02   : > { %v3320_v15 = vadd.f32 1e-06, %v3318_v54 }
 0xf04   : > { %5205 = vrsqrt.f32 %v3320_v15  ;;  %vm3328_vm9 = vweird.f32 %v3320_v15 }
 0xf07   : > { %v3317_v21 = vpop.xlane.xlu2 %3316 }
 0xf08   : > { %v3319_v22 = vmul.f32 %v3317_v21, %v5533_v7 }
 0xf0a   : > { %v5206_v24 = vpop.eup %5205  ;;  %v3321_v25 = vadd.f32 1e-06, %v3319_v22 }
 0xf0b   : > { %v3323_v40 = vmul.f32 %v5206_v24, %v3320_v15  ;;  %vm3329_vm8 = vweird.f32 %v5206_v24 }
 0xf0c   : > { %5207 = vrsqrt.f32 %v3321_v25  ;;  %vm3330_vm10 = vmor %vm3328_vm9, %vm3329_vm8  ;;  %vm3338_vm12 = vweird.f32 %v3321_v25 }
 0xf0d   : > { %v3324_v27 = vmul.f32 %v5206_v24, %v3323_v40 }
 0xf0f   : > { %v3325_v29 = vmul.f32 0.5, %v3324_v27 }
 0xf11   : > { %v3326_v18 = vsub.f32 1.5, %v3325_v29 }
 0xf12   : > { %v5208_v32 = vpop.eup %5207 }
 0xf13   : > { %v3327_v37 = vmul.f32 %v5206_v24, %v3326_v18  ;;  %v3333_v38 = vmul.f32 %v5208_v32, %v3321_v25  ;;  %vm3339_vm11 = vweird.f32 %v5208_v32 }
 0xf14   : > { %vm3340_vm13 = vmor %vm3338_vm12, %vm3339_vm11 }
 0xf15   : > { %v3331_v10 = vsel %vm3330_vm10, %v5206_v24, %v3327_v37  ;;  %v3334_v44 = vmul.f32 %v5208_v32, %v3333_v38  ;;  %v5111_v37 = vld [vmem:[%s6129_s10 + $0x1] ss:$0 sm:$0xff] }
 0xf16   : > { %v3342_v11 = vmul.f32 %v3331_v10, %v3308_v16 }
 0xf17   : > { %v3335_v45 = vmul.f32 0.5, %v3334_v44 }
 0xf18   : > { %v3346_v1 = vmul.f32 %v3345_v0, %v3342_v11 }
 0xf19   : > { %v3336_v46 = vsub.f32 1.5, %v3335_v45 }
 0xf1a   : > { %v3349_v47 = vadd.f32 %v3348_v17, %v3346_v1 }
 0xf1b   : > { %v3337_v48 = vmul.f32 %v5208_v32, %v3336_v46 }
 0xf1d   : > { %v3341_v36 = vsel %vm3340_vm13, %v5208_v32, %v3337_v48  ;;  %v4697_v32 = vld [vmem:[%s6122_s28 + $0xb] sm:$0x1] }
 0xf1e   : > { %v3343_v49 = vmul.f32 %v3341_v36, %v3309_v4  ;;  %v2651_v34 = vadd.f32 %v4697_v32, %v5769_v41 }
 0xf20   : > { %v3347_v33 = vmul.f32 %v3345_v0, %v3343_v49  ;;  %v3494_v39 = vperm.slane %v2651_v34, 0 }
 0xf22   : > { %v3350_v51 = vadd.f32 %v3348_v17, %v3347_v33 }
 0xf24   : > { %v3356_v52 = vpack.c.bf16 %v3350_v51, %v3349_v47 }
 0xf26   : > { %4795 = vmatmul.msk.bf16.vlgmr.msra.gmra.mxu2 %vm1285_vm0, %v3356_v52 }
 0xf36   : > { %4871 = vmatmul.msk.bf16.vlgmr.msrb.gmra.mxu2 %vm1285_vm0, %v5889_v31 }
 0xfa9   : > { %v3386_v8 = vpop.f32.mrf.mxu2 }
 0xfaa   : > { %v3387_v61 = vadd.f32 %v5109_v58, %v3386_v8 }
 0xfac   : > { %v3391_v31 = vmul.f32 %v3387_v61, %v3387_v61 }
 0xfae   : > { %v3393_v16 = vmul.f32 %v3391_v31, %v3387_v61 }
 0xfb0   : > { %v3395_v62 = vmul.f32 0.044715, %v3393_v16 }
 0xfb1   : > { %v3388_v14 = vpop.f32.mrf.mxu2 }
 0xfb2   : > { %v3397_v2 = vadd.f32 %v3395_v62, %v3387_v61  ;;  %v3389_v3 = vadd.f32 %v5109_v58, %v3388_v14 }
 0xfb4   : > { %v3399_v4 = vmul.f32 0.7978846, %v3397_v2  ;;  %v3392_v6 = vmul.f32 %v3389_v3, %v3389_v3 }
 0xfb6   : > { %v3394_v50 = vmul.f32 %v3392_v6, %v3389_v3  ;;  %5209 = vtanh.f32 %v3399_v4 }
 0xfb8   : > { %v3396_v12 = vmul.f32 0.044715, %v3394_v50 }
 0xfb9   : > { %v3648_v13 = vpop.f32.mrf.mxu2 }
 0xfba   : > { %v3398_v54 = vadd.f32 %v3396_v12, %v3389_v3  ;;  %v3649_v23 = vadd.f32 %v5110_v20, %v3648_v13 }
 0xfbc   : > { %v3400_v15 = vmul.f32 0.7978846, %v3398_v54  ;;  %v5210_v19 = vpop.eup %5209 }
 0xfbd   : > { %v3403_v21 = vadd.f32 1.0, %v5210_v19  ;;  %v5112_v19 = vld [vmem:[%s6139_s0] ss:$0 sm:$0xff] }
 0xfbe   : > { %5211 = vtanh.f32 %v3400_v15 }
 0xfbf   : > { %v3405_v40 = vmul.f32 0.5, %v3403_v21 }
 0xfc1   : > { %v3650_v22 = vpop.f32.mrf.mxu2  ;;  %v3407_v29 = vmul.f32 %v3405_v40, %v3387_v61 }
 0xfc2   : > { %v3651_v24 = vadd.f32 %v5110_v20, %v3650_v22 }
 0xfc4   : > { %v5212_v25 = vpop.eup %5211  ;;  %3726 = vmatpush.msrb.mxu1 %v3651_v24  ;;  %v5948_v63 = vpack.i.bf16 %v3649_v23, %v3651_v24 }
 0xfc5   : > { %v3404_v27 = vadd.f32 1.0, %v5212_v25 }
 0xfc6   : > { %3727 = vmatpush.msrb.mxu1 %v3649_v23 }
 0xfc7   : > { %v3406_v28 = vmul.f32 0.5, %v3404_v27 }
 0xfc9   : > { %v3408_v30 = vmul.f32 %v3406_v28, %v3389_v3 }
 0xfcb   : > { %v3426_v18 = vpack.c.bf16 %v3408_v30, %v3407_v29  ;;  %v3653_v30 = vld [vmem:[%s6140_s3] sm:$0xf] }
 0xfcd   : > { %3488 = vmatmul.bf16.vlgmr.msrb.gmra.mxu3 %v3426_v18  ;;  %v3869_v18 = vsel %vm1980_vm6, %v3653_v30, 0 }
 0xfce   : > { %3878 = vmatpush.bf16.msra.mxu1 %v3869_v18 }
0x1050   : > { %v3489_v38 = vpop.f32.mrf.mxu3 }
0x1051   : > { %v3490_v10 = vadd.f32 %v5111_v37, %v3489_v38 }
0x1053   : > { %v3495_v44 = vmul.f32 %v3494_v39, %v3490_v10 }
0x1055   : > { %v5954_v0 = vadd.f32 %v3495_v44, %v5901_v42 }
0x1057   : > { %v3499_v11 = vsel %vm1285_vm0, %v5954_v0, 0.0 }
0x1058   : > { %v3491_v45 = vpop.f32.mrf.mxu3  ;;  %3500 = vadd.xlane.f32.xlu1 %v3499_v11 }
0x1059   : > { %v3492_v17 = vadd.f32 %v5111_v37, %v3491_v45 }
0x105b   : > { %v3496_v1 = vmul.f32 %v3494_v39, %v3492_v17 }
0x105d   : > { %v5959_v46 = vadd.f32 %v3496_v1, %v5906_v43 }
0x105f   : > { %v3502_v41 = vsel %vm1285_vm0, %v5959_v46, 0.0 }
0x1060   : > { %3503 = vadd.xlane.f32.xlu0 %v3502_v41 }
0x10cb   : > { %v3501_v47 = vpop.xlane.xlu1 %3500 }
0x10cc   : > { %v3505_v48 = vmul.f32 %v3501_v47, %v5533_v7 }
0x10ce   : > { %v3507_v42 = vsub.f32 %v5954_v0, %v3505_v48 }
0x10d0   : > { %v3509_v36 = vmul.f32 %v3507_v42, %v3507_v42 }
0x10d2   : > { %v3511_v49 = vsel %vm1285_vm0, %v3509_v36, 0.0 }
0x10d3   : > { %v3504_v33 = vpop.xlane.xlu0 %3503  ;;  %3512 = vadd.xlane.f32.xlu2 %v3511_v49 }
0x10d4   : > { %v3506_v51 = vmul.f32 %v3504_v33, %v5533_v7 }
0x10d6   : > { %v3508_v52 = vsub.f32 %v5959_v46, %v3506_v51 }
0x10d8   : > { %v3510_v43 = vmul.f32 %v3508_v52, %v3508_v52 }
0x10da   : > { %v3514_v55 = vsel %vm1285_vm0, %v3510_v43, 0.0 }
0x10db   : > { %3515 = vadd.xlane.f32.xlu1 %v3514_v55 }
0x10f4   : > { %3750 = vrot.lane.b32.xlu1 %v5915_v35, %s6131_s7 }
0x10fc   : > { %4010 = vrot.lane.b32.xlu1 %v5911_v53, %s6130_s2 }
0x1146   : > { %v3513_v56 = vpop.xlane.xlu2 %3512 }
0x1147   : > { %v3517_v26 = vmul.f32 %v3513_v56, %v5533_v7 }
0x1149   : > { %v3519_v5 = vadd.f32 1e-06, %v3517_v26 }
0x114b   : > { %5213 = vrsqrt.f32 %v3519_v5  ;;  %vm3527_vm15 = vweird.f32 %v3519_v5 }
0x114e   : > { %v3516_v57 = vpop.xlane.xlu1 %3515 }
0x114f   : > { %v3518_v60 = vmul.f32 %v3516_v57, %v5533_v7 }
0x1151   : > { %v5214_v9 = vpop.eup %5213  ;;  %v3520_v58 = vadd.f32 1e-06, %v3518_v60 }
0x1152   : > { %v3522_v8 = vmul.f32 %v5214_v9, %v3519_v5  ;;  %vm3528_vm14 = vweird.f32 %v5214_v9 }
0x1153   : > { %5215 = vrsqrt.f32 %v3520_v58  ;;  %vm3529_vm3 = vmor %vm3527_vm15, %vm3528_vm14  ;;  %vm3537_vm7 = vweird.f32 %v3520_v58 }
0x1154   : > { %v3523_v59 = vmul.f32 %v5214_v9, %v3522_v8 }
0x1156   : > { %v3524_v61 = vmul.f32 0.5, %v3523_v59 }
0x1158   : > { %v3525_v16 = vsub.f32 1.5, %v3524_v61 }
0x1159   : > { %v5216_v31 = vpop.eup %5215 }
0x115a   : > { %v3532_v62 = vmul.f32 %v5216_v31, %v3520_v58  ;;  %v3526_v2 = vmul.f32 %v5214_v9, %v3525_v16  ;;  %vm3538_vm2 = vweird.f32 %v5216_v31 }
0x115b   : > { %vm3539_vm8 = vmor %vm3537_vm7, %vm3538_vm2 }
0x115c   : > { %v3533_v14 = vmul.f32 %v5216_v31, %v3532_v62  ;;  %v3530_v6 = vsel %vm3529_vm3, %v5214_v9, %v3526_v2 }
0x115d   : > { %v3541_v13 = vmul.f32 %v3530_v6, %v3507_v42 }
0x115e   : > { %v3534_v3 = vmul.f32 0.5, %v3533_v14 }
0x1160   : > { %v3535_v4 = vsub.f32 1.5, %v3534_v3 }
0x1162   : > { %v3536_v50 = vmul.f32 %v5216_v31, %v3535_v4 }
0x1164   : > { %v3540_v12 = vsel %vm3539_vm8, %v5216_v31, %v3536_v50 }
0x1165   : > { %v3542_v54 = vmul.f32 %v3540_v12, %v3508_v52 }
0x1166   : > { %v3751_v37 = vpop.permute.xlu1 %3750 }
0x1167   : > { %v3547_v15 = vpack.c.bf16 %v3542_v54, %v3541_v13 }
0x1169   : > { %4853 = vmatmul.msk.bf16.vlgmr.msrb.gmra.mxu0 %vm1285_vm0, %v3547_v15 }
0x116e   : > { %v4011_v11 = vpop.permute.xlu1 %4010 }
0x11e6   : > { %v3576_v20 = vpop.f32.mrf.mxu0 }
0x11e7   : > { %v3577_v21 = vadd.f32 %v5112_v19, %v3576_v20 }
0x11e9   : > { %v3657_v22 = vmul.f32 0.35355338, %v3577_v21 }
0x11eb   : > { %3885 = vrot.lane.b32.xlu1 %v3657_v22, %s6132_s1  ;;  %4874 = vmatmul.msk.f32.vlgmr.msra.gmra.mxu0 %vm1789_vm4, %v3657_v22 }
0x11ee   : > { %v3578_v23 = vpop.f32.mrf.mxu0 }
0x11ef   : > { %v3579_v24 = vadd.f32 %v5112_v19, %v3578_v23 }
0x11f1   : > { %v3658_v25 = vmul.f32 0.35355338, %v3579_v24 }
0x11f3   : > { %4875 = vmatmul.msk.f32.gmra.mxu0 %vm1789_vm4, %v3658_v25 }
0x125d   : > { %v3886_v49 = vpop.permute.xlu1 %3885 }
0x1268   : > { %v3688_v40 = vpop.f32.mrf.mxu0 }
0x1269   : > { %v3694_v27 = vsel %vm1825_vm5, %v3688_v40, -inf }
0x126a   : > { %3695 = vmax.xlane.f32.xlu0 %v3694_v27 }
0x1270   : > { %v3691_v28 = vpop.f32.mrf.mxu0 }
0x1271   : > { %v3697_v29 = vsel %vm1825_vm5, %v3691_v28, -inf }
0x1272   : > { %3698 = vmax.xlane.f32.xlu2 %v3697_v29 }
0x127e   : > { %3746 = vrot.lane.b32.xlu0 %v3657_v22, %s6131_s7 }
0x1286   : > { %3891 = vrot.lane.b32.xlu0 %v5911_v53, %s6132_s1 }
0x128a   : > { %3752 = vrot.lane.b32.xlu2 %v5911_v53, %s6131_s7 }
0x128e   : > { %4008 = vrot.lane.b32.xlu0 %v5915_v35, %s6130_s2 }
0x1292   : > { %3748 = vrot.lane.b32.xlu2 %v3658_v25, %s6131_s7 }
0x129a   : > { %3889 = vrot.lane.b32.xlu2 %v5915_v35, %s6132_s1 }
0x12a2   : > { %4004 = vrot.lane.b32.xlu2 %v3657_v22, %s6130_s2 }
0x12dd   : > { %v3696_v32 = vpop.xlane.xlu0 %3695 }
0x12de   : > { %v3700_v34 = vsub.f32 %v3688_v40, %v3696_v32 }
0x12e0   : > { %v3702_v38 = vmul.f32 1.442695, %v3700_v34 }
0x12e2   : > { %5217 = vpow2.f32 %v3702_v38 }
0x12e5   : > { %v3699_v53 = vpop.xlane.xlu2 %3698 }
0x12e6   : > { %v3701_v39 = vsub.f32 %v3691_v28, %v3699_v53 }
0x12e8   : > { %v5218_v10 = vpop.eup %5217  ;;  %v3704_v44 = vmul.f32 1.442695, %v3701_v39 }
0x12e9   : > { %4876 = vmatmul.msk.f32.vlgmr.msrb.gmra.mxu1 %vm1825_vm5, %v5218_v10  ;;  %v3735_v35 = vsel %vm1825_vm5, %v5218_v10, 0.0 }
0x12ea   : > { %5219 = vpow2.f32 %v3704_v44  ;;  %4893 = vmatpush.xpose.msk.msrb.mxu1 %vm1789_vm4, %v4011_v11  ;;  %3736 = vadd.xlane.f32.xlu1 %v3735_v35 }
0x12ed   : > { %v3753_v45 = vpop.permute.xlu2 %3752 }
0x12ee   : > { %4878 = vmatpush.xpose.msk.msra.mxu2 %vm1789_vm4, %v3753_v45  ;;  %v3654_v45 = vld [vmem:[%s6140_s3 + $0x4] sm:$0xf] }
0x12f0   : > { %v5220_v17 = vpop.eup %5219  ;;  %v3747_v1 = vpop.permute.xlu0 %3746 }
0x12f1   : > { %4877 = vmatmul.msk.f32.gmra.mxu1 %vm1825_vm5, %v5220_v17  ;;  %v3738_v41 = vsel %vm1825_vm5, %v5220_v17, 0.0 }
0x12f2   : > { %3739 = vadd.xlane.f32.xlu0 %v3738_v41  ;;  %4879 = vmatpush.xpose.msk.msra.mxu2 %vm1789_vm4, %v3751_v37 }
0x12f5   : > { %v3749_v47 = vpop.permute.xlu2 %3748  ;;  %4880 = vmatmul.msk.f32.vlgmr.msra.gmra.mxu2 %vm1789_vm4, %v3747_v1  ;;  %v3849_v1 = vsel %vm1980_vm6, %v3654_v45, 0 }
0x12f6   : > { %3858 = vmatpush.bf16.msrb.mxu0 %v3849_v1 }
0x12f8   : > { %v3892_v48 = vpop.permute.xlu0 %3891 }
0x12f9   : > { %4886 = vmatpush.xpose.msk.msrb.mxu2 %vm1789_vm4, %v3892_v48 }
0x12fd   : > { %v3890_v42 = vpop.permute.xlu2 %3889  ;;  %4881 = vmatmul.msk.f32.gmra.mxu2 %vm1789_vm4, %v3749_v47 }
0x12fe   : > { %4887 = vmatpush.xpose.msk.msrb.mxu2 %vm1789_vm4, %v3890_v42 }
0x1300   : > { %v4009_v36 = vpop.permute.xlu0 %4008 }
0x1301   : > { %4894 = vmatpush.xpose.msk.msrb.mxu1 %vm1789_vm4, %v4009_v36 }
0x1303   : > { %4006 = vrot.lane.b32.xlu1 %v3658_v25, %s6130_s2 }
0x1305   : > { %4888 = vmatmul.msk.f32.vlgmr.msrb.gmra.mxu2 %vm1789_vm4, %v3886_v49  ;;  %v4005_v14 = vpop.permute.xlu2 %4004 }
0x1306   : > { %3887 = vrot.lane.b32.xlu0 %v3658_v25, %s6132_s1 }
0x130b   : > { %5081 = vrot.lane.b32.xlu1 %v5948_v63, %s6131_s7 }
0x135d   : > { %v3737_v33 = vpop.xlane.xlu1 %3736 }
0x135e   : > { %5221 = vrcp.f32 %v3737_v33 }
0x1364   : > { %v5222_v43 = vpop.eup %5221 }
0x1365   : > { %v3740_v51 = vpop.xlane.xlu0 %3739 }
0x1366   : > { %v3729_v52 = vpop.f32.mrf.mxu1  ;;  %5223 = vrcp.f32 %v3740_v51 }
0x1367   : > { %v3743_v26 = vmul.f32 %v5222_v43, %v3729_v52 }
0x136c   : > { %v5224_v55 = vpop.eup %5223 }
0x136e   : > { %v3732_v56 = vpop.f32.mrf.mxu1 }
0x136f   : > { %v3744_v5 = vmul.f32 %v5224_v55, %v3732_v56 }
0x1371   : > { %v3745_v57 = vpack.c.bf16 %v3744_v5, %v3743_v26 }
0x1373   : > { %4885 = vmatmul.msk.bf16.vlgmr.msra.gmra.mxu1 %vm1789_vm4, %v3745_v57 }
0x1375   : > { %v4007_v60 = vpop.permute.xlu1 %4006 }
0x1378   : > { %v3888_v9 = vpop.permute.xlu0 %3887  ;;  %v3779_v58 = vpop.f32.mrf.mxu2 }
0x1379   : > { %4889 = vmatmul.msk.f32.gmra.mxu2 %vm1789_vm4, %v3888_v9  ;;  %v3785_v8 = vsel %vm1825_vm5, %v3779_v58, -inf }
0x137a   : > { %3786 = vmax.xlane.f32.xlu2 %v3785_v8 }
0x137d   : > { %v5082_v59 = vpop.permute.xlu1 %5081 }
0x137e   : > { %v5083_v61 = vunpack.i.l.bf16 %v5082_v59  ;;  %v5084_v31 = vunpack.i.h.bf16 %v5082_v59 }
0x1380   : > { %v3782_v16 = vpop.f32.mrf.mxu2  ;;  %3825 = vmatpush.msra.mxu3 %v5083_v61 }
0x1381   : > { %v3788_v62 = vsel %vm1825_vm5, %v3782_v16, -inf }
0x1382   : > { %3789 = vmax.xlane.f32.xlu0 %v3788_v62  ;;  %3826 = vmatpush.msra.mxu3 %v5084_v31  ;;  %v3656_v31 = vld [vmem:[%s6140_s3 + $0xc] sm:$0xf]  ;;  %v3655_v62 = vld [vmem:[%s6140_s3 + $0x8] sm:$0xf] }
0x1383   : > { %4895 = vmatmul.msk.f32.vlgmr.msrb.gmra.mxu1 %vm1789_vm4, %v4005_v14  ;;  %v3986_v14 = vsel %vm1980_vm6, %v3655_v62, 0 }
0x1384   : > { %3995 = vmatpush.bf16.msra.mxu0 %v3986_v14 }
0x1388   : > { %v3918_v2 = vpop.f32.mrf.mxu2 }
0x1389   : > { %v3924_v3 = vsel %vm1825_vm5, %v3918_v2, -inf }
0x138a   : > { %3925 = vmax.xlane.f32.xlu2 %v3924_v3 }
0x138b   : > { %4896 = vmatmul.msk.f32.gmra.mxu1 %vm1789_vm4, %v4007_v60 }
0x13a2   : > { %5086 = vrot.lane.b32.xlu2 %v5948_v63, %s6130_s2 }
0x13ed   : > { %v3787_v4 = vpop.xlane.xlu2 %3786 }
0x13ee   : > { %v3791_v6 = vsub.f32 %v3779_v58, %v3787_v4 }
0x13f0   : > { %v3793_v50 = vmul.f32 1.442695, %v3791_v6  ;;  %v6021_v12 = vpop.f32.mrf.mxu1 }
0x13f2   : > { %5225 = vpow2.f32 %v3793_v50 }
0x13f5   : > { %v3790_v13 = vpop.xlane.xlu0 %3789 }
0x13f6   : > { %v3792_v54 = vsub.f32 %v3782_v16, %v3790_v13  ;;  %v4105_v16 = vsel %vm1980_vm6, %v3656_v31, 0 }
0x13f8   : > { %v5226_v15 = vpop.eup %5225  ;;  %v3795_v19 = vmul.f32 1.442695, %v3792_v54  ;;  %v6023_v20 = vpop.f32.mrf.mxu1 }
0x13f9   : > { %4882 = vmatmul.msk.f32.vlgmr.msra.gmra.mxu3 %vm1825_vm5, %v5226_v15  ;;  %v3834_v32 = vsel %vm1825_vm5, %v5226_v15, 0.0 }
0x13fa   : > { %5227 = vpow2.f32 %v3795_v19 }
0x13fc   : > { %v3921_v30 = vpop.f32.mrf.mxu2 }
0x13fd   : > { %v3926_v21 = vpop.xlane.xlu2 %3925  ;;  %v3927_v18 = vsel %vm1825_vm5, %v3921_v30, -inf }
0x13fe   : > { %v3930_v37 = vsub.f32 %v3918_v2, %v3926_v21 }
0x1400   : > { %v5228_v22 = vpop.eup %5227  ;;  %v4037_v23 = vpop.f32.mrf.mxu1  ;;  %v3932_v38 = vmul.f32 1.442695, %v3930_v37 }
0x1401   : > { %4883 = vmatmul.msk.f32.gmra.mxu3 %vm1825_vm5, %v5228_v22  ;;  %v4043_v24 = vsel %vm1825_vm5, %v4037_v23, -inf  ;;  %v3837_v34 = vsel %vm1825_vm5, %v5228_v22, 0.0 }
0x1402   : > { %4044 = vmax.xlane.f32.xlu1 %v4043_v24  ;;  %5229 = vpow2.f32 %v3932_v38 }
0x1405   : > { %v5087_v25 = vpop.permute.xlu2 %5086 }
0x1406   : > { %v5088_v40 = vunpack.i.l.bf16 %v5087_v25  ;;  %v5089_v27 = vunpack.i.h.bf16 %v5087_v25 }
0x1408   : > { %v4040_v28 = vpop.f32.mrf.mxu1  ;;  %4081 = vmatpush.msra.mxu2 %v5088_v40  ;;  %v5230_v53 = vpop.eup %5229 }
0x1409   : > { %v4046_v29 = vsel %vm1825_vm5, %v4040_v28, -inf  ;;  %v3971_v39 = vsel %vm1825_vm5, %v5230_v53, 0.0 }
0x140a   : > { %4082 = vmatpush.msra.mxu2 %v5089_v27  ;;  %4047 = vmax.xlane.f32.xlu0 %v4046_v29 }
0x1412   : > { %3928 = vmax.xlane.f32.xlu0 %v3927_v18 }
0x141a   : > { %3835 = vadd.xlane.f32.xlu0 %v3834_v32 }
0x141b   : > { %5091 = vrot.lane.b32.xlu1 %v5948_v63, %s6132_s1  ;;  %s1076_s1 = scalar_lea.vmem %s5477_s14, %s5494_s18 }
0x1422   : > { %3838 = vadd.xlane.f32.xlu0 %v3837_v34 }
0x1445   : > { %3972 = vadd.xlane.f32.xlu1 %v3971_v39 }
0x1475   : > { %v4045_v10 = vpop.xlane.xlu1 %4044 }
0x1476   : > { %v4049_v44 = vsub.f32 %v4037_v23, %v4045_v10 }
0x1478   : > { %v4051_v11 = vmul.f32 1.442695, %v4049_v44 }
0x147a   : > { %5231 = vpow2.f32 %v4051_v11 }
0x147c   : > { %v3828_v5 = vpop.f32.mrf.mxu3 }
0x147d   : > { %v4048_v35 = vpop.xlane.xlu0 %4047 }
0x147e   : > { %v4050_v17 = vsub.f32 %v4040_v28, %v4048_v35 }
0x1480   : > { %v5232_v63 = vpop.eup %5231  ;;  %v4053_v41 = vmul.f32 1.442695, %v4050_v17 }
0x1481   : > { %4897 = vmatmul.msk.f32.vlgmr.msra.gmra.mxu2 %vm1825_vm5, %v5232_v63  ;;  %v4090_v47 = vsel %vm1825_vm5, %v5232_v63, 0.0 }
0x1482   : > { %5233 = vpow2.f32 %v4053_v41  ;;  %4091 = vadd.xlane.f32.xlu2 %v4090_v47 }
0x1484   : > { %v3831_v58 = vpop.f32.mrf.mxu3 }
0x1485   : > { %v3929_v48 = vpop.xlane.xlu0 %3928 }
0x1486   : > { %v3931_v42 = vsub.f32 %v3921_v30, %v3929_v48 }
0x1488   : > { %v5234_v36 = vpop.eup %5233  ;;  %v3934_v49 = vmul.f32 1.442695, %v3931_v42 }
0x1489   : > { %4898 = vmatmul.msk.f32.gmra.mxu2 %vm1825_vm5, %v5234_v36  ;;  %v4093_v33 = vsel %vm1825_vm5, %v5234_v36, 0.0 }
0x148a   : > { %5235 = vpow2.f32 %v3934_v49  ;;  %4094 = vadd.xlane.f32.xlu0 %v4093_v33 }
0x148d   : > { %v3836_v51 = vpop.xlane.xlu0 %3835  ;;  %v5092_v52 = vpop.permute.xlu1 %5091 }
0x148e   : > { %v5093_v43 = vunpack.i.l.bf16 %v5092_v52  ;;  %v5094_v56 = vunpack.i.h.bf16 %v5092_v52  ;;  %5237 = vrcp.f32 %v3836_v51 }
0x1490   : > { %v5236_v55 = vpop.eup %5235  ;;  %3962 = vmatpush.msrb.mxu3 %v5093_v43 }
0x1491   : > { %v3974_v26 = vsel %vm1825_vm5, %v5236_v55, 0.0 }
0x1492   : > { %3975 = vadd.xlane.f32.xlu0 %v3974_v26  ;;  %3963 = vmatpush.msrb.mxu3 %v5094_v56 }
0x1493   : > { %4890 = vmatmul.msk.f32.vlgmr.msrb.gmra.mxu3 %vm1825_vm5, %v5230_v53  ;;  %v5113_v53 = vld [vmem:[%s5462_s20] ss:$0 sm:$0xff] }
0x1494   : > { %v5238_v60 = vpop.eup %5237  ;;  %4114 = vmatpush.bf16.msra.mxu3 %v4105_v16 }
0x1495   : > { %v3839_v57 = vpop.xlane.xlu0 %3838  ;;  %v3842_v8 = vmul.f32 %v5238_v60, %v3828_v5 }
0x1496   : > { %5239 = vrcp.f32 %v3839_v57 }
0x149b   : > { %4891 = vmatmul.msk.f32.gmra.mxu3 %vm1825_vm5, %v5236_v55  ;;  %v5000_v55 = vld [vmem:[%s5467_s27] sm:$0xff] }
0x149c   : > { %v5240_v9 = vpop.eup %5239 }
0x149d   : > { %v3843_v59 = vmul.f32 %v5240_v9, %v3831_v58 }
0x149f   : > { %v3844_v61 = vpack.c.bf16 %v3843_v59, %v3842_v8 }
0x14a1   : > { %4884 = vmatmul.msk.bf16.vlgmr.msrb.gmra.mxu0 %vm1789_vm4, %v3844_v61 }
0x14b8   : > { %v3973_v21 = vpop.xlane.xlu1 %3972 }
0x14f5   : > { %v4092_v2 = vpop.xlane.xlu2 %4091 }
0x14f6   : > { %5241 = vrcp.f32 %v4092_v2 }
0x14fc   : > { %v5242_v6 = vpop.eup %5241 }
0x14fd   : > { %v4095_v3 = vpop.xlane.xlu0 %4094 }
0x14fe   : > { %5243 = vrcp.f32 %v4095_v3 }
0x14ff   : > { %5245 = vrcp.f32 %v3973_v21 }
0x1504   : > { %v4084_v4 = vpop.f32.mrf.mxu2  ;;  %v5244_v50 = vpop.eup %5243 }
0x1505   : > { %v4098_v54 = vmul.f32 %v5242_v6, %v4084_v4  ;;  %v3976_v22 = vpop.xlane.xlu0 %3975  ;;  %v5246_v24 = vpop.eup %5245 }
0x1506   : > { %5247 = vrcp.f32 %v3976_v22 }
0x150c   : > { %v4087_v13 = vpop.f32.mrf.mxu2  ;;  %v5248_v25 = vpop.eup %5247 }
0x150d   : > { %v4099_v15 = vmul.f32 %v5244_v50, %v4087_v13 }
0x150f   : > { %v4100_v19 = vpack.c.bf16 %v4099_v15, %v4098_v54 }
0x1511   : > { %4899 = vmatmul.msk.bf16.vlgmr.msra.gmra.mxu3 %vm1789_vm4, %v4100_v19  ;;  %v5114_v19 = vld [vmem:[%s5472_s4] ss:$0 sm:$0xff] }
0x1516   : > { %v3965_v23 = vpop.f32.mrf.mxu3 }
0x1517   : > { %v3979_v27 = vmul.f32 %v5246_v24, %v3965_v23 }
0x151e   : > { %v3968_v40 = vpop.f32.mrf.mxu3  ;;  %v3860_v30 = vpop.f32.mrf.mxu0 }
0x151f   : > { %v3980_v28 = vmul.f32 %v5248_v25, %v3968_v40  ;;  %v3881_v32 = vadd.f32 %v6021_v12, %v3860_v30 }
0x1521   : > { %v3981_v29 = vpack.c.bf16 %v3980_v28, %v3979_v27 }
0x1523   : > { %4892 = vmatmul.msk.bf16.vlgmr.msra.gmra.mxu0 %vm1789_vm4, %v3981_v29 }
0x1526   : > { %v3862_v18 = vpop.f32.mrf.mxu0 }
0x1527   : > { %v3883_v44 = vadd.f32 %v6023_v20, %v3862_v18 }
0x1594   : > { %v4116_v34 = vpop.f32.mrf.mxu3 }
0x159c   : > { %v4118_v1 = vpop.f32.mrf.mxu3 }
0x15a0   : > { %v3997_v37 = vpop.f32.mrf.mxu0 }
0x15a1   : > { %v4002_v38 = vadd.f32 %v3997_v37, %v3881_v32 }
0x15a3   : > { %v4121_v39 = vadd.f32 %v4116_v34, %v4002_v38 }
0x15a5   : > { %v4127_v10 = vadd.f32 %v5113_v53, %v4121_v39 }
0x15a7   : > { %v4129_v11 = vadd.f32 %v4127_v10, %v5954_v0 }
0x15a8   : > { %v3999_v35 = vpop.f32.mrf.mxu0 }
0x15a9   : > { %v4003_v45 = vadd.f32 %v3999_v35, %v3883_v44  ;;  %v4131_v17 = vsel %vm1285_vm0, %v4129_v11, 0.0 }
0x15aa   : > { %4132 = vadd.xlane.f32.xlu0 %v4131_v17 }
0x15ab   : > { %v4122_v63 = vadd.f32 %v4118_v1, %v4003_v45 }
0x15ad   : > { %v4128_v41 = vadd.f32 %v5113_v53, %v4122_v63 }
0x15af   : > { %v4130_v12 = vadd.f32 %v4128_v41, %v5959_v46  ;;  %v5001_v46 = vld [vmem:[%s5467_s27 + $0x8] sm:$0xff] }
0x15b0   : > { %4205 = vmatpush.bf16.msrb.mxu0 %v5001_v46 }
0x15b1   : > { %v4134_v47 = vsel %vm1285_vm0, %v4130_v12, 0.0 }
0x15b2   : > { %4135 = vadd.xlane.f32.xlu0 %v4134_v47 }
0x15b4   : > { %4206 = vmatpush.bf16.msrb.mxu0 %v5000_v55 }
0x161d   : > { %v4133_v48 = vpop.xlane.xlu0 %4132 }
0x161e   : > { %v4137_v20 = vmul.f32 %v4133_v48, %v5533_v7 }
0x1620   : > { %v4139_v42 = vsub.f32 %v4129_v11, %v4137_v20 }
0x1622   : > { %v4141_v0 = vmul.f32 %v4139_v42, %v4139_v42 }
0x1624   : > { %v4143_v36 = vsel %vm1285_vm0, %v4141_v0, 0.0 }
0x1625   : > { %4144 = vadd.xlane.f32.xlu0 %v4143_v36  ;;  %v4136_v49 = vpop.xlane.xlu0 %4135 }
0x1626   : > { %v4138_v33 = vmul.f32 %v4136_v49, %v5533_v7 }
0x1628   : > { %v4140_v51 = vsub.f32 %v4130_v12, %v4138_v33 }
0x162a   : > { %v4142_v52 = vmul.f32 %v4140_v51, %v4140_v51 }
0x162c   : > { %v4146_v43 = vsel %vm1285_vm0, %v4142_v52, 0.0 }
0x162d   : > { %4147 = vadd.xlane.f32.xlu2 %v4146_v43 }
0x1698   : > { %v4145_v56 = vpop.xlane.xlu0 %4144 }
0x1699   : > { %v4149_v26 = vmul.f32 %v4145_v56, %v5533_v7 }
0x169b   : > { %v4151_v5 = vadd.f32 1e-06, %v4149_v26 }
0x169d   : > { %5249 = vrsqrt.f32 %v4151_v5  ;;  %vm4159_vm5 = vweird.f32 %v4151_v5 }
0x16a0   : > { %v4148_v57 = vpop.xlane.xlu2 %4147 }
0x16a1   : > { %v4150_v60 = vmul.f32 %v4148_v57, %v5533_v7 }
0x16a3   : > { %v5250_v9 = vpop.eup %5249  ;;  %v4152_v58 = vadd.f32 1e-06, %v4150_v60 }
0x16a4   : > { %v4154_v8 = vmul.f32 %v5250_v9, %v4151_v5  ;;  %vm4160_vm4 = vweird.f32 %v5250_v9 }
0x16a5   : > { %5251 = vrsqrt.f32 %v4152_v58  ;;  %vm4161_vm9 = vmor %vm4159_vm5, %vm4160_vm4  ;;  %vm4169_vm10 = vweird.f32 %v4152_v58 }
0x16a6   : > { %v4155_v59 = vmul.f32 %v5250_v9, %v4154_v8 }
0x16a8   : > { %v4156_v61 = vmul.f32 0.5, %v4155_v59 }
0x16aa   : > { %v4157_v16 = vsub.f32 1.5, %v4156_v61 }
0x16ab   : > { %v5252_v31 = vpop.eup %5251 }
0x16ac   : > { %v4164_v62 = vmul.f32 %v5252_v31, %v4152_v58  ;;  %v4158_v2 = vmul.f32 %v5250_v9, %v4157_v16  ;;  %vm4170_vm6 = vweird.f32 %v5252_v31 }
0x16ad   : > { %vm4171_vm11 = vmor %vm4169_vm10, %vm4170_vm6 }
0x16ae   : > { %v4165_v14 = vmul.f32 %v5252_v31, %v4164_v62  ;;  %v4162_v7 = vsel %vm4161_vm9, %v5250_v9, %v4158_v2 }
0x16af   : > { %v4173_v13 = vmul.f32 %v4162_v7, %v4139_v42 }
0x16b0   : > { %v4166_v3 = vmul.f32 0.5, %v4165_v14 }
0x16b2   : > { %v4167_v4 = vsub.f32 1.5, %v4166_v3 }
0x16b4   : > { %v4168_v6 = vmul.f32 %v5252_v31, %v4167_v4 }
0x16b6   : > { %v4172_v50 = vsel %vm4171_vm11, %v5252_v31, %v4168_v6 }
0x16b7   : > { %v4174_v54 = vmul.f32 %v4172_v50, %v4140_v51 }
0x16b9   : > { %v4179_v15 = vpack.c.bf16 %v4174_v54, %v4173_v13 }
0x16bb   : > { %4908 = vmatmul.msk.bf16.vlgmr.msrb.gmra.mxu0 %vm1285_vm0, %v4179_v15 }
0x1738   : > { %v4208_v21 = vpop.f32.mrf.mxu0 }
0x1739   : > { %v4209_v22 = vadd.f32 %v5114_v19, %v4208_v21 }
0x173b   : > { %4213 = vst.msk [vmem:[%s1076_s1] sm:$0xff] %vm1119_vm1, %v4209_v22 }
0x1740   : > { %v4210_v23 = vpop.f32.mrf.mxu0 }
0x1741   : > { %v4211_v24 = vadd.f32 %v5114_v19, %v4210_v23 }
0x1743   : > { %4214 = vst.msk [vmem:[%s1076_s1 + $0x8] sm:$0xff] %vm1119_vm1, %v4211_v24 }
0x1744 PF: > { %s79_s15 = sadd.s32 1, %s5259_s15  }
0x1745   : > { %p76_p4 = scmp.ge.s32.totalorder %s79_s15, 4  }
0x1747   :  { %78 = sbr.rel (!%p76_p4) target bundleno = 60 (0x3c), region = 264 }

</bundles_post_ra>
